<compile_context>
chip_gen: v6e
topology: v6e:2x2x1
jax: 0.10.0
libtpu: 0.0.40
codegen_flags: <defaults>
</compile_context>

<pallas_src>
import jax
import jax.numpy as jnp
from jax.experimental import pallas as pl
from jax.experimental.pallas import tpu as pltpu

# Layer widths of PlayerRating(input_size):
#   input_size -> 512 -> 256 -> 128 -> 64 -> 32 -> 16 -> 8 -> 4 -> 2 -> 1
HIDDEN = [512, 256, 128, 64, 32, 16, 8, 4, 2, 1]
LANE = 128
_TM_BUCKETS = (128, 256, 512, 1024)   # batch-tile (lane) sizes; max 1024


def _pick_tm(batch):
    """Bucketed batch tile: largest bucket <= ceil(B/2), so the grid has at
    least 2 steps (v7x megacore) whenever B >= 256, while v5e/v6e get big
    tiles that amortize per-step overhead."""
    half = pl.cdiv(batch, 2)
    tm = _TM_BUCKETS[0]
    for b in _TM_BUCKETS:
        if b <= half:
            tm = b
    return tm


def _mlp_kernel(xT_ref, w0_ref, w1_ref, w2_ref, wt_ref, b_ref, o_ref):
    """One (F, tm) batch tile through the whole transposed MLP.

    xT_ref: (F, tm)        bf16   input activations, batch on the lane axis
    w0_ref: (512, F)       bf16   W0^T
    w1_ref: (256, 512)     bf16   W1^T
    w2_ref: (128, 256)     bf16   W2^T
    wt_ref: (7, 128, 128)  bf16   zero-padded W^T of the tail layers
    b_ref : (512, 16)      f32    column i = bias of layer i (zero-padded)
    o_ref : (1, tm)        f32    lane-dense output row
    """
    tm = xT_ref.shape[1]
    hm = tm // 2

    def dense(h, w, layer_idx, fout, relu):
        acc = jnp.dot(w, h.astype(jnp.bfloat16),
                      preferred_element_type=jnp.float32)
        acc = acc + b_ref[:fout, layer_idx:layer_idx + 1]   # (fout,1) bcast
        return jnp.maximum(acc, 0.0) if relu else acc

    # Two independent half-tiles -> two independent matmul chains per layer.
    halves = [xT_ref[:, :hm], xT_ref[:, hm:]]

    # Head: F -> 512 -> 256 -> 128 (all ReLU).
    for li, (w_ref, fout) in enumerate(
            ((w0_ref, 512), (w1_ref, 256), (w2_ref, 128))):
        w = w_ref[...]
        halves = [dense(h, w, li, fout, True) for h in halves]

    # Tail: 7 zero-padded 128x128 layers; the final Linear (2->1) has no ReLU.
    # TODO(synk): widths <=16 could move off the MXU onto VPU+XLU; kept as
    # padded matmuls since the two interleaved chains already hide most of the
    # per-layer drain latency.
    for j in range(7):
        w = wt_ref[j]
        halves = [dense(h, w, 3 + j, 128, j < 6) for h in halves]

    # Row 0 of each half is the rating for its lanes; write one dense row.
    o_ref[:, :hm] = halves[0][:1, :]
    o_ref[:, hm:] = halves[1][:1, :]


def init_params(input_size, key):
    """Deterministic params matching nn.Linear default init (U[+/- 1/sqrt(fan_in)])."""
    dims = [input_size] + HIDDEN
    params = []
    for i in range(len(HIDDEN)):
        fan_in, fan_out = dims[i], dims[i + 1]
        key, kw, kb = jax.random.split(key, 3)
        bound = 1.0 / (fan_in ** 0.5)
        w = jax.random.uniform(kw, (fan_in, fan_out), jnp.float32, -bound, bound)
        b = jax.random.uniform(kb, (fan_out,), jnp.float32, -bound, bound)
        params.append((w, b))
    return params


def pack_params(params):
    """Pre-transposed bf16 weights; tail layers zero-padded to 128x128 and
    stacked; all biases packed as columns of one f32 array."""
    w0T = params[0][0].T.astype(jnp.bfloat16)                 # (512, F)
    w1T = params[1][0].T.astype(jnp.bfloat16)                 # (256, 512)
    w2T = params[2][0].T.astype(jnp.bfloat16)                 # (128, 256)
    wtT = jnp.zeros((7, LANE, LANE), jnp.bfloat16)
    for j in range(7):
        w = params[3 + j][0]                                  # (fin, fout)
        fin, fout = w.shape
        wtT = wtT.at[j, :fout, :fin].set(w.T.astype(jnp.bfloat16))
    b_cols = jnp.zeros((512, 16), jnp.float32)
    for i, (_, b) in enumerate(params):
        b_cols = b_cols.at[:b.shape[0], i].set(b)
    return w0T, w1T, w2T, wtT, b_cols


@jax.jit
def player_rating_forward(x, w0T, w1T, w2T, wtT, b_cols):
    """x: (B, input_size) float32 -> (B, 1) float32."""
    B, F = x.shape
    tm = _pick_tm(B)
    num_tiles = pl.cdiv(B, tm)

    # Cast once + transpose so the batch is the lane axis inside the kernel.
    xT = x.astype(jnp.bfloat16).T                             # (F, B)

    dims = [F] + HIDDEN
    flops = 2 * B * sum(dims[i] * dims[i + 1] for i in range(len(HIDDEN)))
    param_bytes = sum(int(a.size) * a.dtype.itemsize
                      for a in (w0T, w1T, w2T, wtT, b_cols))
    bytes_accessed = int(xT.size) * 2 + num_tiles * tm * 4 + param_bytes

    # Generous VMEM budget: resident params + double-buffered x/out tiles +
    # live f32 half-tile activations + slack; floored at 16 MiB (v5e default),
    # capped below v7x's 64 MiB physical VMEM.
    vmem_bytes = (param_bytes + 2 * F * tm * 2 + 2 * tm * 4
                  + 8 * 512 * (tm // 2) * 4 + (8 << 20))
    vmem_limit = int(min(max(vmem_bytes, 16 << 20), 48 << 20))

    # NOTE: pipeline_mode=pl.Buffered(1) on the constant-index param specs
    # would halve their (already tiny) double-buffered footprint; omitted to
    # keep the lowering maximally portable across JAX/Mosaic versions.
    out = pl.pallas_call(
        _mlp_kernel,
        out_shape=jax.ShapeDtypeStruct((num_tiles, tm), jnp.float32),
        grid_spec=pltpu.PrefetchScalarGridSpec(
            num_scalar_prefetch=0,
            grid=(num_tiles,),
            in_specs=[
                pl.BlockSpec((F, tm), lambda i: (0, i)),      # xT: batch-tiled
                pl.BlockSpec(w0T.shape, lambda i: (0, 0)),    # params resident
                pl.BlockSpec(w1T.shape, lambda i: (0, 0)),
                pl.BlockSpec(w2T.shape, lambda i: (0, 0)),
                pl.BlockSpec(wtT.shape, lambda i: (0, 0, 0)),
                pl.BlockSpec(b_cols.shape, lambda i: (0, 0)),
            ],
            out_specs=pl.BlockSpec((1, tm), lambda i: (i, 0)),
        ),
        compiler_params=pltpu.CompilerParams(
            dimension_semantics=("parallel",),
            vmem_limit_bytes=vmem_limit),
        cost_estimate=pl.CostEstimate(
            flops=flops, transcendentals=0, bytes_accessed=bytes_accessed),
    )(xT, w0T, w1T, w2T, wtT, b_cols)

    # Lane-dense (num_tiles, tm) slab -> (B, 1); padded lanes are discarded.
    return out.reshape(-1)[:B].reshape(B, 1)


def _reference_forward(x, params):
    """Pure-JAX reference mirroring the kernel's bf16-weight / f32-accumulate
    numerics (PyTorch f32 parity is within ~bf16 precision over 10 layers)."""
    h = x
    for i, (w, b) in enumerate(params):
        hb = h.astype(jnp.bfloat16).astype(jnp.float32)
        wb = w.astype(jnp.bfloat16).astype(jnp.float32)
        h = hb @ wb + b
        if i < len(params) - 1:
            h = jnp.maximum(h, 0.0)
    return h


if __name__ == "__main__":
    key = jax.random.PRNGKey(0)
    input_size = 32
    batch = 2

    key, kx, kp = jax.random.split(key, 3)
    x = jax.random.normal(kx, (batch, input_size), jnp.float32)

    params = init_params(input_size, kp)
    w0T, w1T, w2T, wtT, b_cols = pack_params(params)

    out = player_rating_forward(x, w0T, w1T, w2T, wtT, b_cols)
    out = jax.block_until_ready(out)

    ref = _reference_forward(x, params)
    assert out.shape == (batch, 1), out.shape
    assert jnp.allclose(out, ref, atol=1e-3, rtol=1e-3), (out, ref)

    # Exercise the multi-tile pipelined path (3 grid steps + partial edge tile).
    big_b = 1027
    key, kx2 = jax.random.split(key)
    x_big = jax.random.normal(kx2, (big_b, input_size), jnp.float32)
    out_big = jax.block_until_ready(
        player_rating_forward(x_big, w0T, w1T, w2T, wtT, b_cols))
    ref_big = _reference_forward(x_big, params)
    assert out_big.shape == (big_b, 1), out_big.shape
    assert jnp.allclose(out_big, ref_big, atol=1e-3, rtol=1e-3)

    print("KERNEL_OK")
</pallas_src>

<mosaic_0001>
module attributes {stable_mosaic.version = 11 : i64} {
  func.func @_mlp_kernel(%arg0: i32, %arg1: memref<32x128xbf16, #tpu.memory_space<vmem>>, %arg2: memref<512x32xbf16, #tpu.memory_space<vmem>>, %arg3: memref<256x512xbf16, #tpu.memory_space<vmem>>, %arg4: memref<128x256xbf16, #tpu.memory_space<vmem>>, %arg5: memref<7x128x128xbf16, #tpu.memory_space<vmem>>, %arg6: memref<512x16xf32, #tpu.memory_space<vmem>>, %arg7: memref<1x128xf32, #tpu.memory_space<vmem>>) attributes {dimension_semantics = [#tpu.dimension_semantics<parallel>], iteration_bounds = array<i64: 1>, scalar_prefetch = 0 : i64, scratch_operands = 0 : i64, tpu.core_type = #tpu.core_type<tc>, window_params = [{transform_indices = @transform_0, window_bounds = array<i64: 32, 128>}, {pipeline_mode = #tpu.pipeline_mode<synchronous>, transform_indices = @transform_1, window_bounds = array<i64: 512, 32>}, {pipeline_mode = #tpu.pipeline_mode<synchronous>, transform_indices = @transform_2, window_bounds = array<i64: 256, 512>}, {pipeline_mode = #tpu.pipeline_mode<synchronous>, transform_indices = @transform_3, window_bounds = array<i64: 128, 256>}, {pipeline_mode = #tpu.pipeline_mode<synchronous>, transform_indices = @transform_4, window_bounds = array<i64: 7, 128, 128>}, {pipeline_mode = #tpu.pipeline_mode<synchronous>, transform_indices = @transform_5, window_bounds = array<i64: 512, 16>}, {transform_indices = @transform_6, window_bounds = array<i64: 1, 128>}]} {
    %c0 = arith.constant 0 : index
    %c0_0 = arith.constant 0 : index
    %0 = vector.load %arg1[%c0, %c0_0] : memref<32x128xbf16, #tpu.memory_space<vmem>>, vector<32x64xbf16>
    %c0_1 = arith.constant 0 : index
    %c64 = arith.constant 64 : index
    %1 = vector.load %arg1[%c0_1, %c64] : memref<32x128xbf16, #tpu.memory_space<vmem>>, vector<32x64xbf16>
    %c0_2 = arith.constant 0 : index
    %c0_3 = arith.constant 0 : index
    %2 = vector.load %arg2[%c0_2, %c0_3] : memref<512x32xbf16, #tpu.memory_space<vmem>>, vector<512x32xbf16>
    %cst = arith.constant dense<0.000000e+00> : vector<512x64xf32>
    %3 = tpu.matmul %2, %0, %cst {dimension_numbers = #tpu.dot_dimension_numbers<[1], [0], [0], [1], [0, 0, 1, 1], [], []>} : vector<512x32xbf16>, vector<32x64xbf16>, vector<512x64xf32> -> vector<512x64xf32>
    %c0_4 = arith.constant 0 : index
    %c0_5 = arith.constant 0 : index
    %4 = vector.load %arg6[%c0_4, %c0_5] : memref<512x16xf32, #tpu.memory_space<vmem>>, vector<512x1xf32>
    %5 = vector.broadcast %4 : vector<512x1xf32> to vector<512x64xf32>
    %6 = arith.addf %3, %5 : vector<512x64xf32>
    %cst_6 = arith.constant 0.000000e+00 : f32
    %7 = vector.broadcast %cst_6 : f32 to vector<512x64xf32>
    %8 = arith.maximumf %6, %7 : vector<512x64xf32>
    %cst_7 = arith.constant dense<0.000000e+00> : vector<512x64xf32>
    %9 = tpu.matmul %2, %1, %cst_7 {dimension_numbers = #tpu.dot_dimension_numbers<[1], [0], [0], [1], [0, 0, 1, 1], [], []>} : vector<512x32xbf16>, vector<32x64xbf16>, vector<512x64xf32> -> vector<512x64xf32>
    %c0_8 = arith.constant 0 : index
    %c0_9 = arith.constant 0 : index
    %10 = vector.load %arg6[%c0_8, %c0_9] : memref<512x16xf32, #tpu.memory_space<vmem>>, vector<512x1xf32>
    %11 = vector.broadcast %10 : vector<512x1xf32> to vector<512x64xf32>
    %12 = arith.addf %9, %11 : vector<512x64xf32>
    %cst_10 = arith.constant 0.000000e+00 : f32
    %13 = vector.broadcast %cst_10 : f32 to vector<512x64xf32>
    %14 = arith.maximumf %12, %13 : vector<512x64xf32>
    %c0_11 = arith.constant 0 : index
    %c0_12 = arith.constant 0 : index
    %15 = vector.load %arg3[%c0_11, %c0_12] : memref<256x512xbf16, #tpu.memory_space<vmem>>, vector<256x512xbf16>
    %16 = arith.truncf %8 : vector<512x64xf32> to vector<512x64xbf16>
    %cst_13 = arith.constant dense<0.000000e+00> : vector<256x64xf32>
    %17 = tpu.matmul %15, %16, %cst_13 {dimension_numbers = #tpu.dot_dimension_numbers<[1], [0], [0], [1], [0, 0, 1, 1], [], []>} : vector<256x512xbf16>, vector<512x64xbf16>, vector<256x64xf32> -> vector<256x64xf32>
    %c0_14 = arith.constant 0 : index
    %c1 = arith.constant 1 : index
    %18 = vector.load %arg6[%c0_14, %c1] : memref<512x16xf32, #tpu.memory_space<vmem>>, vector<256x1xf32>
    %19 = vector.broadcast %18 : vector<256x1xf32> to vector<256x64xf32>
    %20 = arith.addf %17, %19 : vector<256x64xf32>
    %cst_15 = arith.constant 0.000000e+00 : f32
    %21 = vector.broadcast %cst_15 : f32 to vector<256x64xf32>
    %22 = arith.maximumf %20, %21 : vector<256x64xf32>
    %23 = arith.truncf %14 : vector<512x64xf32> to vector<512x64xbf16>
    %cst_16 = arith.constant dense<0.000000e+00> : vector<256x64xf32>
    %24 = tpu.matmul %15, %23, %cst_16 {dimension_numbers = #tpu.dot_dimension_numbers<[1], [0], [0], [1], [0, 0, 1, 1], [], []>} : vector<256x512xbf16>, vector<512x64xbf16>, vector<256x64xf32> -> vector<256x64xf32>
    %c0_17 = arith.constant 0 : index
    %c1_18 = arith.constant 1 : index
    %25 = vector.load %arg6[%c0_17, %c1_18] : memref<512x16xf32, #tpu.memory_space<vmem>>, vector<256x1xf32>
    %26 = vector.broadcast %25 : vector<256x1xf32> to vector<256x64xf32>
    %27 = arith.addf %24, %26 : vector<256x64xf32>
    %cst_19 = arith.constant 0.000000e+00 : f32
    %28 = vector.broadcast %cst_19 : f32 to vector<256x64xf32>
    %29 = arith.maximumf %27, %28 : vector<256x64xf32>
    %c0_20 = arith.constant 0 : index
    %c0_21 = arith.constant 0 : index
    %30 = vector.load %arg4[%c0_20, %c0_21] : memref<128x256xbf16, #tpu.memory_space<vmem>>, vector<128x256xbf16>
    %31 = arith.truncf %22 : vector<256x64xf32> to vector<256x64xbf16>
    %cst_22 = arith.constant dense<0.000000e+00> : vector<128x64xf32>
    %32 = tpu.matmul %30, %31, %cst_22 {dimension_numbers = #tpu.dot_dimension_numbers<[1], [0], [0], [1], [0, 0, 1, 1], [], []>} : vector<128x256xbf16>, vector<256x64xbf16>, vector<128x64xf32> -> vector<128x64xf32>
    %c0_23 = arith.constant 0 : index
    %c2 = arith.constant 2 : index
    %33 = vector.load %arg6[%c0_23, %c2] : memref<512x16xf32, #tpu.memory_space<vmem>>, vector<128x1xf32>
    %34 = vector.broadcast %33 : vector<128x1xf32> to vector<128x64xf32>
    %35 = arith.addf %32, %34 : vector<128x64xf32>
    %cst_24 = arith.constant 0.000000e+00 : f32
    %36 = vector.broadcast %cst_24 : f32 to vector<128x64xf32>
    %37 = arith.maximumf %35, %36 : vector<128x64xf32>
    %38 = arith.truncf %29 : vector<256x64xf32> to vector<256x64xbf16>
    %cst_25 = arith.constant dense<0.000000e+00> : vector<128x64xf32>
    %39 = tpu.matmul %30, %38, %cst_25 {dimension_numbers = #tpu.dot_dimension_numbers<[1], [0], [0], [1], [0, 0, 1, 1], [], []>} : vector<128x256xbf16>, vector<256x64xbf16>, vector<128x64xf32> -> vector<128x64xf32>
    %c0_26 = arith.constant 0 : index
    %c2_27 = arith.constant 2 : index
    %40 = vector.load %arg6[%c0_26, %c2_27] : memref<512x16xf32, #tpu.memory_space<vmem>>, vector<128x1xf32>
    %41 = vector.broadcast %40 : vector<128x1xf32> to vector<128x64xf32>
    %42 = arith.addf %39, %41 : vector<128x64xf32>
    %cst_28 = arith.constant 0.000000e+00 : f32
    %43 = vector.broadcast %cst_28 : f32 to vector<128x64xf32>
    %44 = arith.maximumf %42, %43 : vector<128x64xf32>
    %c0_29 = arith.constant 0 : index
    %c0_30 = arith.constant 0 : index
    %c0_31 = arith.constant 0 : index
    %45 = vector.load %arg5[%c0_29, %c0_30, %c0_31] : memref<7x128x128xbf16, #tpu.memory_space<vmem>>, vector<1x128x128xbf16>
    %46 = vector.shape_cast %45 : vector<1x128x128xbf16> to vector<128x128xbf16>
    %47 = arith.truncf %37 : vector<128x64xf32> to vector<128x64xbf16>
    %cst_32 = arith.constant dense<0.000000e+00> : vector<128x64xf32>
    %48 = tpu.matmul %46, %47, %cst_32 {dimension_numbers = #tpu.dot_dimension_numbers<[1], [0], [0], [1], [0, 0, 1, 1], [], []>} : vector<128x128xbf16>, vector<128x64xbf16>, vector<128x64xf32> -> vector<128x64xf32>
    %c0_33 = arith.constant 0 : index
    %c3 = arith.constant 3 : index
    %49 = vector.load %arg6[%c0_33, %c3] : memref<512x16xf32, #tpu.memory_space<vmem>>, vector<128x1xf32>
    %50 = vector.broadcast %49 : vector<128x1xf32> to vector<128x64xf32>
    %51 = arith.addf %48, %50 : vector<128x64xf32>
    %cst_34 = arith.constant 0.000000e+00 : f32
    %52 = vector.broadcast %cst_34 : f32 to vector<128x64xf32>
    %53 = arith.maximumf %51, %52 : vector<128x64xf32>
    %54 = arith.truncf %44 : vector<128x64xf32> to vector<128x64xbf16>
    %cst_35 = arith.constant dense<0.000000e+00> : vector<128x64xf32>
    %55 = tpu.matmul %46, %54, %cst_35 {dimension_numbers = #tpu.dot_dimension_numbers<[1], [0], [0], [1], [0, 0, 1, 1], [], []>} : vector<128x128xbf16>, vector<128x64xbf16>, vector<128x64xf32> -> vector<128x64xf32>
    %c0_36 = arith.constant 0 : index
    %c3_37 = arith.constant 3 : index
    %56 = vector.load %arg6[%c0_36, %c3_37] : memref<512x16xf32, #tpu.memory_space<vmem>>, vector<128x1xf32>
    %57 = vector.broadcast %56 : vector<128x1xf32> to vector<128x64xf32>
    %58 = arith.addf %55, %57 : vector<128x64xf32>
    %cst_38 = arith.constant 0.000000e+00 : f32
    %59 = vector.broadcast %cst_38 : f32 to vector<128x64xf32>
    %60 = arith.maximumf %58, %59 : vector<128x64xf32>
    %c1_39 = arith.constant 1 : index
    %c0_40 = arith.constant 0 : index
    %c0_41 = arith.constant 0 : index
    %61 = vector.load %arg5[%c1_39, %c0_40, %c0_41] : memref<7x128x128xbf16, #tpu.memory_space<vmem>>, vector<1x128x128xbf16>
    %62 = vector.shape_cast %61 : vector<1x128x128xbf16> to vector<128x128xbf16>
    %63 = arith.truncf %53 : vector<128x64xf32> to vector<128x64xbf16>
    %cst_42 = arith.constant dense<0.000000e+00> : vector<128x64xf32>
    %64 = tpu.matmul %62, %63, %cst_42 {dimension_numbers = #tpu.dot_dimension_numbers<[1], [0], [0], [1], [0, 0, 1, 1], [], []>} : vector<128x128xbf16>, vector<128x64xbf16>, vector<128x64xf32> -> vector<128x64xf32>
    %c0_43 = arith.constant 0 : index
    %c4 = arith.constant 4 : index
    %65 = vector.load %arg6[%c0_43, %c4] : memref<512x16xf32, #tpu.memory_space<vmem>>, vector<128x1xf32>
    %66 = vector.broadcast %65 : vector<128x1xf32> to vector<128x64xf32>
    %67 = arith.addf %64, %66 : vector<128x64xf32>
    %cst_44 = arith.constant 0.000000e+00 : f32
    %68 = vector.broadcast %cst_44 : f32 to vector<128x64xf32>
    %69 = arith.maximumf %67, %68 : vector<128x64xf32>
    %70 = arith.truncf %60 : vector<128x64xf32> to vector<128x64xbf16>
    %cst_45 = arith.constant dense<0.000000e+00> : vector<128x64xf32>
    %71 = tpu.matmul %62, %70, %cst_45 {dimension_numbers = #tpu.dot_dimension_numbers<[1], [0], [0], [1], [0, 0, 1, 1], [], []>} : vector<128x128xbf16>, vector<128x64xbf16>, vector<128x64xf32> -> vector<128x64xf32>
    %c0_46 = arith.constant 0 : index
    %c4_47 = arith.constant 4 : index
    %72 = vector.load %arg6[%c0_46, %c4_47] : memref<512x16xf32, #tpu.memory_space<vmem>>, vector<128x1xf32>
    %73 = vector.broadcast %72 : vector<128x1xf32> to vector<128x64xf32>
    %74 = arith.addf %71, %73 : vector<128x64xf32>
    %cst_48 = arith.constant 0.000000e+00 : f32
    %75 = vector.broadcast %cst_48 : f32 to vector<128x64xf32>
    %76 = arith.maximumf %74, %75 : vector<128x64xf32>
    %c2_49 = arith.constant 2 : index
    %c0_50 = arith.constant 0 : index
    %c0_51 = arith.constant 0 : index
    %77 = vector.load %arg5[%c2_49, %c0_50, %c0_51] : memref<7x128x128xbf16, #tpu.memory_space<vmem>>, vector<1x128x128xbf16>
    %78 = vector.shape_cast %77 : vector<1x128x128xbf16> to vector<128x128xbf16>
    %79 = arith.truncf %69 : vector<128x64xf32> to vector<128x64xbf16>
    %cst_52 = arith.constant dense<0.000000e+00> : vector<128x64xf32>
    %80 = tpu.matmul %78, %79, %cst_52 {dimension_numbers = #tpu.dot_dimension_numbers<[1], [0], [0], [1], [0, 0, 1, 1], [], []>} : vector<128x128xbf16>, vector<128x64xbf16>, vector<128x64xf32> -> vector<128x64xf32>
    %c0_53 = arith.constant 0 : index
    %c5 = arith.constant 5 : index
    %81 = vector.load %arg6[%c0_53, %c5] : memref<512x16xf32, #tpu.memory_space<vmem>>, vector<128x1xf32>
    %82 = vector.broadcast %81 : vector<128x1xf32> to vector<128x64xf32>
    %83 = arith.addf %80, %82 : vector<128x64xf32>
    %cst_54 = arith.constant 0.000000e+00 : f32
    %84 = vector.broadcast %cst_54 : f32 to vector<128x64xf32>
    %85 = arith.maximumf %83, %84 : vector<128x64xf32>
    %86 = arith.truncf %76 : vector<128x64xf32> to vector<128x64xbf16>
    %cst_55 = arith.constant dense<0.000000e+00> : vector<128x64xf32>
    %87 = tpu.matmul %78, %86, %cst_55 {dimension_numbers = #tpu.dot_dimension_numbers<[1], [0], [0], [1], [0, 0, 1, 1], [], []>} : vector<128x128xbf16>, vector<128x64xbf16>, vector<128x64xf32> -> vector<128x64xf32>
    %c0_56 = arith.constant 0 : index
    %c5_57 = arith.constant 5 : index
    %88 = vector.load %arg6[%c0_56, %c5_57] : memref<512x16xf32, #tpu.memory_space<vmem>>, vector<128x1xf32>
    %89 = vector.broadcast %88 : vector<128x1xf32> to vector<128x64xf32>
    %90 = arith.addf %87, %89 : vector<128x64xf32>
    %cst_58 = arith.constant 0.000000e+00 : f32
    %91 = vector.broadcast %cst_58 : f32 to vector<128x64xf32>
    %92 = arith.maximumf %90, %91 : vector<128x64xf32>
    %c3_59 = arith.constant 3 : index
    %c0_60 = arith.constant 0 : index
    %c0_61 = arith.constant 0 : index
    %93 = vector.load %arg5[%c3_59, %c0_60, %c0_61] : memref<7x128x128xbf16, #tpu.memory_space<vmem>>, vector<1x128x128xbf16>
    %94 = vector.shape_cast %93 : vector<1x128x128xbf16> to vector<128x128xbf16>
    %95 = arith.truncf %85 : vector<128x64xf32> to vector<128x64xbf16>
    %cst_62 = arith.constant dense<0.000000e+00> : vector<128x64xf32>
    %96 = tpu.matmul %94, %95, %cst_62 {dimension_numbers = #tpu.dot_dimension_numbers<[1], [0], [0], [1], [0, 0, 1, 1], [], []>} : vector<128x128xbf16>, vector<128x64xbf16>, vector<128x64xf32> -> vector<128x64xf32>
    %c0_63 = arith.constant 0 : index
    %c6 = arith.constant 6 : index
    %97 = vector.load %arg6[%c0_63, %c6] : memref<512x16xf32, #tpu.memory_space<vmem>>, vector<128x1xf32>
    %98 = vector.broadcast %97 : vector<128x1xf32> to vector<128x64xf32>
    %99 = arith.addf %96, %98 : vector<128x64xf32>
    %cst_64 = arith.constant 0.000000e+00 : f32
    %100 = vector.broadcast %cst_64 : f32 to vector<128x64xf32>
    %101 = arith.maximumf %99, %100 : vector<128x64xf32>
    %102 = arith.truncf %92 : vector<128x64xf32> to vector<128x64xbf16>
    %cst_65 = arith.constant dense<0.000000e+00> : vector<128x64xf32>
    %103 = tpu.matmul %94, %102, %cst_65 {dimension_numbers = #tpu.dot_dimension_numbers<[1], [0], [0], [1], [0, 0, 1, 1], [], []>} : vector<128x128xbf16>, vector<128x64xbf16>, vector<128x64xf32> -> vector<128x64xf32>
    %c0_66 = arith.constant 0 : index
    %c6_67 = arith.constant 6 : index
    %104 = vector.load %arg6[%c0_66, %c6_67] : memref<512x16xf32, #tpu.memory_space<vmem>>, vector<128x1xf32>
    %105 = vector.broadcast %104 : vector<128x1xf32> to vector<128x64xf32>
    %106 = arith.addf %103, %105 : vector<128x64xf32>
    %cst_68 = arith.constant 0.000000e+00 : f32
    %107 = vector.broadcast %cst_68 : f32 to vector<128x64xf32>
    %108 = arith.maximumf %106, %107 : vector<128x64xf32>
    %c4_69 = arith.constant 4 : index
    %c0_70 = arith.constant 0 : index
    %c0_71 = arith.constant 0 : index
    %109 = vector.load %arg5[%c4_69, %c0_70, %c0_71] : memref<7x128x128xbf16, #tpu.memory_space<vmem>>, vector<1x128x128xbf16>
    %110 = vector.shape_cast %109 : vector<1x128x128xbf16> to vector<128x128xbf16>
    %111 = arith.truncf %101 : vector<128x64xf32> to vector<128x64xbf16>
    %cst_72 = arith.constant dense<0.000000e+00> : vector<128x64xf32>
    %112 = tpu.matmul %110, %111, %cst_72 {dimension_numbers = #tpu.dot_dimension_numbers<[1], [0], [0], [1], [0, 0, 1, 1], [], []>} : vector<128x128xbf16>, vector<128x64xbf16>, vector<128x64xf32> -> vector<128x64xf32>
    %c0_73 = arith.constant 0 : index
    %c7 = arith.constant 7 : index
    %113 = vector.load %arg6[%c0_73, %c7] : memref<512x16xf32, #tpu.memory_space<vmem>>, vector<128x1xf32>
    %114 = vector.broadcast %113 : vector<128x1xf32> to vector<128x64xf32>
    %115 = arith.addf %112, %114 : vector<128x64xf32>
    %cst_74 = arith.constant 0.000000e+00 : f32
    %116 = vector.broadcast %cst_74 : f32 to vector<128x64xf32>
    %117 = arith.maximumf %115, %116 : vector<128x64xf32>
    %118 = arith.truncf %108 : vector<128x64xf32> to vector<128x64xbf16>
    %cst_75 = arith.constant dense<0.000000e+00> : vector<128x64xf32>
    %119 = tpu.matmul %110, %118, %cst_75 {dimension_numbers = #tpu.dot_dimension_numbers<[1], [0], [0], [1], [0, 0, 1, 1], [], []>} : vector<128x128xbf16>, vector<128x64xbf16>, vector<128x64xf32> -> vector<128x64xf32>
    %c0_76 = arith.constant 0 : index
    %c7_77 = arith.constant 7 : index
    %120 = vector.load %arg6[%c0_76, %c7_77] : memref<512x16xf32, #tpu.memory_space<vmem>>, vector<128x1xf32>
    %121 = vector.broadcast %120 : vector<128x1xf32> to vector<128x64xf32>
    %122 = arith.addf %119, %121 : vector<128x64xf32>
    %cst_78 = arith.constant 0.000000e+00 : f32
    %123 = vector.broadcast %cst_78 : f32 to vector<128x64xf32>
    %124 = arith.maximumf %122, %123 : vector<128x64xf32>
    %c5_79 = arith.constant 5 : index
    %c0_80 = arith.constant 0 : index
    %c0_81 = arith.constant 0 : index
    %125 = vector.load %arg5[%c5_79, %c0_80, %c0_81] : memref<7x128x128xbf16, #tpu.memory_space<vmem>>, vector<1x128x128xbf16>
    %126 = vector.shape_cast %125 : vector<1x128x128xbf16> to vector<128x128xbf16>
    %127 = arith.truncf %117 : vector<128x64xf32> to vector<128x64xbf16>
    %cst_82 = arith.constant dense<0.000000e+00> : vector<128x64xf32>
    %128 = tpu.matmul %126, %127, %cst_82 {dimension_numbers = #tpu.dot_dimension_numbers<[1], [0], [0], [1], [0, 0, 1, 1], [], []>} : vector<128x128xbf16>, vector<128x64xbf16>, vector<128x64xf32> -> vector<128x64xf32>
    %c0_83 = arith.constant 0 : index
    %c8 = arith.constant 8 : index
    %129 = vector.load %arg6[%c0_83, %c8] : memref<512x16xf32, #tpu.memory_space<vmem>>, vector<128x1xf32>
    %130 = vector.broadcast %129 : vector<128x1xf32> to vector<128x64xf32>
    %131 = arith.addf %128, %130 : vector<128x64xf32>
    %cst_84 = arith.constant 0.000000e+00 : f32
    %132 = vector.broadcast %cst_84 : f32 to vector<128x64xf32>
    %133 = arith.maximumf %131, %132 : vector<128x64xf32>
    %134 = arith.truncf %124 : vector<128x64xf32> to vector<128x64xbf16>
    %cst_85 = arith.constant dense<0.000000e+00> : vector<128x64xf32>
    %135 = tpu.matmul %126, %134, %cst_85 {dimension_numbers = #tpu.dot_dimension_numbers<[1], [0], [0], [1], [0, 0, 1, 1], [], []>} : vector<128x128xbf16>, vector<128x64xbf16>, vector<128x64xf32> -> vector<128x64xf32>
    %c0_86 = arith.constant 0 : index
    %c8_87 = arith.constant 8 : index
    %136 = vector.load %arg6[%c0_86, %c8_87] : memref<512x16xf32, #tpu.memory_space<vmem>>, vector<128x1xf32>
    %137 = vector.broadcast %136 : vector<128x1xf32> to vector<128x64xf32>
    %138 = arith.addf %135, %137 : vector<128x64xf32>
    %cst_88 = arith.constant 0.000000e+00 : f32
    %139 = vector.broadcast %cst_88 : f32 to vector<128x64xf32>
    %140 = arith.maximumf %138, %139 : vector<128x64xf32>
    %c6_89 = arith.constant 6 : index
    %c0_90 = arith.constant 0 : index
    %c0_91 = arith.constant 0 : index
    %141 = vector.load %arg5[%c6_89, %c0_90, %c0_91] : memref<7x128x128xbf16, #tpu.memory_space<vmem>>, vector<1x128x128xbf16>
    %142 = vector.shape_cast %141 : vector<1x128x128xbf16> to vector<128x128xbf16>
    %143 = arith.truncf %133 : vector<128x64xf32> to vector<128x64xbf16>
    %cst_92 = arith.constant dense<0.000000e+00> : vector<128x64xf32>
    %144 = tpu.matmul %142, %143, %cst_92 {dimension_numbers = #tpu.dot_dimension_numbers<[1], [0], [0], [1], [0, 0, 1, 1], [], []>} : vector<128x128xbf16>, vector<128x64xbf16>, vector<128x64xf32> -> vector<128x64xf32>
    %c0_93 = arith.constant 0 : index
    %c9 = arith.constant 9 : index
    %145 = vector.load %arg6[%c0_93, %c9] : memref<512x16xf32, #tpu.memory_space<vmem>>, vector<128x1xf32>
    %146 = vector.broadcast %145 : vector<128x1xf32> to vector<128x64xf32>
    %147 = arith.addf %144, %146 : vector<128x64xf32>
    %148 = arith.truncf %140 : vector<128x64xf32> to vector<128x64xbf16>
    %cst_94 = arith.constant dense<0.000000e+00> : vector<128x64xf32>
    %149 = tpu.matmul %142, %148, %cst_94 {dimension_numbers = #tpu.dot_dimension_numbers<[1], [0], [0], [1], [0, 0, 1, 1], [], []>} : vector<128x128xbf16>, vector<128x64xbf16>, vector<128x64xf32> -> vector<128x64xf32>
    %c0_95 = arith.constant 0 : index
    %c9_96 = arith.constant 9 : index
    %150 = vector.load %arg6[%c0_95, %c9_96] : memref<512x16xf32, #tpu.memory_space<vmem>>, vector<128x1xf32>
    %151 = vector.broadcast %150 : vector<128x1xf32> to vector<128x64xf32>
    %152 = arith.addf %149, %151 : vector<128x64xf32>
    %153 = vector.extract_strided_slice %147 {offsets = [0, 0], sizes = [1, 64], strides = [1, 1]} : vector<128x64xf32> to vector<1x64xf32>
    %c0_97 = arith.constant 0 : index
    %c0_98 = arith.constant 0 : index
    %154 = vector.load %arg7[%c0_97, %c0_98] : memref<1x128xf32, #tpu.memory_space<vmem>>, vector<1x64xf32>
    tpu.vector_store %arg7[%c0_97, %c0_98], %153 {strides = array<i32>} : memref<1x128xf32, #tpu.memory_space<vmem>>, vector<1x64xf32>,
    %155 = vector.extract_strided_slice %152 {offsets = [0, 0], sizes = [1, 64], strides = [1, 1]} : vector<128x64xf32> to vector<1x64xf32>
    %c0_99 = arith.constant 0 : index
    %c64_100 = arith.constant 64 : index
    %156 = vector.load %arg7[%c0_99, %c64_100] : memref<1x128xf32, #tpu.memory_space<vmem>>, vector<1x64xf32>
    tpu.vector_store %arg7[%c0_99, %c64_100], %155 {strides = array<i32>} : memref<1x128xf32, #tpu.memory_space<vmem>>, vector<1x64xf32>,
    return
  }
  func.func @transform_0(%arg0: i32) -> (i32, i32) {
    %c0_i32 = arith.constant 0 : i32
    %c0_i32_0 = arith.constant 0 : i32
    return %c0_i32, %arg0 : i32, i32
  }
  func.func @transform_1(%arg0: i32) -> (i32, i32) {
    %c0_i32 = arith.constant 0 : i32
    %c0_i32_0 = arith.constant 0 : i32
    %c0_i32_1 = arith.constant 0 : i32
    return %c0_i32, %c0_i32_0 : i32, i32
  }
  func.func @transform_2(%arg0: i32) -> (i32, i32) {
    %c0_i32 = arith.constant 0 : i32
    %c0_i32_0 = arith.constant 0 : i32
    %c0_i32_1 = arith.constant 0 : i32
    return %c0_i32, %c0_i32_0 : i32, i32
  }
  func.func @transform_3(%arg0: i32) -> (i32, i32) {
    %c0_i32 = arith.constant 0 : i32
    %c0_i32_0 = arith.constant 0 : i32
    %c0_i32_1 = arith.constant 0 : i32
    return %c0_i32, %c0_i32_0 : i32, i32
  }
  func.func @transform_4(%arg0: i32) -> (i32, i32, i32) {
    %c0_i32 = arith.constant 0 : i32
    %c0_i32_0 = arith.constant 0 : i32
    %c0_i32_1 = arith.constant 0 : i32
    %c0_i32_2 = arith.constant 0 : i32
    return %c0_i32, %c0_i32_0, %c0_i32_1 : i32, i32, i32
  }
  func.func @transform_5(%arg0: i32) -> (i32, i32) {
    %c0_i32 = arith.constant 0 : i32
    %c0_i32_0 = arith.constant 0 : i32
    %c0_i32_1 = arith.constant 0 : i32
    return %c0_i32, %c0_i32_0 : i32, i32
  }
  func.func @transform_6(%arg0: i32) -> (i32, i32) {
    %c0_i32 = arith.constant 0 : i32
    %c0_i32_0 = arith.constant 0 : i32
    return %arg0, %c0_i32 : i32, i32
  }
}

</mosaic_0001>

<bundles_post_ra>
// kernel: player_rating_forward.1
= control target key start
LH: loop header
LB: loop body
LE: loop exit
PB: predicated region body
PF: predicated region fallthrough
CT: control target
= control target key end

     0   :  { %11 = vsyncpa [#allocation3], 0  ;;  %s7786_s21 = smov [#allocation2]   ;;  %s11101_s0 = inlined_call_operand.vmem [shape: bf16[32,2], index: 0, kind: input, shape index: {}]   ;;  %s11102_s1 = inlined_call_operand.vmem [shape: bf16[512,32], index: 1, kind: input, shape index: {}]   ;;  %s11103_s2 = inlined_call_operand.vmem [shape: bf16[256,512], index: 2, kind: input, shape index: {}]   ;;  %s11104_s3 = inlined_call_operand.vmem [shape: bf16[128,256], index: 3, kind: input, shape index: {}]   ;;  %s11105_s4 = inlined_call_operand.hbm [shape: bf16[7,128,128], index: 4, kind: input, shape index: {}]   ;;  %s11106_s5 = inlined_call_operand.vmem [shape: f32[512,16], index: 5, kind: input, shape index: {}]   ;;  %s11107_s6 = inlined_call_operand.vmem [shape: f32[1,128], index: 6, kind: output, shape index: {}]  }
   0x1   :  { %s25_s22 = sshll.u32 %s7786_s21, 4  ;;  %s26_s22 = int_to_ptr.vmem [resolvable:$true] %s25_s22 }
   0x2   :  { %s7772_s23 = scalar_lea.vmem %s26_s22, 7168  ;;  %p7777_p1 = scmp.lt.s32.totalorder %s26_s22, %s26_s22 }
   0x3   :  { %p7773_p0 = scmp.ne.s32.totalorder %s26_s22, %s7772_s23  ;;  %p7778_p2 = scmp.lt.s32.totalorder %s7772_s23, %s7772_s23 }
   0x5   :  { %p7779_p3 = por %p7778_p2, %p7777_p1 }
   0x7   :  { %p7780_p4 = pnand %p7779_p3, %p7773_p0 }
   0x9   :  { %7783 = shalt.err (!%p7780_p4)
}
   0xa   :  { %s7787_s24 = smov 64   ;;  %s7788_s25 = smov 4  }
   0xb   :  { %31 = dma.hbm_to_vmem [thread:$0]  %s11105_s4, 7168, %s26_s22, [#allocation3], %s7787_s24, %s7787_s24, %s7788_s25  }
   0xc   :  { %7784 = dma.done.wait [#allocation3], 7168  }
   0xd   :  { %7785 = vsyncadd [#allocation3], 4294960128  ;;  %v7789_v0 = vmov 0   ;;  %v136_v1 = vld [vmem:[%s11106_s5 + $0xf0] sm:$0xff]  ;;  %v7520_v2 = vld [vmem:[%s11101_s0 + $0x8] sm:$0xff]   ;;  %vm662_vm0 = vcmask 261120  }
   0xe   :  { %7500 = vset.pattern.permute.xlu1 %v7789_v0  ;;  %7501 = vset.pattern.permute.xlu0 %v7789_v0  ;;  %v137_v3 = vld [vmem:[%s11106_s5 + $0xf8] sm:$0xff]  ;;  %v7521_v4 = vld [vmem:[%s11101_s0] sm:$0xff]   ;;  %v7864_v7 = vld [vmem:[%s11102_s1 + $0x8] sm:$0xff]   ;;  %vm5788_vm1 = vcmask 516096   ;;  %vm5794_vm2 = vcmask 1040896  }
   0xf   :  { %322 = vperm.xlu1 %7500, %v136_v1   ;;  %1114 = vrot.lane.b32.xlu0 %v7520_v2, %s7787_s24  ;;  %v7522_v5 = vld [vmem:[%s11102_s1] sm:$0xff]   ;;  %v121_v6 = vld [vmem:[%s11106_s5 + $0x78] sm:$0xff]  ;;  %v120_v8 = vld [vmem:[%s11106_s5 + $0x70] sm:$0xff] }
  0x10   :  { %6903 = vmatprep.subr.bf16.mxu0 %v7520_v2  ;;  %6907 = vmatprep.mubr.msk.bf16.mxu0 %vm662_vm0, %v7522_v5  ;;  %v7872_v9 = vld [vmem:[%s11102_s1 + $0x10] sm:$0xff]   ;;  %v169_v11 = vld [vmem:[%s11106_s5 + $0x1f8] sm:$0xff]  ;;  %v7898_v15 = vld [vmem:[%s11102_s1 + $0x20] sm:$0xff]  }
  0x11   :  { %6904 = vmatpush3.bf16.msra.mxu0 %v7520_v2  ;;  %6975 = vmatprep.mubr.msk.bf16.mxu1 %vm662_vm0, %v7522_v5  ;;  %v168_v10 = vld [vmem:[%s11106_s5 + $0x1f0] sm:$0xff]  ;;  %v153_v13 = vld [vmem:[%s11106_s5 + $0x178] sm:$0xff]  ;;  %v134_v16 = vld [vmem:[%s11106_s5 + $0xe0] sm:$0xff] }
  0x12   :  { %6905 = vmatprep.subr.bf16.mxu0 %v7521_v4  ;;  %v152_v12 = vld [vmem:[%s11106_s5 + $0x170] sm:$0xff]  ;;  %v7893_v14 = vld [vmem:[%s11102_s1 + $0x18] sm:$0xff]   ;;  %v135_v17 = vld [vmem:[%s11106_s5 + $0xe8] sm:$0xff] }
  0x13   :  { %327 = vperm.xlu1 %7500, %v137_v3   ;;  %1112 = vrot.lane.b32.xlu0 %v7521_v4, %s7787_s24  ;;  %v118_v18 = vld [vmem:[%s11106_s5 + $0x60] sm:$0xff]  ;;  %v119_v19 = vld [vmem:[%s11106_s5 + $0x68] sm:$0xff]  ;;  %v7924_v21 = vld [vmem:[%s11102_s1 + $0x30] sm:$0xff]  }
  0x14   :  { %v7919_v20 = vld [vmem:[%s11102_s1 + $0x28] sm:$0xff]   ;;  %v166_v22 = vld [vmem:[%s11106_s5 + $0x1e0] sm:$0xff]  ;;  %v7942_v25 = vld [vmem:[%s11102_s1 + $0x38] sm:$0xff]  }
  0x15   :  { %6906 = vmatpush3.bf16.msra.mxu0 %v7521_v4  ;;  %v167_v23 = vld [vmem:[%s11106_s5 + $0x1e8] sm:$0xff]  ;;  %v150_v24 = vld [vmem:[%s11106_s5 + $0x160] sm:$0xff]  ;;  %v132_v28 = vld [vmem:[%s11106_s5 + $0xd0] sm:$0xff] }
  0x16   :  { %v151_v26 = vld [vmem:[%s11106_s5 + $0x168] sm:$0xff]  ;;  %v7950_v27 = vld [vmem:[%s11102_s1 + $0x40] sm:$0xff]   ;;  %v133_v29 = vld [vmem:[%s11106_s5 + $0xd8] sm:$0xff] }
  0x17   :  { %247 = vperm.xlu1 %7500, %v121_v6   ;;  %242 = vperm.xlu0 %7501, %v120_v8   ;;  %v116_v30 = vld [vmem:[%s11106_s5 + $0x50] sm:$0xff]  ;;  %v7968_v31 = vld [vmem:[%s11102_s1 + $0x48] sm:$0xff]   ;;  %v117_v32 = vld [vmem:[%s11106_s5 + $0x58] sm:$0xff] }
  0x18   :  { %6908 = vmatmul.mubr.msk.bf16.vlgmr.msra.gmra.mxu0 %vm662_vm0, %v7864_v7  ;;  %v7976_v33 = vld [vmem:[%s11102_s1 + $0x50] sm:$0xff]   ;;  %v165_v35 = vld [vmem:[%s11106_s5 + $0x1d8] sm:$0xff]  ;;  %v8002_v39 = vld [vmem:[%s11102_s1 + $0x60] sm:$0xff]  }
  0x19   :  { %6911 = vmatprep.mubr.msk.bf16.mxu0 %vm662_vm0, %v7872_v9  ;;  %v164_v34 = vld [vmem:[%s11106_s5 + $0x1d0] sm:$0xff]  ;;  %v7994_v37 = vld [vmem:[%s11102_s1 + $0x58] sm:$0xff]   ;;  %v130_v40 = vld [vmem:[%s11106_s5 + $0xc0] sm:$0xff] }
  0x1a   :  { %v148_v36 = vld [vmem:[%s11106_s5 + $0x150] sm:$0xff]  ;;  %v149_v38 = vld [vmem:[%s11106_s5 + $0x158] sm:$0xff]  ;;  %v131_v41 = vld [vmem:[%s11106_s5 + $0xc8] sm:$0xff] }
  0x1b   :  { %482 = vperm.xlu1 %7500, %v168_v10   ;;  %487 = vperm.xlu0 %7501, %v169_v11   ;;  %v114_v42 = vld [vmem:[%s11106_s5 + $0x40] sm:$0xff]  ;;  %v115_v43 = vld [vmem:[%s11106_s5 + $0x48] sm:$0xff]  ;;  %v8028_v45 = vld [vmem:[%s11102_s1 + $0x70] sm:$0xff]  }
  0x1c   :  { %v8023_v44 = vld [vmem:[%s11102_s1 + $0x68] sm:$0xff]   ;;  %v162_v46 = vld [vmem:[%s11106_s5 + $0x1c0] sm:$0xff]  ;;  %v8046_v49 = vld [vmem:[%s11102_s1 + $0x78] sm:$0xff]  }
  0x1d   :  { %v163_v47 = vld [vmem:[%s11106_s5 + $0x1c8] sm:$0xff]  ;;  %v146_v48 = vld [vmem:[%s11106_s5 + $0x140] sm:$0xff]  ;;  %v128_v52 = vld [vmem:[%s11106_s5 + $0xb0] sm:$0xff] }
  0x1e   :  { %v147_v50 = vld [vmem:[%s11106_s5 + $0x148] sm:$0xff]  ;;  %v8054_v51 = vld [vmem:[%s11102_s1 + $0x80] sm:$0xff]   ;;  %v129_v53 = vld [vmem:[%s11106_s5 + $0xb8] sm:$0xff] }
  0x1f   :  { %402 = vperm.xlu1 %7500, %v152_v12   ;;  %407 = vperm.xlu0 %7501, %v153_v13   ;;  %v112_v54 = vld [vmem:[%s11106_s5 + $0x30] sm:$0xff]  ;;  %v8072_v55 = vld [vmem:[%s11102_s1 + $0x88] sm:$0xff]   ;;  %v113_v56 = vld [vmem:[%s11106_s5 + $0x38] sm:$0xff] }
  0x20   :  { %6912 = vmatmul.mubr.msk.bf16.gmra.mxu0 %vm662_vm0, %v7893_v14  ;;  %v8080_v57 = vld [vmem:[%s11102_s1 + $0x90] sm:$0xff]   ;;  %v161_v59 = vld [vmem:[%s11106_s5 + $0x1b8] sm:$0xff]  ;;  %v8106_v63 = vld [vmem:[%s11102_s1 + $0xa0] sm:$0xff]  }
  0x21   :  { %6915 = vmatprep.mubr.msk.bf16.mxu0 %vm662_vm0, %v7898_v15  ;;  %v160_v58 = vld [vmem:[%s11106_s5 + $0x1b0] sm:$0xff]  ;;  %v8098_v61 = vld [vmem:[%s11102_s1 + $0x98] sm:$0xff]   ;;  %v126_v0 = vld [vmem:[%s11106_s5 + $0xa0] sm:$0xff] }
  0x22   :  { %v144_v60 = vld [vmem:[%s11106_s5 + $0x130] sm:$0xff]  ;;  %v145_v62 = vld [vmem:[%s11106_s5 + $0x138] sm:$0xff]  ;;  %v127_v1 = vld [vmem:[%s11106_s5 + $0xa8] sm:$0xff] }
  0x23   :  { %312 = vperm.xlu1 %7500, %v134_v16   ;;  %317 = vperm.xlu0 %7501, %v135_v17   ;;  %v110_v2 = vld [vmem:[%s11106_s5 + $0x20] sm:$0xff]  ;;  %v8124_v3 = vld [vmem:[%s11102_s1 + $0xa8] sm:$0xff]   ;;  %v8132_v5 = vld [vmem:[%s11102_s1 + $0xb0] sm:$0xff]  }
  0x24   :  { %v111_v4 = vld [vmem:[%s11106_s5 + $0x28] sm:$0xff]  ;;  %v158_v6 = vld [vmem:[%s11106_s5 + $0x1a0] sm:$0xff]  ;;  %v8150_v11 = vld [vmem:[%s11102_s1 + $0xb8] sm:$0xff]  }
  0x25   :  { %v159_v8 = vld [vmem:[%s11106_s5 + $0x1a8] sm:$0xff]  ;;  %v142_v10 = vld [vmem:[%s11106_s5 + $0x120] sm:$0xff]  ;;  %v124_v16 = vld [vmem:[%s11106_s5 + $0x90] sm:$0xff] }
  0x26   :  { %v143_v12 = vld [vmem:[%s11106_s5 + $0x128] sm:$0xff]  ;;  %v8158_v13 = vld [vmem:[%s11102_s1 + $0xc0] sm:$0xff]   ;;  %v125_v17 = vld [vmem:[%s11106_s5 + $0x98] sm:$0xff] }
  0x27   :  { %232 = vperm.xlu1 %7500, %v118_v18   ;;  %237 = vperm.xlu0 %7501, %v119_v19   ;;  %v108_v18 = vld [vmem:[%s11106_s5 + $0x10] sm:$0xff]  ;;  %v8176_v19 = vld [vmem:[%s11102_s1 + $0xc8] sm:$0xff]  }
  0x28   :  { %6916 = vmatmul.mubr.msk.bf16.gmra.mxu0 %vm662_vm0, %v7919_v20 }
  0x29   :  { %6919 = vmatprep.mubr.msk.bf16.mxu0 %vm662_vm0, %v7924_v21 }
  0x2b   :  { %472 = vperm.xlu1 %7500, %v166_v22   ;;  %477 = vperm.xlu0 %7501, %v167_v23   ;;  %v109_v22 = vld [vmem:[%s11106_s5 + $0x18] sm:$0xff]  ;;  %v8184_v23 = vld [vmem:[%s11102_s1 + $0xd0] sm:$0xff]  }
  0x2f   :  { %392 = vperm.xlu1 %7500, %v150_v24   ;;  %397 = vperm.xlu0 %7501, %v151_v26   ;;  %v156_v24 = vld [vmem:[%s11106_s5 + $0x190] sm:$0xff]  ;;  %v157_v26 = vld [vmem:[%s11106_s5 + $0x198] sm:$0xff] }
  0x30   :  { %6920 = vmatmul.mubr.msk.bf16.gmra.mxu0 %vm662_vm0, %v7942_v25 }
  0x31   :  { %6923 = vmatprep.mubr.msk.bf16.mxu0 %vm662_vm0, %v7950_v27 }
  0x33   :  { %302 = vperm.xlu1 %7500, %v132_v28   ;;  %307 = vperm.xlu0 %7501, %v133_v29   ;;  %v140_v28 = vld [vmem:[%s11106_s5 + $0x110] sm:$0xff]  ;;  %v8202_v29 = vld [vmem:[%s11102_s1 + $0xd8] sm:$0xff]  }
  0x37   :  { %222 = vperm.xlu1 %7500, %v116_v30   ;;  %227 = vperm.xlu0 %7501, %v117_v32   ;;  %v141_v30 = vld [vmem:[%s11106_s5 + $0x118] sm:$0xff]  ;;  %v8210_v32 = vld [vmem:[%s11102_s1 + $0xe0] sm:$0xff]  }
  0x38   :  { %6924 = vmatmul.mubr.msk.bf16.gmra.mxu0 %vm662_vm0, %v7968_v31 }
  0x39   :  { %6927 = vmatprep.mubr.msk.bf16.mxu0 %vm662_vm0, %v7976_v33 }
  0x3b   :  { %462 = vperm.xlu1 %7500, %v164_v34   ;;  %467 = vperm.xlu0 %7501, %v165_v35   ;;  %v122_v34 = vld [vmem:[%s11106_s5 + $0x80] sm:$0xff]  ;;  %v123_v35 = vld [vmem:[%s11106_s5 + $0x88] sm:$0xff] }
  0x3f   :  { %382 = vperm.xlu1 %7500, %v148_v36   ;;  %387 = vperm.xlu0 %7501, %v149_v38   ;;  %v106_v36 = vld [vmem:[%s11106_s5] sm:$0xff] }
  0x40   :  { %6928 = vmatmul.mubr.msk.bf16.gmra.mxu0 %vm662_vm0, %v7994_v37 }
  0x41   :  { %6931 = vmatprep.mubr.msk.bf16.mxu0 %vm662_vm0, %v8002_v39 }
  0x43   :  { %292 = vperm.xlu1 %7500, %v130_v40   ;;  %297 = vperm.xlu0 %7501, %v131_v41   ;;  %v8228_v40 = vld [vmem:[%s11102_s1 + $0xe8] sm:$0xff]  }
  0x44   :  { %v107_v41 = vld [vmem:[%s11106_s5 + $0x8] sm:$0xff] }
  0x47   :  { %212 = vperm.xlu1 %7500, %v114_v42   ;;  %217 = vperm.xlu0 %7501, %v115_v43   ;;  %v8236_v42 = vld [vmem:[%s11102_s1 + $0xf0] sm:$0xff]  }
  0x48   :  { %6932 = vmatmul.mubr.msk.bf16.gmra.mxu0 %vm662_vm0, %v8023_v44 }
  0x49   :  { %6935 = vmatprep.mubr.msk.bf16.mxu0 %vm662_vm0, %v8028_v45 }
  0x4b   :  { %452 = vperm.xlu1 %7500, %v162_v46   ;;  %457 = vperm.xlu0 %7501, %v163_v47   ;;  %v154_v46 = vld [vmem:[%s11106_s5 + $0x180] sm:$0xff] }
  0x4f   :  { %372 = vperm.xlu1 %7500, %v146_v48   ;;  %377 = vperm.xlu0 %7501, %v147_v50   ;;  %v155_v48 = vld [vmem:[%s11106_s5 + $0x188] sm:$0xff]  ;;  %v138_v50 = vld [vmem:[%s11106_s5 + $0x100] sm:$0xff] }
  0x50   :  { %6936 = vmatmul.mubr.msk.bf16.gmra.mxu0 %vm662_vm0, %v8046_v49 }
  0x51   :  { %6939 = vmatprep.mubr.msk.bf16.mxu0 %vm662_vm0, %v8054_v51 }
  0x53   :  { %282 = vperm.xlu1 %7500, %v128_v52   ;;  %287 = vperm.xlu0 %7501, %v129_v53   ;;  %v8258_v52 = vld [vmem:[%s11102_s1 + $0xf8] sm:$0xff]  }
  0x57   :  { %202 = vperm.xlu1 %7500, %v112_v54   ;;  %207 = vperm.xlu0 %7501, %v113_v56   ;;  %v139_v54 = vld [vmem:[%s11106_s5 + $0x108] sm:$0xff] }
  0x58   :  { %6940 = vmatmul.mubr.msk.bf16.gmra.mxu0 %vm662_vm0, %v8072_v55 }
  0x59   :  { %6943 = vmatprep.mubr.msk.bf16.mxu0 %vm662_vm0, %v8080_v57 }
  0x5b   :  { %442 = vperm.xlu1 %7500, %v160_v58   ;;  %447 = vperm.xlu0 %7501, %v161_v59  }
  0x5f   :  { %362 = vperm.xlu1 %7500, %v144_v60   ;;  %367 = vperm.xlu0 %7501, %v145_v62  }
  0x60   :  { %6944 = vmatmul.mubr.msk.bf16.gmra.mxu0 %vm662_vm0, %v8098_v61 }
  0x61   :  { %6947 = vmatprep.mubr.msk.bf16.mxu0 %vm662_vm0, %v8106_v63 }
  0x63   :  { %272 = vperm.xlu1 %7500, %v126_v0   ;;  %277 = vperm.xlu0 %7501, %v127_v1  }
  0x67   :  { %192 = vperm.xlu1 %7500, %v110_v2   ;;  %197 = vperm.xlu0 %7501, %v111_v4  }
  0x68   :  { %6948 = vmatmul.mubr.msk.bf16.gmra.mxu0 %vm662_vm0, %v8124_v3 }
  0x69   :  { %6951 = vmatprep.mubr.msk.bf16.mxu0 %vm662_vm0, %v8132_v5 }
  0x6b   :  { %432 = vperm.xlu1 %7500, %v158_v6   ;;  %437 = vperm.xlu0 %7501, %v159_v8  }
  0x6f   :  { %352 = vperm.xlu1 %7500, %v142_v10   ;;  %357 = vperm.xlu0 %7501, %v143_v12  }
  0x70   :  { %6952 = vmatmul.mubr.msk.bf16.gmra.mxu0 %vm662_vm0, %v8150_v11 }
  0x71   :  { %6955 = vmatprep.mubr.msk.bf16.mxu0 %vm662_vm0, %v8158_v13 }
  0x73   :  { %262 = vperm.xlu1 %7500, %v124_v16   ;;  %267 = vperm.xlu0 %7501, %v125_v17  }
  0x77   :  { %182 = vperm.xlu1 %7500, %v108_v18   ;;  %187 = vperm.xlu0 %7501, %v109_v22  }
  0x78   :  { %6956 = vmatmul.mubr.msk.bf16.gmra.mxu0 %vm662_vm0, %v8176_v19 }
  0x79   :  { %6959 = vmatprep.mubr.msk.bf16.mxu0 %vm662_vm0, %v8184_v23 }
  0x7b   :  { %422 = vperm.xlu1 %7500, %v156_v24   ;;  %427 = vperm.xlu0 %7501, %v157_v26  }
  0x7f   :  { %342 = vperm.xlu1 %7500, %v140_v28   ;;  %347 = vperm.xlu0 %7501, %v141_v30  }
  0x80   :  { %6960 = vmatmul.mubr.msk.bf16.gmra.mxu0 %vm662_vm0, %v8202_v29 }
  0x81   :  { %6963 = vmatprep.mubr.msk.bf16.mxu0 %vm662_vm0, %v8210_v32  ;;  %v1115_v38 = vpop.permute.xlu0 %1114 }
  0x82   :  { %6971 = vmatprep.subr.bf16.mxu1 %v1115_v38 }
  0x83   :  { %252 = vperm.xlu1 %7500, %v122_v34   ;;  %6972 = vmatpush3.bf16.msra.mxu1 %v1115_v38 }
  0x84   :  { %257 = vperm.xlu0 %7501, %v123_v35  }
  0x85   :  { %v1113_v43 = vpop.permute.xlu0 %1112 }
  0x86   :  { %6973 = vmatprep.subr.bf16.mxu1 %v1113_v43 }
  0x87   :  { %172 = vperm.xlu1 %7500, %v106_v36   ;;  %6974 = vmatpush3.bf16.msra.mxu1 %v1113_v43 }
  0x88   :  { %177 = vperm.xlu0 %7501, %v107_v41   ;;  %6964 = vmatmul.mubr.msk.bf16.gmra.mxu0 %vm662_vm0, %v8228_v40 }
  0x89   :  { %6967 = vmatprep.mubr.msk.bf16.mxu0 %vm662_vm0, %v8236_v42 }
  0x8a   :  { %v8243_v47 = vpop.permute.xlu1 %322  ;;  %6976 = vmatmul.mubr.msk.bf16.vlgmr.msra.gmra.mxu1 %vm662_vm0, %v7864_v7 }
  0x8b   :  { %11279 = vst [vmem:[#allocation5_spill] sm:$0xff] %v8243_v47  ;;  %412 = vperm.xlu1 %7500, %v154_v46   ;;  %6979 = vmatprep.mubr.msk.bf16.mxu1 %vm662_vm0, %v7872_v9 }
  0x8c   :  { %417 = vperm.xlu0 %7501, %v155_v48  }
  0x8e   :  { %v8260_v53 = vpop.permute.xlu1 %327 }
  0x8f   :  { %332 = vperm.xlu1 %7500, %v138_v50  }
  0x90   :  { %337 = vperm.xlu0 %7501, %v139_v54   ;;  %6968 = vmatmul.mubr.msk.bf16.gmra.mxu0 %vm662_vm0, %v8258_v52 }
  0x92   :  { %v8269_v7 = vpop.permute.xlu1 %247  ;;  %v8271_v56 = vpop.permute.xlu0 %242  ;;  %6980 = vmatmul.mubr.msk.bf16.gmra.mxu1 %vm662_vm0, %v7893_v14 }
  0x93   :  { %11280 = vst [vmem:[#allocation6_spill] sm:$0xff] %v8269_v7  ;;  %11281 = vst [vmem:[#allocation7_spill] sm:$0xff] %v8271_v56  ;;  %6983 = vmatprep.mubr.msk.bf16.mxu1 %vm662_vm0, %v7898_v15 }
  0x96   :  { %v8275_v58 = vpop.permute.xlu1 %482  ;;  %v8279_v59 = vpop.permute.xlu0 %487 }
  0x97   :  { %11282 = vst [vmem:[#allocation8_spill] sm:$0xff] %v8275_v58  ;;  %11283 = vst [vmem:[#allocation9_spill] sm:$0xff] %v8279_v59  ;;  %v1580_v59 = vld [vmem:[%s11106_s5 + $0x68] sm:$0xff] }
  0x9a   :  { %v8281_v9 = vpop.permute.xlu1 %402  ;;  %v8283_v60 = vpop.permute.xlu0 %407  ;;  %6984 = vmatmul.mubr.msk.bf16.gmra.mxu1 %vm662_vm0, %v7919_v20 }
  0x9b   :  { %11284 = vst [vmem:[#allocation10_spill] sm:$0xff] %v8281_v9  ;;  %11285 = vst [vmem:[#allocation11_spill] sm:$0xff] %v8283_v60  ;;  %6987 = vmatprep.mubr.msk.bf16.mxu1 %vm662_vm0, %v7924_v21  ;;  %v1594_v60 = vld [vmem:[%s11106_s5 + $0xd8] sm:$0xff] }
  0x9e   :  { %v8287_v62 = vpop.permute.xlu1 %312  ;;  %v8291_v14 = vpop.permute.xlu0 %317 }
  0x9f   :  { %11286 = vst [vmem:[#allocation12_spill] sm:$0xff] %v8287_v62  ;;  %11287 = vst [vmem:[#allocation13_spill] sm:$0xff] %v8291_v14 }
  0xa2   :  { %v8293_v0 = vpop.permute.xlu1 %232  ;;  %v8295_v1 = vpop.permute.xlu0 %237  ;;  %6988 = vmatmul.mubr.msk.bf16.gmra.mxu1 %vm662_vm0, %v7942_v25 }
  0xa3   :  { %11288 = vst [vmem:[#allocation14_spill] sm:$0xff] %v8293_v0  ;;  %6991 = vmatprep.mubr.msk.bf16.mxu1 %vm662_vm0, %v7950_v27 }
  0xa6   :  { %v8299_v15 = vpop.permute.xlu1 %472  ;;  %v8303_v20 = vpop.permute.xlu0 %477 }
  0xa7   :  { %11289 = vst [vmem:[#allocation15_spill] sm:$0xff] %v8299_v15  ;;  %11290 = vst [vmem:[#allocation16_spill] sm:$0xff] %v8303_v20 }
  0xaa   :  { %v8305_v2 = vpop.permute.xlu1 %392  ;;  %v8307_v4 = vpop.permute.xlu0 %397  ;;  %6992 = vmatmul.mubr.msk.bf16.gmra.mxu1 %vm662_vm0, %v7968_v31 }
  0xab   :  { %11291 = vst [vmem:[#allocation17_spill] sm:$0xff] %v8305_v2  ;;  %11292 = vst [vmem:[#allocation18_spill] sm:$0xff] %v8307_v4  ;;  %6995 = vmatprep.mubr.msk.bf16.mxu1 %vm662_vm0, %v7976_v33 }
  0xae   :  { %v8311_v21 = vpop.permute.xlu1 %302  ;;  %v8315_v25 = vpop.permute.xlu0 %307 }
  0xaf   :  { %11293 = vst [vmem:[#allocation19_spill] sm:$0xff] %v8315_v25 }
  0xb2   :  { %v8317_v6 = vpop.permute.xlu1 %222  ;;  %v8319_v8 = vpop.permute.xlu0 %227  ;;  %6996 = vmatmul.mubr.msk.bf16.gmra.mxu1 %vm662_vm0, %v7994_v37 }
  0xb3   :  { %6999 = vmatprep.mubr.msk.bf16.mxu1 %vm662_vm0, %v8002_v39 }
  0xb6   :  { %v8323_v27 = vpop.permute.xlu1 %462  ;;  %v8327_v31 = vpop.permute.xlu0 %467 }
  0xb7   :  { %11294 = vst [vmem:[#allocation20_spill] sm:$0xff] %v8323_v27  ;;  %11295 = vst [vmem:[#allocation21_spill] sm:$0xff] %v8327_v31  ;;  %v1598_v31 = vld [vmem:[%s11106_s5 + $0xf8] sm:$0xff] }
  0xba   :  { %v8329_v10 = vpop.permute.xlu1 %382  ;;  %v8331_v12 = vpop.permute.xlu0 %387  ;;  %7000 = vmatmul.mubr.msk.bf16.gmra.mxu1 %vm662_vm0, %v8023_v44 }
  0xbb   :  { %11296 = vst [vmem:[#allocation22_spill] sm:$0xff] %v8329_v10  ;;  %11297 = vst [vmem:[#allocation23_spill] sm:$0xff] %v8331_v12  ;;  %7003 = vmatprep.mubr.msk.bf16.mxu1 %vm662_vm0, %v8028_v45 }
  0xbe   :  { %v8335_v33 = vpop.permute.xlu1 %292  ;;  %v8339_v37 = vpop.permute.xlu0 %297 }
  0xc2   :  { %v8341_v16 = vpop.permute.xlu1 %212  ;;  %v8343_v17 = vpop.permute.xlu0 %217  ;;  %7004 = vmatmul.mubr.msk.bf16.gmra.mxu1 %vm662_vm0, %v8046_v49 }
  0xc3   :  { %7007 = vmatprep.mubr.msk.bf16.mxu1 %vm662_vm0, %v8054_v51 }
  0xc6   :  { %v8347_v39 = vpop.permute.xlu1 %452  ;;  %v8351_v44 = vpop.permute.xlu0 %457 }
  0xc7   :  { %11298 = vst [vmem:[#allocation24_spill] sm:$0xff] %v8347_v39  ;;  %11299 = vst [vmem:[#allocation25_spill] sm:$0xff] %v8351_v44 }
  0xca   :  { %v8353_v18 = vpop.permute.xlu1 %372  ;;  %v8355_v22 = vpop.permute.xlu0 %377  ;;  %7008 = vmatmul.mubr.msk.bf16.gmra.mxu1 %vm662_vm0, %v8072_v55 }
  0xcb   :  { %11300 = vst [vmem:[#allocation26_spill] sm:$0xff] %v8353_v18  ;;  %11301 = vst [vmem:[#allocation27_spill] sm:$0xff] %v8355_v22  ;;  %7011 = vmatprep.mubr.msk.bf16.mxu1 %vm662_vm0, %v8080_v57  ;;  %v7556_v57 = vld [vmem:[%s11103_s2 + $0x4] ss:$16 sps:$4 sm:$0xff]  }
  0xcc   :  { %2111 = vmatprep.mubr.bf16.mxu0 %v7556_v57 }
  0xce   :  { %v8359_v45 = vpop.permute.xlu1 %282  ;;  %v8363_v49 = vpop.permute.xlu0 %287 }
  0xcf   :  { %11302 = vst [vmem:[#allocation28_spill] sm:$0xff] %v8359_v45 }
  0xd2   :  { %v8365_v24 = vpop.permute.xlu1 %202  ;;  %v8367_v26 = vpop.permute.xlu0 %207  ;;  %7012 = vmatmul.mubr.msk.bf16.gmra.mxu1 %vm662_vm0, %v8098_v61 }
  0xd3   :  { %11303 = vst [vmem:[#allocation29_spill] sm:$0xff] %v8365_v24  ;;  %11304 = vst [vmem:[#allocation30_spill] sm:$0xff] %v8367_v26  ;;  %7015 = vmatprep.mubr.msk.bf16.mxu1 %vm662_vm0, %v8106_v63 }
  0xd6   :  { %v8371_v51 = vpop.permute.xlu1 %442  ;;  %v8375_v55 = vpop.permute.xlu0 %447 }
  0xd7   :  { %11305 = vst [vmem:[#allocation31_spill] sm:$0xff] %v8371_v51  ;;  %11306 = vst [vmem:[#allocation32_spill] sm:$0xff] %v8375_v55 }
  0xd8   :  { %v6909_v28 = vpop.f32.mrf.mxu0 }
  0xda   :  { %v8380_v30 = vpop.permute.xlu1 %362  ;;  %v8382_v34 = vpop.f32.mrf.mxu0  ;;  %7016 = vmatmul.mubr.msk.bf16.gmra.mxu1 %vm662_vm0, %v8124_v3 }
  0xdb   :  { %11307 = vst [vmem:[#allocation33_spill] sm:$0xff] %v8380_v30  ;;  %v8384_v35 = vpop.permute.xlu0 %367  ;;  %7019 = vmatprep.mubr.msk.bf16.mxu1 %vm662_vm0, %v8132_v5 }
  0xdc   :  { %11308 = vst [vmem:[#allocation34_spill] sm:$0xff] %v8384_v35  ;;  %v6910_v61 = vpop.f32.mrf.mxu0 }
  0xde   :  { %v8388_v36 = vpop.permute.xlu1 %272  ;;  %v8392_v63 = vpop.f32.mrf.mxu0 }
  0xdf   :  { %11309 = vst [vmem:[#allocation35_spill] sm:$0xff] %v8388_v36  ;;  %v8394_v38 = vpop.permute.xlu0 %277 }
  0xe0   :  { %11310 = vst [vmem:[#allocation36_spill] sm:$0xff] %v8394_v38  ;;  %v6913_v41 = vpop.f32.mrf.mxu0 }
  0xe1   :  { %v818_v48 = vadd.f32 %v6913_v41, %v8365_v24 }
  0xe2   :  { %v8396_v43 = vpop.permute.xlu1 %192  ;;  %v8398_v46 = vpop.f32.mrf.mxu0  ;;  %7020 = vmatmul.mubr.msk.bf16.gmra.mxu1 %vm662_vm0, %v8150_v11 }
  0xe3   :  { %11311 = vst [vmem:[#allocation37_spill] sm:$0xff] %v8396_v43  ;;  %v8401_v50 = vpop.permute.xlu0 %197  ;;  %7023 = vmatprep.mubr.msk.bf16.mxu1 %vm662_vm0, %v8158_v13  ;;  %v1054_v51 = vmax.f32 %v818_v48, 0.0 }
  0xe4   :  { %11312 = vst [vmem:[#allocation38_spill] sm:$0xff] %v8401_v50  ;;  %v6914_v3 = vpop.f32.mrf.mxu0 }
  0xe5   :  { %v821_v54 = vadd.f32 %v6914_v3, %v8367_v26 }
  0xe6   :  { %v8406_v5 = vpop.permute.xlu1 %432  ;;  %v8410_v57 = vpop.f32.mrf.mxu0 }
  0xe7   :  { %11313 = vst [vmem:[#allocation39_spill] sm:$0xff] %v8406_v5  ;;  %v1055_v18 = vmax.f32 %v821_v54, 0.0  ;;  %v8412_v55 = vpop.permute.xlu0 %437 }
  0xe8   :  { %11314 = vst [vmem:[#allocation40_spill] sm:$0xff] %v8412_v55  ;;  %v8414_v41 = vpop.f32.mrf.mxu0 }
  0xe9   :  { %v8416_v22 = vpack.c.bf16 %v1055_v18, %v1054_v51 }
  0xea   :  { %v8418_v39 = vpop.permute.xlu1 %352  ;;  %v8420_v11 = vpop.f32.mrf.mxu0  ;;  %7024 = vmatmul.mubr.msk.bf16.gmra.mxu1 %vm662_vm0, %v8176_v19 }
  0xeb   :  { %11315 = vst [vmem:[#allocation41_spill] sm:$0xff] %v8418_v39  ;;  %v8422_v3 = vpop.permute.xlu0 %357  ;;  %7027 = vmatprep.mubr.msk.bf16.mxu1 %vm662_vm0, %v8184_v23 }
  0xec   :  { %11316 = vst [vmem:[#allocation42_spill] sm:$0xff] %v8422_v3  ;;  %v8426_v13 = vpop.f32.mrf.mxu0 }
  0xee   :  { %v8428_v5 = vpop.permute.xlu1 %262  ;;  %v8432_v48 = vpop.f32.mrf.mxu0 }
  0xef   :  { %11317 = vst [vmem:[#allocation43_spill] sm:$0xff] %v8428_v5  ;;  %v8434_v18 = vpop.permute.xlu0 %267 }
  0xf0   :  { %11318 = vst [vmem:[#allocation44_spill] sm:$0xff] %v8434_v18  ;;  %v6921_v51 = vpop.f32.mrf.mxu0 }
  0xf2   :  { %v8436_v54 = vpop.permute.xlu1 %182  ;;  %v8439_v3 = vpop.f32.mrf.mxu0  ;;  %7028 = vmatmul.mubr.msk.bf16.gmra.mxu1 %vm662_vm0, %v8202_v29 }
  0xf3   :  { %11319 = vst [vmem:[#allocation45_spill] sm:$0xff] %v8436_v54  ;;  %v802_v39 = vadd.f32 %v6909_v28, %v8436_v54  ;;  %v8441_v55 = vpop.permute.xlu0 %187  ;;  %7031 = vmatprep.mubr.msk.bf16.mxu1 %vm662_vm0, %v8210_v32  ;;  %v7790_v32 = vmov 1  }
  0xf4   :  { %11320 = vst [vmem:[#allocation46_spill] sm:$0xff] %v8441_v55  ;;  %v805_v10 = vadd.f32 %v6910_v61, %v8441_v55  ;;  %v6922_v23 = vpop.f32.mrf.mxu0  ;;  %7502 = vset.pattern.permute.xlu1 %v7790_v32  ;;  %7503 = vset.pattern.permute.xlu0 %v7790_v32  ;;  %v1593_v55 = vld [vmem:[%s11106_s5 + $0xd0] sm:$0xff] }
  0xf5   :  { %v1050_v19 = vmax.f32 %v802_v39, 0.0  ;;  %1756 = vperm.xlu0 %7503, %v1598_v31   ;;  %v1579_v31 = vld [vmem:[%s11106_s5 + $0x60] sm:$0xff] }
  0xf6   :  { %v1051_v44 = vmax.f32 %v805_v10, 0.0  ;;  %v844_v27 = vpop.f32.mrf.mxu0  ;;  %v1597_v10 = vld [vmem:[%s11106_s5 + $0xf0] sm:$0xff] }
  0xf7   :  { %1751 = vperm.xlu1 %7502, %v1597_v10   ;;  %v1582_v10 = vld [vmem:[%s11106_s5 + $0x78] sm:$0xff] }
  0xf8   :  { %v8448_v12 = vpack.c.bf16 %v1051_v44, %v1050_v19  ;;  %v8450_v26 = vpop.f32.mrf.mxu0  ;;  %v1581_v19 = vld [vmem:[%s11106_s5 + $0x70] sm:$0xff] }
  0xfa   :  { %11321 = vst [vmem:[#allocation47_spill] sm:$0xff] %v8448_v12  ;;  %v8452_v28 = vpop.f32.mrf.mxu0  ;;  %7032 = vmatmul.mubr.msk.bf16.gmra.mxu1 %vm662_vm0, %v8228_v40  ;;  %v7561_v40 = vld [vmem:[%s11103_s2 + $0xc] ss:$16 sps:$4 sm:$0xff]  }
  0xfb   :  { %7035 = vmatprep.mubr.msk.bf16.mxu1 %vm662_vm0, %v8236_v42  ;;  %1671 = vperm.xlu1 %7502, %v1581_v19   ;;  %v1595_v19 = vld [vmem:[%s11106_s5 + $0xe0] sm:$0xff] }
  0xfc   :  { %v8456_v39 = vpop.f32.mrf.mxu0  ;;  %1741 = vperm.xlu0 %7503, %v1595_v19   ;;  %v8502_v19 = vpop.permute.xlu1 %422 }
  0xfd   :  { %11322 = vst [vmem:[#allocation48_spill] sm:$0xff] %v8502_v19 }
  0xfe   :  { %v8460_v29 = vpop.f32.mrf.mxu0 }
  0xff   :  { %1676 = vperm.xlu1 %7502, %v1582_v10   ;;  %v853_v10 = vadd.f32 %v6922_v23, %v8269_v7 }
 0x100   :  { %v8462_v61 = vpop.f32.mrf.mxu0  ;;  %1661 = vperm.xlu0 %7503, %v1579_v31   ;;  %v8513_v31 = vpop.permute.xlu0 %427 }
 0x101   :  { %11323 = vst [vmem:[#allocation49_spill] sm:$0xff] %v8513_v31 }
 0x102   :  { %v8470_v44 = vpop.f32.mrf.mxu0  ;;  %7036 = vmatmul.mubr.msk.bf16.gmra.mxu1 %vm662_vm0, %v8258_v52 }
 0x103   :  { %2272 = vmatprep.mubr.bf16.mxu1 %v7561_v40  ;;  %v1596_v40 = vld [vmem:[%s11106_s5 + $0xe8] sm:$0xff] }
 0x104   :  { %v8474_v42 = vpop.f32.mrf.mxu0  ;;  %1746 = vperm.xlu1 %7502, %v1596_v40   ;;  %v850_v40 = vadd.f32 %v6921_v51, %v8271_v56  ;;  %1731 = vperm.xlu0 %7503, %v1593_v55   ;;  %v845_v51 = vadd.f32 %v844_v27, %v8295_v1 }
 0x106   :  { %v8479_v2 = vpop.f32.mrf.mxu0  ;;  %v1062_v12 = vmax.f32 %v850_v40, 0.0  ;;  %v8528_v40 = vpop.permute.xlu1 %342 }
 0x108   :  { %v6933_v32 = vpop.f32.mrf.mxu0  ;;  %1666 = vperm.xlu1 %7502, %v1580_v59  }
 0x109   :  { %v898_v27 = vadd.f32 %v6933_v32, %v8311_v21 }
 0x10a   :  { %v889_v52 = vpop.f32.mrf.mxu0 }
 0x10c   :  { %v6934_v20 = vpop.f32.mrf.mxu0  ;;  %1736 = vperm.xlu1 %7502, %v1594_v60   ;;  %v1577_v60 = vld [vmem:[%s11106_s5 + $0x50] sm:$0xff] }
 0x10d   :  { %1651 = vperm.xlu0 %7503, %v1577_v60  }
 0x10e   :  { %v892_v24 = vpop.f32.mrf.mxu0 }
 0x110   :  { %v6937_v4 = vpop.f32.mrf.mxu0 }
 0x111   :  { %v914_v58 = vadd.f32 %v6937_v4, %v8243_v47  ;;  %v1063_v4 = vmax.f32 %v853_v10, 0.0  ;;  %v901_v47 = vadd.f32 %v6934_v20, %v8315_v25  ;;  %v1061_v10 = vmax.f32 %v845_v51, 0.0 }
 0x112   :  { %v905_v15 = vpop.f32.mrf.mxu0 }
 0x113   :  { %v906_v59 = vadd.f32 %v905_v15, %v8287_v62  ;;  %v1078_v7 = vmax.f32 %v914_v58, 0.0  ;;  %v842_v15 = vadd.f32 %v8439_v3, %v8293_v0  ;;  %v1542_v3 = vpack.c.bf16 %v1063_v4, %v1062_v12  ;;  %v1592_v12 = vld [vmem:[%s11106_s5 + $0xc8] sm:$0xff] }
 0x114   :  { %v6938_v9 = vpop.f32.mrf.mxu0  ;;  %v1075_v0 = vmax.f32 %v901_v47, 0.0  ;;  %v1591_v47 = vld [vmem:[%s11106_s5 + $0xc0] sm:$0xff]  ;;  %v829_v4 = vadd.f32 %v8432_v48, %v8343_v17  ;;  %v1576_v48 = vld [vmem:[%s11106_s5 + $0x48] sm:$0xff] }
 0x115   :  { %v917_v23 = vadd.f32 %v6938_v9, %v8260_v53  ;;  %v1578_v9 = vld [vmem:[%s11106_s5 + $0x58] sm:$0xff]  ;;  %v1076_v20 = vmax.f32 %v906_v59, 0.0  ;;  %1721 = vperm.xlu0 %7503, %v1591_v47  }
 0x116   :  { %v908_v56 = vpop.f32.mrf.mxu0  ;;  %1656 = vperm.xlu1 %7502, %v1578_v9  }
 0x117   :  { %v1079_v19 = vmax.f32 %v917_v23, 0.0  ;;  %v909_v54 = vadd.f32 %v908_v56, %v8291_v14  ;;  %v837_v56 = vadd.f32 %v8426_v13, %v8319_v8  ;;  %v893_v14 = vadd.f32 %v892_v24, %v8339_v37 }
 0x118   :  { %v6941_v62 = vpop.f32.mrf.mxu0  ;;  %v1074_v24 = vmax.f32 %v898_v27, 0.0 }
 0x119   :  { %v1550_v58 = vpack.c.bf16 %v1079_v19, %v1078_v7  ;;  %v1077_v55 = vmax.f32 %v909_v54, 0.0  ;;  %v930_v25 = vadd.f32 %v6941_v62, %v8528_v40  ;;  %v834_v7 = vadd.f32 %v8414_v41, %v8317_v6  ;;  %v8536_v19 = vpop.permute.xlu0 %347 }
 0x11a   :  { %v8530_v23 = vpop.f32.mrf.mxu0  ;;  %v1060_v54 = vmax.f32 %v842_v15, 0.0  ;;  %v890_v62 = vadd.f32 %v889_v52, %v8335_v33  ;;  %1726 = vperm.xlu1 %7502, %v1592_v12   ;;  %v1059_v41 = vmax.f32 %v837_v56, 0.0  ;;  %v885_v15 = vadd.f32 %v8474_v42, %v8363_v49  ;;  %v1575_v42 = vld [vmem:[%s11106_s5 + $0x40] sm:$0xff] }
 0x11b   :  { %6103 = vmatprep.subr.bf16.mxu0 %v1550_v58  ;;  %v1549_v32 = vpack.c.bf16 %v1077_v55, %v1076_v20  ;;  %v1548_v60 = vpack.c.bf16 %v1075_v0, %v1074_v24  ;;  %v1073_v20 = vmax.f32 %v893_v14, 0.0  ;;  %v1082_v27 = vmax.f32 %v930_v25, 0.0  ;;  %1641 = vperm.xlu0 %7503, %v1575_v42   ;;  %v1589_v24 = vld [vmem:[%s11106_s5 + $0xb0] sm:$0xff] }
 0x11c   :  { %v6942_v13 = vpop.f32.mrf.mxu0  ;;  %6104 = vmatpush3.bf16.msra.mxu0 %v1542_v3  ;;  %v1541_v51 = vpack.c.bf16 %v1061_v10, %v1060_v54  ;;  %v1058_v52 = vmax.f32 %v834_v7, 0.0  ;;  %v826_v55 = vadd.f32 %v8420_v11, %v8341_v16  ;;  %v882_v0 = vadd.f32 %v8462_v61, %v8359_v45  ;;  %v1590_v61 = vld [vmem:[%s11106_s5 + $0xb8] sm:$0xff] }
 0x11d   :  { %v933_v59 = vadd.f32 %v6942_v13, %v8536_v19  ;;  %6105 = vmatprep.subr.bf16.mxu0 %v1549_v32  ;;  %v1072_v14 = vmax.f32 %v890_v62, 0.0  ;;  %v1057_v11 = vmax.f32 %v829_v4, 0.0  ;;  %v1071_v32 = vmax.f32 %v885_v15, 0.0  ;;  %v8575_v62 = vpop.permute.xlu1 %252 }
 0x11e   :  { %v8550_v9 = vpop.f32.mrf.mxu0  ;;  %1646 = vperm.xlu1 %7502, %v1576_v48   ;;  %v1540_v56 = vpack.c.bf16 %v1059_v41, %v1058_v52  ;;  %v877_v7 = vadd.f32 %v8479_v2, %v8394_v38  ;;  %v1056_v12 = vmax.f32 %v826_v55, 0.0  ;;  %11324 = vst [vmem:[#allocation50_spill] sm:$0xff] %v8575_v62  ;;  %v1070_v41 = vmax.f32 %v882_v0, 0.0 }
 0x11f   :  { %v1083_v58 = vmax.f32 %v933_v59, 0.0  ;;  %v1547_v13 = vpack.c.bf16 %v1073_v20, %v1072_v14  ;;  %v8577_v59 = vpop.permute.xlu0 %257  ;;  %v874_v2 = vadd.f32 %v8470_v44, %v8388_v36  ;;  %1711 = vperm.xlu0 %7503, %v1589_v24   ;;  %v810_v44 = vadd.f32 %v8398_v46, %v8396_v43 }
 0x120   :  { %v6945_v3 = vpop.f32.mrf.mxu0  ;;  %6106 = vmatpush3.bf16.msra.mxu0 %v1541_v51  ;;  %11325 = vst [vmem:[#allocation51_spill] sm:$0xff] %v8577_v59  ;;  %v813_v51 = vadd.f32 %v8410_v57, %v8401_v50  ;;  %v1539_v15 = vpack.c.bf16 %v1057_v11, %v1056_v12  ;;  %v1574_v57 = vld [vmem:[%s11106_s5 + $0x38] sm:$0xff]  ;;  %v866_v48 = vadd.f32 %v8450_v26, %v8428_v5 }
 0x121   :  { %v8562_v25 = vpack.c.bf16 %v1083_v58, %v1082_v27  ;;  %6107 = vmatprep.subr.bf16.mxu0 %v1548_v60  ;;  %v946_v54 = vadd.f32 %v6945_v3, %v8380_v30  ;;  %v869_v60 = vadd.f32 %v8456_v39, %v8434_v18  ;;  %v1546_v27 = vpack.c.bf16 %v1071_v32, %v1070_v41  ;;  %v1573_v39 = vld [vmem:[%s11106_s5 + $0x30] sm:$0xff] }
 0x122   :  { %v8564_v10 = vpop.f32.mrf.mxu0  ;;  %1716 = vperm.xlu1 %7502, %v1590_v61   ;;  %v1069_v58 = vmax.f32 %v877_v7, 0.0  ;;  %v1068_v42 = vmax.f32 %v874_v2, 0.0  ;;  %v1053_v46 = vmax.f32 %v813_v51, 0.0  ;;  %v858_v11 = vadd.f32 %v8452_v28, %v8575_v62  ;;  %v8608_v7 = vpop.permute.xlu1 %172  ;;  %v1587_v28 = vld [vmem:[%s11106_s5 + $0xa0] sm:$0xff] }
 0x123   :  { %v1086_v52 = vmax.f32 %v946_v54, 0.0  ;;  %1631 = vperm.xlu0 %7503, %v1573_v39   ;;  %v861_v32 = vadd.f32 %v8460_v29, %v8577_v59  ;;  %11326 = vst [vmem:[#allocation52_spill] sm:$0xff] %v8608_v7  ;;  %v8610_v54 = vpop.permute.xlu0 %177  ;;  %v1066_v61 = vmax.f32 %v866_v48, 0.0  ;;  %v794_v24 = vadd.f32 %v8382_v34, %v8608_v7  ;;  %v1571_v34 = vld [vmem:[%s11106_s5 + $0x20] sm:$0xff]  ;;  %v1585_v39 = vld [vmem:[%s11106_s5 + $0x90] sm:$0xff]  ;;  %v11343_v59 = vld [vmem:[#allocation8_spill] sm:$0xff] }
 0x124   :  { %v6946_v47 = vpop.f32.mrf.mxu0  ;;  %6108 = vmatpush3.bf16.msra.mxu0 %v1540_v56  ;;  %v1067_v56 = vmax.f32 %v869_v60, 0.0  ;;  %11327 = vst [vmem:[#allocation53_spill] sm:$0xff] %v8610_v54  ;;  %v1545_v26 = vpack.c.bf16 %v1069_v58, %v1068_v42  ;;  %v797_v41 = vadd.f32 %v8392_v63, %v8610_v54  ;;  %v1572_v60 = vld [vmem:[%s11106_s5 + $0x28] sm:$0xff] }
 0x125   :  { %v949_v4 = vadd.f32 %v6946_v47, %v8384_v35  ;;  %6109 = vmatprep.subr.bf16.mxu0 %v1547_v13  ;;  %v1052_v13 = vmax.f32 %v810_v44, 0.0  ;;  %v1588_v47 = vld [vmem:[%s11106_s5 + $0xa8] sm:$0xff]  ;;  %v1065_v51 = vmax.f32 %v861_v32, 0.0  ;;  %v1048_v63 = vmax.f32 %v794_v24, 0.0  ;;  %v11328_v44 = vld [vmem:[#allocation47_spill] sm:$0xff]  ;;  %v1570_v32 = vld [vmem:[%s11106_s5 + $0x18] sm:$0xff] }
 0x126   :  { %v8586_v20 = vpop.f32.mrf.mxu0  ;;  %1636 = vperm.xlu1 %7502, %v1574_v57   ;;  %v1586_v57 = vld [vmem:[%s11106_s5 + $0x98] sm:$0xff]  ;;  %v8681_v24 = vld [vmem:[%s11103_s2 + $0x20] ss:$16 sps:$4 sm:$0xff]   ;;  %v11342_v54 = vld [vmem:[#allocation10_spill] sm:$0xff] }
 0x127   :  { %v1087_v55 = vmax.f32 %v949_v4, 0.0  ;;  %v1537_v29 = vpack.c.bf16 %v1053_v46, %v1052_v13  ;;  %1701 = vperm.xlu0 %7503, %v1587_v28   ;;  %v1064_v4 = vmax.f32 %v858_v11, 0.0  ;;  %v8649_v46 = vld [vmem:[%s11103_s2] ss:$16 sps:$4 sm:$0xff]   ;;  %v8656_v11 = vld [vmem:[%s11103_s2 + $0x24] ss:$16 sps:$4 sm:$0xff]  }
 0x128   :  { %v8590_v3 = vpop.f32.mrf.mxu0  ;;  %6110 = vmatpush3.bf16.msra.mxu0 %v1539_v15  ;;  %11329 = vst [vmem:[#allocation47_spill] sm:$0xff] %v8649_v46  ;;  %11330 = vst [vmem:[#allocation54_spill] sm:$0xff] %v8656_v11  ;;  %v1584_v28 = vld [vmem:[%s11106_s5 + $0x88] sm:$0xff] }
 0x129   :  { %v8600_v0 = vpack.c.bf16 %v1087_v55, %v1086_v52  ;;  %6111 = vmatprep.subr.bf16.mxu0 %v1546_v27  ;;  %v1049_v27 = vmax.f32 %v797_v41, 0.0  ;;  %v1543_v52 = vpack.c.bf16 %v1065_v51, %v1064_v4  ;;  %11331 = vst [vmem:[#allocation55_spill] sm:$0xff] %v8681_v24  ;;  %v1568_v4 = vld [vmem:[%s11106_s5 + $0x8] sm:$0xff]  ;;  %v1567_v51 = vld [vmem:[%s11106_s5] sm:$0xff] }
 0x12a   :  { %v8602_v14 = vpop.f32.mrf.mxu0  ;;  %1706 = vperm.xlu1 %7502, %v1588_v47  }
 0x12b   :  { %1621 = vperm.xlu0 %7503, %v1571_v34   ;;  %v1535_v48 = vpack.c.bf16 %v1049_v27, %v1048_v63  ;;  %v8707_v27 = vld [vmem:[%s11103_s2 + $0x40] ss:$16 sps:$4 sm:$0xff]  }
 0x12c   :  { %v8612_v12 = vpop.f32.mrf.mxu0  ;;  %6112 = vmatpush3.bf16.msra.mxu0 %v8416_v22  ;;  %v1544_v22 = vpack.c.bf16 %v1067_v56, %v1066_v61  ;;  %v1583_v61 = vld [vmem:[%s11106_s5 + $0x80] sm:$0xff]  ;;  %11333 = vst [vmem:[#allocation57_spill] sm:$0xff] %v8707_v27 }
 0x12d   :  { %6113 = vmatprep.subr.bf16.mxu0 %v1545_v26  ;;  %v1569_v26 = vld [vmem:[%s11106_s5 + $0x10] sm:$0xff] }
 0x12e   :  { %v8625_v2 = vpop.f32.mrf.mxu0  ;;  %1626 = vperm.xlu1 %7502, %v1572_v60  }
 0x12f   :  { %1691 = vperm.xlu0 %7503, %v1585_v39  }
 0x130   :  { %v8627_v15 = vpop.f32.mrf.mxu0  ;;  %6114 = vmatpush3.bf16.msra.mxu0 %v1537_v29 }
 0x131   :  { %6115 = vmatprep.subr.bf16.mxu0 %v1544_v22  ;;  %v8688_v22 = vld [vmem:[%s11103_s2 + $0x44] ss:$16 sps:$4 sm:$0xff]   ;;  %v978_v62 = vadd.f32 %v8627_v15, %v11342_v54 }
 0x132   :  { %v8635_v58 = vpop.f32.mrf.mxu0  ;;  %1696 = vperm.xlu1 %7502, %v1586_v57   ;;  %11332 = vst [vmem:[#allocation56_spill] sm:$0xff] %v8688_v22  ;;  %v11349_v15 = vld [vmem:[#allocation29_spill] sm:$0xff] }
 0x133   :  { %1611 = vperm.xlu0 %7503, %v1569_v26  }
 0x134   :  { %v6954_v55 = vpop.f32.mrf.mxu0  ;;  %6116 = vmatpush3.bf16.msra.mxu0 %v11328_v44  ;;  %v8712_v44 = vld [vmem:[%s11103_s2 + $0x64] ss:$16 sps:$4 sm:$0xff]  }
 0x135   :  { %6117 = vmatprep.subr.bf16.mxu0 %v1543_v52  ;;  %11334 = vst [vmem:[#allocation58_spill] sm:$0xff] %v8712_v44 }
 0x136   :  { %v8644_v42 = vpop.f32.mrf.mxu0  ;;  %1616 = vperm.xlu1 %7502, %v1570_v32  }
 0x137   :  { %1681 = vperm.xlu0 %7503, %v1583_v61  }
 0x138   :  { %v8651_v56 = vpop.f32.mrf.mxu0  ;;  %6118 = vmatpush3.bf16.msra.mxu0 %v1535_v48 }
 0x13a   :  { %v8664_v13 = vpop.f32.mrf.mxu0  ;;  %1686 = vperm.xlu1 %7502, %v1584_v28   ;;  %v11336_v28 = vld [vmem:[#allocation45_spill] sm:$0xff] }
 0x13b   :  { %2112 = vmatmul.mubr.bf16.vlgmr.msra.gmra.mxu0 %v8649_v46  ;;  %1601 = vperm.xlu0 %7503, %v1567_v51  }
 0x13c   :  { %v8667_v47 = vpop.f32.mrf.mxu0  ;;  %2119 = vmatprep.mubr.bf16.mxu0 %v8656_v11 }
 0x13e   :  { %v8676_v29 = vpop.f32.mrf.mxu0  ;;  %1606 = vperm.xlu1 %7502, %v1568_v4   ;;  %v8724_v4 = vld [vmem:[%s11103_s2 + $0x60] ss:$16 sps:$4 sm:$0xff]  }
 0x13f   :  { %11337 = vst [vmem:[#allocation45_spill] sm:$0xff] %v8724_v4 }
 0x140   :  { %v8683_v41 = vpop.f32.mrf.mxu0 }
 0x142   :  { %v8696_v60 = vpop.f32.mrf.mxu0 }
 0x143   :  { %2120 = vmatmul.mubr.bf16.gmra.mxu0 %v8681_v24  ;;  %v11339_v24 = vld [vmem:[#allocation46_spill] sm:$0xff] }
 0x144   :  { %v8699_v34 = vpop.f32.mrf.mxu0  ;;  %2127 = vmatprep.mubr.bf16.mxu0 %v8688_v22 }
 0x146   :  { %v8702_v63 = vpop.f32.mrf.mxu0 }
 0x148   :  { %v6965_v52 = vpop.f32.mrf.mxu0 }
 0x14a   :  { %v8714_v57 = vpop.f32.mrf.mxu0  ;;  %v6977_v39 = vpop.f32.mrf.mxu1 }
 0x14b   :  { %2128 = vmatmul.mubr.bf16.gmra.mxu0 %v8707_v27  ;;  %v1161_v61 = vadd.f32 %v6977_v39, %v11336_v28  ;;  %v8729_v27 = vld [vmem:[%s11103_s2 + $0x84] ss:$16 sps:$4 sm:$0xff]  }
 0x14c   :  { %v6966_v48 = vpop.f32.mrf.mxu0  ;;  %2135 = vmatprep.mubr.bf16.mxu0 %v8712_v44  ;;  %v8718_v32 = vpop.f32.mrf.mxu1  ;;  %11338 = vst [vmem:[#allocation60_spill] sm:$0xff] %v8729_v27  ;;  %v11340_v44 = vld [vmem:[#allocation11_spill] sm:$0xff] }
 0x14d   :  { %11335 = vst [vmem:[#allocation59_spill] sm:$0xff] %v8718_v32  ;;  %v981_v46 = vadd.f32 %v6954_v55, %v11340_v44  ;;  %v1409_v39 = vmax.f32 %v1161_v61, 0.0  ;;  %v11346_v44 = vld [vmem:[#allocation9_spill] sm:$0xff] }
 0x14e   :  { %v1020_v26 = vpop.f32.mrf.mxu0  ;;  %v6978_v51 = vpop.f32.mrf.mxu1 }
 0x14f   :  { %v1164_v11 = vadd.f32 %v6978_v51, %v11339_v24  ;;  %v11345_v24 = vld [vmem:[#allocation15_spill] sm:$0xff]  ;;  %v1095_v51 = vmax.f32 %v981_v46, 0.0 }
 0x150   :  { %v6969_v22 = vpop.f32.mrf.mxu0  ;;  %v8733_v32 = vpop.f32.mrf.mxu1 }
 0x151   :  { %11341 = vst [vmem:[#allocation46_spill] sm:$0xff] %v8733_v32  ;;  %v1410_v28 = vmax.f32 %v1164_v11, 0.0  ;;  %v1042_v5 = vadd.f32 %v6969_v22, %v11343_v59  ;;  %v11350_v22 = vld [vmem:[#allocation16_spill] sm:$0xff] }
 0x152   :  { %v1033_v7 = vpop.f32.mrf.mxu0  ;;  %v6981_v43 = vpop.f32.mrf.mxu1 }
 0x153   :  { %2136 = vmatmul.mubr.bf16.gmra.mxu0 %v8724_v4  ;;  %v8740_v50 = vpack.c.bf16 %v1410_v28, %v1409_v39  ;;  %v1034_v55 = vadd.f32 %v1033_v7, %v11345_v24  ;;  %v11348_v4 = vld [vmem:[#allocation18_spill] sm:$0xff]  ;;  %v1177_v54 = vadd.f32 %v6981_v43, %v11349_v15  ;;  %v8753_v39 = vld [vmem:[%s11103_s2 + $0x80] ss:$16 sps:$4 sm:$0xff]   ;;  %v1094_v28 = vmax.f32 %v978_v62, 0.0  ;;  %v8759_v24 = vld [vmem:[%s11103_s2 + $0xa4] ss:$16 sps:$4 sm:$0xff]  }
 0x154   :  { %v6970_v18 = vpop.f32.mrf.mxu0  ;;  %2143 = vmatprep.mubr.bf16.mxu0 %v8729_v27  ;;  %v8744_v61 = vpop.f32.mrf.mxu1  ;;  %v973_v35 = vadd.f32 %v8644_v42, %v11348_v4  ;;  %11351 = vst [vmem:[#allocation29_spill] sm:$0xff] %v8753_v39  ;;  %v11352_v7 = vld [vmem:[#allocation21_spill] sm:$0xff]  ;;  %v1110_v27 = vmax.f32 %v1042_v5, 0.0  ;;  %11353 = vst [vmem:[#allocation63_spill] sm:$0xff] %v8759_v24 }
 0x155   :  { %11344 = vst [vmem:[#allocation61_spill] sm:$0xff] %v8740_v50  ;;  %v1045_v32 = vadd.f32 %v6970_v18, %v11346_v44  ;;  %11347 = vst [vmem:[#allocation62_spill] sm:$0xff] %v8744_v61  ;;  %v1029_v46 = vadd.f32 %v6966_v48, %v11352_v7  ;;  %v11354_v42 = vld [vmem:[#allocation17_spill] sm:$0xff]  ;;  %v11356_v50 = vld [vmem:[#allocation23_spill] sm:$0xff]  ;;  %v1558_v61 = vpack.c.bf16 %v1095_v51, %v1094_v28  ;;  %v1413_v30 = vmax.f32 %v1177_v54, 0.0 }
 0x156   :  { %v1036_v11 = vpop.f32.mrf.mxu0  ;;  %v6982_v44 = vpop.f32.mrf.mxu1  ;;  %v970_v43 = vadd.f32 %v8635_v58, %v11354_v42  ;;  %v965_v62 = vadd.f32 %v8612_v12, %v11356_v50  ;;  %v11357_v48 = vld [vmem:[#allocation20_spill] sm:$0xff]  ;;  %v1093_v36 = vmax.f32 %v973_v35, 0.0  ;;  %v11359_v12 = vld [vmem:[#allocation22_spill] sm:$0xff] }
 0x157   :  { %v1037_v59 = vadd.f32 %v1036_v11, %v11350_v22  ;;  %v1111_v18 = vmax.f32 %v1045_v32, 0.0  ;;  %v1108_v11 = vmax.f32 %v1034_v55, 0.0  ;;  %v11355_v22 = vld [vmem:[#allocation30_spill] sm:$0xff]  ;;  %v1026_v5 = vadd.f32 %v6965_v52, %v11357_v48  ;;  %v11358_v55 = vld [vmem:[#allocation25_spill] sm:$0xff]  ;;  %v11360_v54 = vld [vmem:[#allocation24_spill] sm:$0xff] }
 0x158   :  { %v1180_v4 = vadd.f32 %v6982_v44, %v11355_v22  ;;  %v8767_v7 = vpop.f32.mrf.mxu1  ;;  %v1107_v58 = vmax.f32 %v1029_v46, 0.0  ;;  %v962_v52 = vadd.f32 %v8590_v3, %v11359_v12  ;;  %v11361_v22 = vld [vmem:[#allocation27_spill] sm:$0xff] }
 0x159   :  { %v1109_v15 = vmax.f32 %v1037_v59, 0.0  ;;  %v1566_v32 = vpack.c.bf16 %v1111_v18, %v1110_v27  ;;  %v1021_v59 = vadd.f32 %v1020_v26, %v11358_v55  ;;  %v1092_v27 = vmax.f32 %v970_v43, 0.0  ;;  %v8787_v3 = vld [vmem:[%s11103_s2 + $0xa0] ss:$16 sps:$4 sm:$0xff]  }
 0x15a   :  { %v1414_v38 = vmax.f32 %v1180_v4, 0.0  ;;  %v8771_v42 = vpop.f32.mrf.mxu1  ;;  %v1106_v35 = vmax.f32 %v1026_v5, 0.0  ;;  %v1018_v4 = vadd.f32 %v8714_v57, %v11360_v54  ;;  %v1091_v26 = vmax.f32 %v965_v62, 0.0  ;;  %11362 = vst [vmem:[#allocation30_spill] sm:$0xff] %v8787_v3 }
 0x15b   :  { %v1565_v45 = vpack.c.bf16 %v1109_v15, %v1108_v11  ;;  %2144 = vmatmul.mubr.bf16.gmra.mxu0 %v8753_v39  ;;  %6215 = vmatprep.subr.bf16.mxu1 %v1566_v32  ;;  %v957_v28 = vadd.f32 %v8625_v2, %v11361_v22  ;;  %v1557_v46 = vpack.c.bf16 %v1093_v36, %v1092_v27  ;;  %v1105_v18 = vmax.f32 %v1021_v59, 0.0  ;;  %v11365_v2 = vld [vmem:[#allocation26_spill] sm:$0xff]  ;;  %v11366_v11 = vld [vmem:[#allocation31_spill] sm:$0xff]  ;;  %v11367_v59 = vld [vmem:[#allocation40_spill] sm:$0xff] }
 0x15c   :  { %2151 = vmatprep.mubr.bf16.mxu0 %v8759_v24  ;;  %v8776_v44 = vpack.c.bf16 %v1414_v38, %v1413_v30  ;;  %6216 = vmatpush3.bf16.msra.mxu1 %v1558_v61  ;;  %v8780_v51 = vpop.f32.mrf.mxu1  ;;  %v11363_v30 = vld [vmem:[#allocation32_spill] sm:$0xff]  ;;  %v1564_v61 = vpack.c.bf16 %v1107_v58, %v1106_v35  ;;  %v1090_v57 = vmax.f32 %v962_v52, 0.0  ;;  %v954_v36 = vadd.f32 %v8602_v14, %v11365_v2  ;;  %v11393_v39 = vld [vmem:[#allocation13_spill] sm:$0xff] }
 0x15d   :  { %6217 = vmatprep.subr.bf16.mxu1 %v1565_v45  ;;  %v1013_v38 = vadd.f32 %v8699_v34, %v11363_v30  ;;  %v8796_v45 = vld [vmem:[%s11103_s2 + $0xc4] ss:$16 sps:$4 sm:$0xff]   ;;  %v1010_v15 = vadd.f32 %v8683_v41, %v11366_v11  ;;  %v1104_v62 = vmax.f32 %v1018_v4, 0.0  ;;  %v1089_v32 = vmax.f32 %v957_v28, 0.0 }
 0x15e   :  { %v8791_v43 = vpop.f32.mrf.mxu1  ;;  %11364 = vst [vmem:[#allocation23_spill] sm:$0xff] %v8796_v45  ;;  %v1556_v34 = vpack.c.bf16 %v1091_v26, %v1090_v57  ;;  %v1005_v27 = vadd.f32 %v8702_v63, %v11367_v59  ;;  %v1088_v14 = vmax.f32 %v954_v36, 0.0  ;;  %v11368_v4 = vld [vmem:[#allocation39_spill] sm:$0xff]  ;;  %v11369_v26 = vld [vmem:[#allocation42_spill] sm:$0xff]  ;;  %v997_v57 = vadd.f32 %v8667_v47, %v8513_v31 }
 0x15f   :  { %v1103_v58 = vmax.f32 %v1013_v38, 0.0  ;;  %v1563_v35 = vpack.c.bf16 %v1105_v18, %v1104_v62  ;;  %v1102_v41 = vmax.f32 %v1010_v15, 0.0  ;;  %v941_v28 = vadd.f32 %v8586_v20, %v11369_v26  ;;  %v8819_v63 = vld [vmem:[%s11103_s2 + $0xc0] ss:$16 sps:$4 sm:$0xff]   ;;  %v8821_v18 = vpop.permute.xlu0 %417  ;;  %v8830_v62 = vld [vmem:[%s11103_s2 + $0xe4] ss:$16 sps:$4 sm:$0xff]  }
 0x160   :  { %6218 = vmatpush3.bf16.msra.mxu1 %v1557_v46  ;;  %v8802_v5 = vpop.f32.mrf.mxu1  ;;  %v1002_v46 = vadd.f32 %v8696_v60, %v11368_v4  ;;  %v1555_v38 = vpack.c.bf16 %v1089_v32, %v1088_v14  ;;  %11370 = vst [vmem:[#allocation20_spill] sm:$0xff] %v8819_v63  ;;  %11371 = vst [vmem:[#allocation25_spill] sm:$0xff] %v8821_v18  ;;  %v1101_v15 = vmax.f32 %v1005_v27, 0.0  ;;  %v11373_v20 = vld [vmem:[#allocation41_spill] sm:$0xff]  ;;  %v8834_v32 = vpop.permute.xlu1 %412  ;;  %v1099_v27 = vmax.f32 %v997_v57, 0.0 }
 0x161   :  { %6219 = vmatprep.subr.bf16.mxu1 %v1564_v61  ;;  %v1562_v36 = vpack.c.bf16 %v1103_v58, %v1102_v41  ;;  %11372 = vst [vmem:[#allocation22_spill] sm:$0xff] %v8830_v62  ;;  %11374 = vst [vmem:[#allocation24_spill] sm:$0xff] %v8834_v32  ;;  %v1085_v58 = vmax.f32 %v941_v28, 0.0  ;;  %v989_v41 = vadd.f32 %v8676_v29, %v8821_v18 }
 0x162   :  { %v8807_v52 = vpop.f32.mrf.mxu1  ;;  %v986_v28 = vadd.f32 %v8664_v13, %v8834_v32  ;;  %v8867_v13 = vld [vmem:[%s11103_s2 + $0x104] ss:$16 sps:$4 sm:$0xff]  }
 0x163   :  { %2152 = vmatmul.mubr.bf16.gmra.mxu0 %v8787_v3  ;;  %11379 = vst [vmem:[#allocation31_spill] sm:$0xff] %v8867_v13  ;;  %v11390_v32 = vld [vmem:[#allocation7_spill] sm:$0xff] }
 0x164   :  { %2159 = vmatprep.mubr.bf16.mxu0 %v8796_v45  ;;  %6220 = vmatpush3.bf16.msra.mxu1 %v1556_v34  ;;  %v8812_v61 = vpop.f32.mrf.mxu1  ;;  %v938_v34 = vadd.f32 %v8564_v10, %v11373_v20  ;;  %v1100_v45 = vmax.f32 %v1002_v46, 0.0 }
 0x165   :  { %6221 = vmatprep.subr.bf16.mxu1 %v1563_v35  ;;  %v11375_v35 = vld [vmem:[#allocation48_spill] sm:$0xff] }
 0x166   :  { %v8825_v60 = vpop.f32.mrf.mxu1  ;;  %v994_v14 = vadd.f32 %v8651_v56, %v11375_v35  ;;  %v1561_v10 = vpack.c.bf16 %v1101_v15, %v1100_v45  ;;  %v8847_v56 = vpop.permute.xlu0 %337  ;;  %v8858_v45 = vld [vmem:[%s11103_s2 + $0xe0] ss:$16 sps:$4 sm:$0xff]  }
 0x167   :  { %11376 = vst [vmem:[#allocation27_spill] sm:$0xff] %v8847_v56  ;;  %v925_v29 = vadd.f32 %v8550_v9, %v8847_v56  ;;  %11377 = vst [vmem:[#allocation32_spill] sm:$0xff] %v8858_v45  ;;  %v8860_v15 = vpop.permute.xlu1 %332  ;;  %v8938_v56 = vld [vmem:[%s11103_s2 + $0x140] ss:$16 sps:$4 sm:$0xff]  }
 0x168   :  { %6222 = vmatpush3.bf16.msra.mxu1 %v1555_v38  ;;  %v8838_v47 = vpop.f32.mrf.mxu1  ;;  %v1084_v38 = vmax.f32 %v938_v34, 0.0  ;;  %v1098_v46 = vmax.f32 %v994_v14, 0.0  ;;  %11378 = vst [vmem:[#allocation26_spill] sm:$0xff] %v8860_v15  ;;  %v1097_v34 = vmax.f32 %v989_v41, 0.0  ;;  %v922_v9 = vadd.f32 %v8530_v23, %v8860_v15  ;;  %v11392_v35 = vld [vmem:[#allocation19_spill] sm:$0xff] }
 0x169   :  { %6223 = vmatprep.subr.bf16.mxu1 %v1562_v36 }
 0x16a   :  { %v8843_v3 = vpop.f32.mrf.mxu1  ;;  %v1553_v57 = vpack.c.bf16 %v1085_v58, %v1084_v38  ;;  %v1096_v58 = vmax.f32 %v986_v28, 0.0  ;;  %v1081_v38 = vmax.f32 %v925_v29, 0.0  ;;  %v8883_v28 = vld [vmem:[%s11103_s2 + $0x100] ss:$16 sps:$4 sm:$0xff]  }
 0x16b   :  { %2160 = vmatmul.mubr.bf16.gmra.mxu0 %v8819_v63  ;;  %11380 = vst [vmem:[#allocation40_spill] sm:$0xff] %v8883_v28  ;;  %v11389_v63 = vld [vmem:[#allocation5_spill] sm:$0xff] }
 0x16c   :  { %2167 = vmatprep.mubr.bf16.mxu0 %v8830_v62  ;;  %6224 = vmatpush3.bf16.msra.mxu1 %v8600_v0  ;;  %v8851_v36 = vpop.f32.mrf.mxu1  ;;  %v1560_v0 = vpack.c.bf16 %v1099_v27, %v1098_v46  ;;  %v1559_v41 = vpack.c.bf16 %v1097_v34, %v1096_v58  ;;  %v1080_v46 = vmax.f32 %v922_v9, 0.0 }
 0x16d   :  { %6225 = vmatprep.subr.bf16.mxu1 %v1561_v10 }
 0x16e   :  { %v8862_v14 = vpop.f32.mrf.mxu1  ;;  %v1551_v23 = vpack.c.bf16 %v1081_v38, %v1080_v46  ;;  %v8911_v38 = vld [vmem:[%s11103_s2 + $0x120] ss:$16 sps:$4 sm:$0xff]   ;;  %v8916_v46 = vld [vmem:[%s11103_s2 + $0x28] ss:$16 sps:$4 sm:$0xff]  }
 0x16f   :  { %11384 = vst [vmem:[#allocation66_spill] sm:$0xff] %v8911_v38  ;;  %11385 = vst [vmem:[#allocation67_spill] sm:$0xff] %v8916_v46 }
 0x170   :  { %6226 = vmatpush3.bf16.msra.mxu1 %v1553_v57  ;;  %v8871_v10 = vpop.f32.mrf.mxu1  ;;  %v8890_v57 = vld [vmem:[%s11103_s2 + $0x8] ss:$16 sps:$4 sm:$0xff]  }
 0x171   :  { %6227 = vmatprep.subr.bf16.mxu1 %v1560_v0  ;;  %11381 = vst [vmem:[#allocation39_spill] sm:$0xff] %v8890_v57  ;;  %v8900_v0 = vld [vmem:[%s11103_s2 + $0x2c] ss:$16 sps:$4 sm:$0xff]  }
 0x172   :  { %v8874_v27 = vpop.f32.mrf.mxu1  ;;  %11383 = vst [vmem:[#allocation65_spill] sm:$0xff] %v8900_v0 }
 0x173   :  { %2168 = vmatmul.mubr.bf16.gmra.mxu0 %v8858_v45 }
 0x174   :  { %2175 = vmatprep.mubr.bf16.mxu0 %v8867_v13  ;;  %6228 = vmatpush3.bf16.msra.mxu1 %v8562_v25  ;;  %v8878_v62 = vpop.f32.mrf.mxu1  ;;  %v8895_v25 = vld [vmem:[%s11103_s2 + $0x124] ss:$16 sps:$4 sm:$0xff]  }
 0x175   :  { %6229 = vmatprep.subr.bf16.mxu1 %v1559_v41  ;;  %11382 = vst [vmem:[#allocation64_spill] sm:$0xff] %v8895_v25 }
 0x176   :  { %v8885_v29 = vpop.f32.mrf.mxu1 }
 0x178   :  { %6230 = vmatpush3.bf16.msra.mxu1 %v1551_v23  ;;  %v8902_v34 = vpop.f32.mrf.mxu1  ;;  %v8921_v23 = vld [vmem:[%s11103_s2 + $0x144] ss:$16 sps:$4 sm:$0xff]  }
 0x179   :  { %11386 = vst [vmem:[#allocation68_spill] sm:$0xff] %v8921_v23 }
 0x17a   :  { %v7001_v9 = vpop.f32.mrf.mxu1 }
 0x17b   :  { %2176 = vmatmul.mubr.bf16.gmra.mxu0 %v8883_v28  ;;  %2273 = vmatmul.mubr.bf16.vlgmr.msra.gmra.mxu1 %v8890_v57  ;;  %v11388_v28 = vld [vmem:[#allocation6_spill] sm:$0xff] }
 0x17c   :  { %2183 = vmatprep.mubr.bf16.mxu0 %v8895_v25  ;;  %2280 = vmatprep.mubr.bf16.mxu1 %v8900_v0  ;;  %v1248_v58 = vpop.f32.mrf.mxu1  ;;  %v8926_v0 = vld [vmem:[%s11103_s2 + $0x4c] ss:$16 sps:$4 sm:$0xff]   ;;  %v1212_v13 = vadd.f32 %v8825_v60, %v11388_v28  ;;  %v8950_v60 = vld [vmem:[%s11103_s2 + $0x164] ss:$16 sps:$4 sm:$0xff]  }
 0x17d   :  { %11387 = vst [vmem:[#allocation69_spill] sm:$0xff] %v8926_v0 }
 0x17e   :  { %v7002_v41 = vpop.f32.mrf.mxu1 }
 0x17f   :  { %v1260_v20 = vadd.f32 %v7002_v41, %v11392_v35 }
 0x180   :  { %v1251_v25 = vpop.f32.mrf.mxu1 }
 0x182   :  { %v7005_v57 = vpop.f32.mrf.mxu1 }
 0x183   :  { %2184 = vmatmul.mubr.bf16.gmra.mxu0 %v8911_v38  ;;  %2281 = vmatmul.mubr.bf16.gmra.mxu1 %v8916_v46  ;;  %v1273_v15 = vadd.f32 %v7005_v57, %v11389_v63  ;;  %v1209_v38 = vadd.f32 %v8807_v52, %v11390_v32  ;;  %v11391_v63 = vld [vmem:[#allocation12_spill] sm:$0xff]  ;;  %v1422_v52 = vmax.f32 %v1212_v13, 0.0  ;;  %v1204_v32 = vadd.f32 %v8838_v47, %v8295_v1 }
 0x184   :  { %2191 = vmatprep.mubr.bf16.mxu0 %v8921_v23  ;;  %2288 = vmatprep.mubr.bf16.mxu1 %v8926_v0  ;;  %v1264_v45 = vpop.f32.mrf.mxu1  ;;  %v8945_v23 = vld [vmem:[%s11103_s2 + $0x48] ss:$16 sps:$4 sm:$0xff]   ;;  %v8957_v0 = vld [vmem:[%s11103_s2 + $0x6c] ss:$16 sps:$4 sm:$0xff]   ;;  %v1257_v1 = vadd.f32 %v7001_v9, %v8311_v21  ;;  %v8979_v21 = vld [vmem:[%s11103_s2 + $0x160] ss:$16 sps:$4 sm:$0xff]   ;;  %v1244_v9 = vadd.f32 %v8885_v29, %v8363_v49 }
 0x185   :  { %v1265_v28 = vadd.f32 %v1264_v45, %v11391_v63  ;;  %v1437_v24 = vmax.f32 %v1273_v15, 0.0  ;;  %v1421_v45 = vmax.f32 %v1209_v38, 0.0  ;;  %v1420_v38 = vmax.f32 %v1204_v32, 0.0  ;;  %v11398_v49 = vld [vmem:[#allocation28_spill] sm:$0xff] }
 0x186   :  { %v7006_v18 = vpop.f32.mrf.mxu1  ;;  %v1241_v29 = vadd.f32 %v8874_v27, %v11398_v49  ;;  %v9024_v27 = vld [vmem:[%s11103_s2 + $0x180] ss:$16 sps:$4 sm:$0xff]  }
 0x187   :  { %v1276_v57 = vadd.f32 %v7006_v18, %v8260_v53  ;;  %v11394_v53 = vld [vmem:[#allocation14_spill] sm:$0xff]  ;;  %v1435_v47 = vmax.f32 %v1265_v28, 0.0  ;;  %v2440_v15 = vpack.c.bf16 %v1422_v52, %v1421_v45  ;;  %11401 = vst [vmem:[#allocation12_spill] sm:$0xff] %v9024_v27 }
 0x188   :  { %v1267_v46 = vpop.f32.mrf.mxu1  ;;  %v1201_v18 = vadd.f32 %v8812_v61, %v11394_v53  ;;  %v1434_v61 = vmax.f32 %v1260_v20, 0.0  ;;  %v8993_v20 = vld [vmem:[%s11103_s2 + $0x8c] ss:$16 sps:$4 sm:$0xff]  }
 0x189   :  { %v1438_v31 = vmax.f32 %v1276_v57, 0.0  ;;  %v1268_v26 = vadd.f32 %v1267_v46, %v11393_v39  ;;  %v1196_v39 = vadd.f32 %v8791_v43, %v8319_v8  ;;  %v1252_v46 = vadd.f32 %v1251_v25, %v8339_v37  ;;  %v8986_v43 = vld [vmem:[%s11103_s2 + $0x68] ss:$16 sps:$4 sm:$0xff]   ;;  %11396 = vst [vmem:[#allocation5_spill] sm:$0xff] %v8993_v20 }
 0x18a   :  { %v7009_v63 = vpop.f32.mrf.mxu1  ;;  %v1419_v8 = vmax.f32 %v1201_v18, 0.0  ;;  %11395 = vst [vmem:[#allocation6_spill] sm:$0xff] %v8986_v43  ;;  %v1433_v37 = vmax.f32 %v1257_v1, 0.0 }
 0x18b   :  { %2192 = vmatmul.mubr.bf16.gmra.mxu0 %v8938_v56  ;;  %2289 = vmatmul.mubr.bf16.gmra.mxu1 %v8945_v23  ;;  %v2448_v13 = vpack.c.bf16 %v1438_v31, %v1437_v24  ;;  %v1436_v35 = vmax.f32 %v1268_v26, 0.0  ;;  %v1289_v57 = vadd.f32 %v7009_v63, %v8528_v40  ;;  %v1193_v31 = vadd.f32 %v8771_v42, %v8317_v6 }
 0x18c   :  { %2199 = vmatprep.mubr.bf16.mxu0 %v8950_v60  ;;  %2296 = vmatprep.mubr.bf16.mxu1 %v8957_v0  ;;  %v8972_v41 = vpop.f32.mrf.mxu1  ;;  %v1249_v40 = vadd.f32 %v1248_v58, %v8335_v33  ;;  %v1418_v6 = vmax.f32 %v1196_v39, 0.0  ;;  %v1188_v42 = vadd.f32 %v8802_v5, %v8343_v17  ;;  %v2439_v25 = vpack.c.bf16 %v1420_v38, %v1419_v8  ;;  %v9004_v33 = vld [vmem:[%s11103_s2 + $0x184] ss:$16 sps:$4 sm:$0xff]   ;;  %v11404_v8 = vld [vmem:[#allocation34_spill] sm:$0xff] }
 0x18d   :  { %6327 = vmatprep.subr.bf16.mxu0 %v2448_v13  ;;  %v2447_v53 = vpack.c.bf16 %v1436_v35, %v1435_v47  ;;  %11397 = vst [vmem:[#allocation7_spill] sm:$0xff] %v9004_v33  ;;  %v1432_v58 = vmax.f32 %v1252_v46, 0.0  ;;  %v1441_v52 = vmax.f32 %v1289_v57, 0.0  ;;  %v1417_v45 = vmax.f32 %v1193_v31, 0.0  ;;  %v11400_v39 = vld [vmem:[#allocation33_spill] sm:$0xff]  ;;  %v11403_v31 = vld [vmem:[#allocation35_spill] sm:$0xff] }
 0x18e   :  { %v7010_v24 = vpop.f32.mrf.mxu1  ;;  %6328 = vmatpush3.bf16.msra.mxu0 %v2440_v15  ;;  %v1185_v17 = vadd.f32 %v8780_v51, %v8341_v16  ;;  %v1431_v18 = vmax.f32 %v1249_v40, 0.0  ;;  %v1416_v47 = vmax.f32 %v1188_v42, 0.0  ;;  %v1430_v16 = vmax.f32 %v1244_v9, 0.0  ;;  %v11399_v51 = vld [vmem:[#allocation36_spill] sm:$0xff]  ;;  %v11406_v40 = vld [vmem:[#allocation38_spill] sm:$0xff] }
 0x18f   :  { %v1292_v26 = vadd.f32 %v7010_v24, %v8536_v19  ;;  %6329 = vmatprep.subr.bf16.mxu0 %v2447_v53  ;;  %v2446_v19 = vpack.c.bf16 %v1434_v61, %v1433_v37  ;;  %v2438_v1 = vpack.c.bf16 %v1418_v6, %v1417_v45  ;;  %v1236_v35 = vadd.f32 %v8902_v34, %v11399_v51  ;;  %v9029_v57 = vld [vmem:[%s11103_s2 + $0x88] ss:$16 sps:$4 sm:$0xff]   ;;  %v9037_v37 = vld [vmem:[%s11103_s2 + $0xac] ss:$16 sps:$4 sm:$0xff]   ;;  %v11409_v45 = vld [vmem:[#allocation37_spill] sm:$0xff] }
 0x190   :  { %v8999_v28 = vpop.f32.mrf.mxu1  ;;  %v2445_v38 = vpack.c.bf16 %v1432_v58, %v1431_v18  ;;  %v1415_v61 = vmax.f32 %v1185_v17, 0.0  ;;  %11402 = vst [vmem:[#allocation19_spill] sm:$0xff] %v9029_v57  ;;  %v1429_v53 = vmax.f32 %v1241_v29, 0.0  ;;  %v1233_v34 = vadd.f32 %v8878_v62, %v11403_v31  ;;  %11405 = vst [vmem:[#allocation13_spill] sm:$0xff] %v9037_v37  ;;  %v11407_v42 = vld [vmem:[#allocation44_spill] sm:$0xff]  ;;  %v11410_v17 = vld [vmem:[#allocation62_spill] sm:$0xff] }
 0x191   :  { %v1442_v32 = vmax.f32 %v1292_v26, 0.0  ;;  %v1172_v26 = vadd.f32 %v8767_v7, %v11406_v40  ;;  %v9048_v62 = vld [vmem:[%s11103_s2 + $0x1a4] ss:$16 sps:$4 sm:$0xff]   ;;  %v1428_v58 = vmax.f32 %v1236_v35, 0.0  ;;  %v1169_v7 = vadd.f32 %v11410_v17, %v11409_v45  ;;  %v9084_v31 = vld [vmem:[%s11103_s2 + $0xcc] ss:$16 sps:$4 sm:$0xff]  }
 0x192   :  { %v7013_v5 = vpop.f32.mrf.mxu1  ;;  %6330 = vmatpush3.bf16.msra.mxu0 %v2439_v25  ;;  %v2437_v6 = vpack.c.bf16 %v1416_v47, %v1415_v61  ;;  %v1228_v25 = vadd.f32 %v8862_v14, %v11407_v42  ;;  %11408 = vst [vmem:[#allocation14_spill] sm:$0xff] %v9048_v62  ;;  %v11411_v14 = vld [vmem:[#allocation43_spill] sm:$0xff]  ;;  %v1427_v29 = vmax.f32 %v1233_v34, 0.0  ;;  %v9077_v61 = vld [vmem:[%s11103_s2 + $0xa8] ss:$16 sps:$4 sm:$0xff]   ;;  %11416 = vst [vmem:[#allocation33_spill] sm:$0xff] %v9084_v31 }
 0x193   :  { %2200 = vmatmul.mubr.bf16.gmra.mxu0 %v8979_v21  ;;  %2297 = vmatmul.mubr.bf16.gmra.mxu1 %v8986_v43  ;;  %v9012_v63 = vpack.c.bf16 %v1442_v32, %v1441_v52  ;;  %v1305_v15 = vadd.f32 %v7013_v5, %v11400_v39  ;;  %v1225_v49 = vadd.f32 %v8843_v3, %v11411_v14  ;;  %v11412_v51 = vld [vmem:[#allocation51_spill] sm:$0xff]  ;;  %v11417_v34 = vld [vmem:[#allocation53_spill] sm:$0xff] }
 0x194   :  { %6331 = vmatprep.subr.bf16.mxu0 %v2446_v19  ;;  %2304 = vmatprep.mubr.bf16.mxu1 %v8993_v20  ;;  %v9015_v13 = vpop.f32.mrf.mxu1  ;;  %v2444_v19 = vpack.c.bf16 %v1430_v16, %v1429_v53  ;;  %v1426_v16 = vmax.f32 %v1228_v25, 0.0  ;;  %v1220_v35 = vadd.f32 %v8871_v10, %v11412_v51  ;;  %v2443_v39 = vpack.c.bf16 %v1428_v58, %v1427_v29  ;;  %v9069_v3 = vld [vmem:[%s11103_s2 + $0x1a0] ss:$16 sps:$4 sm:$0xff]   ;;  %v11415_v53 = vld [vmem:[#allocation50_spill] sm:$0xff]  ;;  %v9122_v51 = vld [vmem:[%s11103_s2 + $0x1e4] ss:$16 sps:$4 sm:$0xff]  }
 0x195   :  { %2207 = vmatprep.mubr.bf16.mxu0 %v9004_v33  ;;  %v1445_v52 = vmax.f32 %v1305_v15, 0.0  ;;  %11413 = vst [vmem:[#allocation28_spill] sm:$0xff] %v9069_v3  ;;  %v1411_v15 = vmax.f32 %v1169_v7, 0.0  ;;  %11414 = vst [vmem:[#allocation36_spill] sm:$0xff] %v9077_v61  ;;  %v1217_v10 = vadd.f32 %v8851_v36, %v11415_v53  ;;  %v11420_v36 = vld [vmem:[#allocation52_spill] sm:$0xff]  ;;  %v11421_v25 = vld [vmem:[#allocation59_spill] sm:$0xff] }
 0x196   :  { %v7014_v46 = vpop.f32.mrf.mxu1  ;;  %6332 = vmatpush3.bf16.msra.mxu0 %v2438_v1  ;;  %v1412_v1 = vmax.f32 %v1172_v26, 0.0  ;;  %v9093_v26 = vld [vmem:[%s11103_s2 + $0x1c4] ss:$16 sps:$4 sm:$0xff]   ;;  %v1424_v42 = vmax.f32 %v1220_v35, 0.0  ;;  %v9106_v7 = vld [vmem:[%s11103_s2 + $0x1c0] ss:$16 sps:$4 sm:$0xff]  }
 0x197   :  { %v1308_v24 = vadd.f32 %v7014_v46, %v11404_v8  ;;  %6333 = vmatprep.subr.bf16.mxu0 %v2445_v38  ;;  %v1425_v46 = vmax.f32 %v1225_v49, 0.0  ;;  %v11418_v8 = vld [vmem:[#allocation46_spill] sm:$0xff]  ;;  %11419 = vst [vmem:[#allocation35_spill] sm:$0xff] %v9093_v26  ;;  %11422 = vst [vmem:[#allocation34_spill] sm:$0xff] %v9106_v7  ;;  %v11423_v29 = vld [vmem:[#allocation61_spill] sm:$0xff] }
 0x198   :  { %v9043_v9 = vpop.f32.mrf.mxu1  ;;  %v2435_v40 = vpack.c.bf16 %v1412_v1, %v1411_v15  ;;  %v9112_v1 = vld [vmem:[%s11103_s2 + $0xc8] ss:$16 sps:$4 sm:$0xff]   ;;  %11426 = vst [vmem:[#allocation37_spill] sm:$0xff] %v9122_v51  ;;  %v9135_v53 = vld [vmem:[%s11103_s2 + $0x1e0] ss:$16 sps:$4 sm:$0xff]  }
 0x199   :  { %v1446_v32 = vmax.f32 %v1308_v24, 0.0  ;;  %v1156_v24 = vadd.f32 %v11418_v8, %v11417_v34  ;;  %11424 = vst [vmem:[#allocation38_spill] sm:$0xff] %v9112_v1  ;;  %11427 = vst [vmem:[#allocation62_spill] sm:$0xff] %v9135_v53  ;;  %v9142_v34 = vld [vmem:[%s11103_s2 + $0xe8] ss:$16 sps:$4 sm:$0xff]   ;;  %v11446_v20 = vld [vmem:[#allocation21_spill] sm:$0xff] }
 0x19a   :  { %v9053_v5 = vpop.f32.mrf.mxu1  ;;  %6334 = vmatpush3.bf16.msra.mxu0 %v2437_v6  ;;  %v2442_v6 = vpack.c.bf16 %v1426_v16, %v1425_v46  ;;  %v9117_v16 = vld [vmem:[%s11103_s2 + $0xec] ss:$16 sps:$4 sm:$0xff]   ;;  %11428 = vst [vmem:[#allocation43_spill] sm:$0xff] %v9142_v34 }
 0x19b   :  { %2208 = vmatmul.mubr.bf16.gmra.mxu0 %v9024_v27  ;;  %2305 = vmatmul.mubr.bf16.gmra.mxu1 %v9029_v57  ;;  %v9058_v18 = vpack.c.bf16 %v1446_v32, %v1445_v52  ;;  %v1423_v52 = vmax.f32 %v1217_v10, 0.0  ;;  %v1408_v32 = vmax.f32 %v1156_v24, 0.0  ;;  %11425 = vst [vmem:[#allocation44_spill] sm:$0xff] %v9117_v16  ;;  %v9147_v8 = vld [vmem:[%s11103_s2 + $0x10c] ss:$16 sps:$4 sm:$0xff]   ;;  %v11445_v57 = vld [vmem:[#allocation57_spill] sm:$0xff] }
 0x19c   :  { %6335 = vmatprep.subr.bf16.mxu0 %v2444_v19  ;;  %2312 = vmatprep.mubr.bf16.mxu1 %v9037_v37  ;;  %v9061_v47 = vpop.f32.mrf.mxu1  ;;  %v1153_v19 = vadd.f32 %v11421_v25, %v11420_v36  ;;  %11429 = vst [vmem:[#allocation51_spill] sm:$0xff] %v9147_v8  ;;  %v9166_v25 = vld [vmem:[%s11103_s2 + $0x108] ss:$16 sps:$4 sm:$0xff]  }
 0x19d   :  { %2215 = vmatprep.mubr.bf16.mxu0 %v9048_v62  ;;  %v2441_v17 = vpack.c.bf16 %v1424_v42, %v1423_v52  ;;  %11430 = vst [vmem:[#allocation50_spill] sm:$0xff] %v9166_v25 }
 0x19e   :  { %v9071_v38 = vpop.f32.mrf.mxu1  ;;  %6336 = vmatpush3.bf16.msra.mxu0 %v8776_v44  ;;  %v1407_v14 = vmax.f32 %v1153_v19, 0.0  ;;  %v9171_v19 = vld [vmem:[%s11103_s2 + $0x12c] ss:$16 sps:$4 sm:$0xff]  }
 0x19f   :  { %6337 = vmatprep.subr.bf16.mxu0 %v2443_v39  ;;  %11431 = vst [vmem:[#allocation53_spill] sm:$0xff] %v9171_v19 }
 0x1a0   :  { %v9088_v44 = vpop.f32.mrf.mxu1  ;;  %v2433_v35 = vpack.c.bf16 %v1408_v32, %v1407_v14  ;;  %v11432_v32 = vld [vmem:[#allocation47_spill] sm:$0xff]  ;;  %v11433_v14 = vld [vmem:[#allocation54_spill] sm:$0xff] }
 0x1a2   :  { %v7021_v58 = vpop.f32.mrf.mxu1  ;;  %6338 = vmatpush3.bf16.msra.mxu0 %v2435_v40 }
 0x1a3   :  { %2216 = vmatmul.mubr.bf16.gmra.mxu0 %v9069_v3  ;;  %2313 = vmatmul.mubr.bf16.gmra.mxu1 %v9077_v61  ;;  %v9199_v61 = vld [vmem:[%s11103_s2 + $0x148] ss:$16 sps:$4 sm:$0xff]  }
 0x1a4   :  { %6339 = vmatprep.subr.bf16.mxu0 %v2442_v6  ;;  %2320 = vmatprep.mubr.bf16.mxu1 %v9084_v31  ;;  %v9100_v45 = vpop.f32.mrf.mxu1  ;;  %v7730_v6 = vld [vmem:[%s11103_s2 + $0x4] ss:$16 sps:$4 sm:$0xff]  }
 0x1a5   :  { %2223 = vmatprep.mubr.bf16.mxu0 %v9093_v26 }
 0x1a6   :  { %v7022_v49 = vpop.f32.mrf.mxu1  ;;  %6340 = vmatpush3.bf16.msra.mxu0 %v11423_v29 }
 0x1a7   :  { %6341 = vmatprep.subr.bf16.mxu0 %v2441_v17 }
 0x1a8   :  { %v1331_v39 = vpop.f32.mrf.mxu1 }
 0x1aa   :  { %v9125_v15 = vpop.f32.mrf.mxu1  ;;  %6342 = vmatpush3.bf16.msra.mxu0 %v2433_v35 }
 0x1ab   :  { %2224 = vmatmul.mubr.bf16.gmra.mxu0 %v9106_v7  ;;  %2321 = vmatmul.mubr.bf16.gmra.mxu1 %v9112_v1  ;;  %v11440_v7 = vld [vmem:[#allocation10_spill] sm:$0xff] }
 0x1ac   :  { %2328 = vmatprep.mubr.bf16.mxu1 %v9117_v16  ;;  %2231 = vmatprep.mubr.bf16.mxu0 %v9122_v51  ;;  %v9130_v46 = vpop.f32.mrf.mxu1  ;;  %v11439_v51 = vld [vmem:[#allocation8_spill] sm:$0xff]  ;;  %v1337_v31 = vadd.f32 %v7021_v58, %v11440_v7 }
 0x1ae   :  { %v9137_v10 = vpop.f32.mrf.mxu1  ;;  %v1453_v27 = vmax.f32 %v1337_v31, 0.0 }
 0x1b0   :  { %v9149_v24 = vpop.f32.mrf.mxu1 }
 0x1b2   :  { %v9152_v40 = vpop.f32.mrf.mxu1 }
 0x1b3   :  { %2232 = vmatmul.mubr.bf16.gmra.mxu0 %v9135_v53  ;;  %2329 = vmatmul.mubr.bf16.gmra.mxu1 %v9142_v34  ;;  %v11436_v34 = vld [vmem:[#allocation55_spill] sm:$0xff] }
 0x1b4   :  { %2497 = vmatprep.mubr.bf16.mxu0 %v7730_v6  ;;  %2336 = vmatprep.mubr.bf16.mxu1 %v9147_v8  ;;  %v9159_v42 = vpop.f32.mrf.mxu1  ;;  %v9182_v6 = vld [vmem:[%s11103_s2 + $0x128] ss:$16 sps:$4 sm:$0xff]   ;;  %v9187_v8 = vld [vmem:[%s11103_s2 + $0x14c] ss:$16 sps:$4 sm:$0xff]  }
 0x1b5   :  { %11434 = vst [vmem:[#allocation46_spill] sm:$0xff] %v9182_v6  ;;  %11435 = vst [vmem:[#allocation52_spill] sm:$0xff] %v9187_v8 }
 0x1b6   :  { %v9161_v36 = vpop.f32.mrf.mxu1 }
 0x1b8   :  { %v9173_v52 = vpop.f32.mrf.mxu1 }
 0x1ba   :  { %v7033_v17 = vpop.f32.mrf.mxu1 }
 0x1bb   :  { %2498 = vmatmul.mubr.bf16.vlgmr.msra.gmra.mxu0 %v11432_v32  ;;  %2337 = vmatmul.mubr.bf16.gmra.mxu1 %v9166_v25 }
 0x1bc   :  { %2505 = vmatprep.mubr.bf16.mxu0 %v11433_v14  ;;  %2344 = vmatprep.mubr.bf16.mxu1 %v9171_v19  ;;  %v1376_v29 = vpop.f32.mrf.mxu1  ;;  %v11437_v14 = vld [vmem:[#allocation56_spill] sm:$0xff]  ;;  %v11438_v19 = vld [vmem:[#allocation11_spill] sm:$0xff] }
 0x1bd   :  { %v1340_v53 = vadd.f32 %v7022_v49, %v11438_v19 }
 0x1be   :  { %v7034_v35 = vpop.f32.mrf.mxu1 }
 0x1bf   :  { %v1454_v49 = vmax.f32 %v1340_v53, 0.0 }
 0x1c0   :  { %v1379_v32 = vpop.f32.mrf.mxu1 }
 0x1c2   :  { %v7037_v25 = vpop.f32.mrf.mxu1 }
 0x1c3   :  { %2506 = vmatmul.mubr.bf16.gmra.mxu0 %v11436_v34  ;;  %2345 = vmatmul.mubr.bf16.gmra.mxu1 %v9182_v6  ;;  %v1401_v1 = vadd.f32 %v7037_v25, %v11439_v51  ;;  %v11441_v34 = vld [vmem:[#allocation15_spill] sm:$0xff]  ;;  %v11442_v6 = vld [vmem:[#allocation9_spill] sm:$0xff]  ;;  %v11443_v51 = vld [vmem:[#allocation18_spill] sm:$0xff] }
 0x1c4   :  { %2513 = vmatprep.mubr.bf16.mxu0 %v11437_v14  ;;  %2352 = vmatprep.mubr.bf16.mxu1 %v9187_v8  ;;  %v1392_v16 = vpop.f32.mrf.mxu1  ;;  %v9206_v14 = vld [vmem:[%s11103_s2 + $0x16c] ss:$16 sps:$4 sm:$0xff]   ;;  %v1332_v25 = vadd.f32 %v1331_v39, %v11443_v51  ;;  %v9251_v51 = vld [vmem:[%s11103_s2 + $0x188] ss:$16 sps:$4 sm:$0xff]  }
 0x1c5   :  { %v1393_v3 = vadd.f32 %v1392_v16, %v11441_v34  ;;  %v1469_v58 = vmax.f32 %v1401_v1, 0.0  ;;  %v11444_v8 = vld [vmem:[#allocation16_spill] sm:$0xff]  ;;  %v1388_v16 = vadd.f32 %v7034_v35, %v11446_v20  ;;  %v1385_v1 = vadd.f32 %v7033_v17, %v11357_v48 }
 0x1c6   :  { %v7038_v26 = vpop.f32.mrf.mxu1  ;;  %v1452_v31 = vmax.f32 %v1332_v25, 0.0  ;;  %v11450_v35 = vld [vmem:[#allocation60_spill] sm:$0xff]  ;;  %v11451_v25 = vld [vmem:[#allocation42_spill] sm:$0xff] }
 0x1c7   :  { %v1404_v37 = vadd.f32 %v7038_v26, %v11442_v6  ;;  %v11447_v26 = vld [vmem:[#allocation58_spill] sm:$0xff]  ;;  %v11448_v6 = vld [vmem:[#allocation17_spill] sm:$0xff]  ;;  %v1467_v53 = vmax.f32 %v1393_v3, 0.0  ;;  %v1466_v39 = vmax.f32 %v1388_v16, 0.0  ;;  %v1465_v48 = vmax.f32 %v1385_v1, 0.0 }
 0x1c8   :  { %v1395_v19 = vpop.f32.mrf.mxu1  ;;  %v1329_v34 = vadd.f32 %v9100_v45, %v11448_v6  ;;  %v9224_v3 = vld [vmem:[%s11103_s2 + $0x168] ss:$16 sps:$4 sm:$0xff]   ;;  %v11449_v45 = vld [vmem:[#allocation45_spill] sm:$0xff] }
 0x1c9   :  { %v1470_v7 = vmax.f32 %v1404_v37, 0.0  ;;  %v1396_v62 = vadd.f32 %v1395_v19, %v11444_v8  ;;  %v2456_v37 = vpack.c.bf16 %v1454_v49, %v1453_v27  ;;  %v1380_v8 = vadd.f32 %v1379_v32, %v11358_v55 }
 0x1ca   :  { %v1321_v27 = vadd.f32 %v9053_v5, %v11359_v12  ;;  %v1372_v12 = vadd.f32 %v9161_v36, %v11363_v30  ;;  %v2462_v5 = vpack.c.bf16 %v1466_v39, %v1465_v48  ;;  %v1364_v49 = vadd.f32 %v9173_v52, %v11367_v59  ;;  %v9277_v39 = vld [vmem:[%s11103_s2 + $0x1a8] ss:$16 sps:$4 sm:$0xff]   ;;  %v11460_v48 = vld [vmem:[#allocation27_spill] sm:$0xff] }
 0x1cb   :  { %2514 = vmatmul.mubr.bf16.gmra.mxu0 %v11445_v57  ;;  %2353 = vmatmul.mubr.bf16.gmra.mxu1 %v9199_v61  ;;  %v2464_v33 = vpack.c.bf16 %v1470_v7, %v1469_v58  ;;  %v1468_v43 = vmax.f32 %v1396_v62, 0.0  ;;  %v1324_v57 = vadd.f32 %v9071_v38, %v11356_v50  ;;  %v1451_v62 = vmax.f32 %v1329_v34, 0.0  ;;  %v9231_v50 = vld [vmem:[%s11103_s2 + $0x18c] ss:$16 sps:$4 sm:$0xff]   ;;  %v11452_v58 = vld [vmem:[#allocation29_spill] sm:$0xff]  ;;  %v11454_v34 = vld [vmem:[#allocation63_spill] sm:$0xff] }
 0x1cc   :  { %2521 = vmatprep.mubr.bf16.mxu0 %v11447_v26  ;;  %2360 = vmatprep.mubr.bf16.mxu1 %v9206_v14  ;;  %v1464_v17 = vmax.f32 %v1380_v8, 0.0  ;;  %v1449_v32 = vmax.f32 %v1321_v27, 0.0  ;;  %v1462_v36 = vmax.f32 %v1372_v12, 0.0  ;;  %v1300_v59 = vadd.f32 %v9043_v9, %v11451_v25  ;;  %v11453_v7 = vld [vmem:[#allocation49_spill] sm:$0xff]  ;;  %v11463_v12 = vld [vmem:[#allocation26_spill] sm:$0xff] }
 0x1cd   :  { %6439 = vmatprep.subr.bf16.mxu1 %v2464_v33  ;;  %v2463_v20 = vpack.c.bf16 %v1468_v43, %v1467_v53  ;;  %v1377_v43 = vadd.f32 %v1376_v29, %v11360_v54  ;;  %v1450_v55 = vmax.f32 %v1324_v57, 0.0  ;;  %v1316_v33 = vadd.f32 %v9088_v44, %v11361_v22  ;;  %v11455_v53 = vld [vmem:[#allocation41_spill] sm:$0xff]  ;;  %v7731_v25 = vld [vmem:[%s11103_s2 + $0xc] ss:$16 sps:$4 sm:$0xff]  }
 0x1ce   :  { %6440 = vmatpush3.bf16.msra.mxu1 %v2456_v37  ;;  %v2455_v38 = vpack.c.bf16 %v1452_v31, %v1451_v62  ;;  %v1313_v54 = vadd.f32 %v9061_v47, %v11365_v2  ;;  %v1369_v22 = vadd.f32 %v9152_v40, %v11366_v11  ;;  %v9256_v11 = vld [vmem:[%s11103_s2 + $0x1ac] ss:$16 sps:$4 sm:$0xff]   ;;  %v1361_v40 = vadd.f32 %v9159_v42, %v11368_v4 }
 0x1cf   :  { %6441 = vmatprep.subr.bf16.mxu1 %v2463_v20  ;;  %v1463_v44 = vmax.f32 %v1377_v43, 0.0  ;;  %v2454_v29 = vpack.c.bf16 %v1450_v55, %v1449_v32  ;;  %v1448_v30 = vmax.f32 %v1316_v33, 0.0  ;;  %v1356_v16 = vadd.f32 %v9137_v10, %v11453_v7  ;;  %v11456_v4 = vld [vmem:[#allocation48_spill] sm:$0xff]  ;;  %v11457_v10 = vld [vmem:[#allocation25_spill] sm:$0xff]  ;;  %v11461_v33 = vld [vmem:[#allocation30_spill] sm:$0xff] }
 0x1d0   :  { %v1447_v2 = vmax.f32 %v1313_v54, 0.0  ;;  %v1461_v47 = vmax.f32 %v1369_v22, 0.0  ;;  %v1460_v6 = vmax.f32 %v1364_v49, 0.0  ;;  %v1297_v37 = vadd.f32 %v9015_v13, %v11455_v53  ;;  %v9279_v13 = vpop.permute.xlu1 %1751  ;;  %v11459_v62 = vld [vmem:[#allocation24_spill] sm:$0xff]  ;;  %v9304_v54 = vpop.permute.xlu0 %1756 }
 0x1d1   :  { %v2461_v19 = vpack.c.bf16 %v1464_v17, %v1463_v44  ;;  %v1353_v9 = vadd.f32 %v9125_v15, %v11456_v4  ;;  %v1459_v42 = vmax.f32 %v1361_v40, 0.0  ;;  %v1444_v1 = vmax.f32 %v1300_v59, 0.0  ;;  %11458 = vst [vmem:[#allocation59_spill] sm:$0xff] %v9279_v13  ;;  %v9285_v15 = vld [vmem:[%s11103_s2 + $0x1cc] ss:$16 sps:$4 sm:$0xff]   ;;  %11465 = vst [vmem:[#allocation47_spill] sm:$0xff] %v9304_v54 }
 0x1d2   :  { %6442 = vmatpush3.bf16.msra.mxu1 %v2455_v38  ;;  %v2453_v52 = vpack.c.bf16 %v1448_v30, %v1447_v2  ;;  %v2460_v26 = vpack.c.bf16 %v1462_v36, %v1461_v47  ;;  %v1458_v57 = vmax.f32 %v1356_v16, 0.0  ;;  %v1348_v31 = vadd.f32 %v9149_v24, %v11457_v10  ;;  %v9302_v32 = vld [vmem:[%s11103_s2 + $0x1c8] ss:$16 sps:$4 sm:$0xff]   ;;  %v11473_v40 = vld [vmem:[#allocation31_spill] sm:$0xff] }
 0x1d3   :  { %2522 = vmatmul.mubr.bf16.gmra.mxu0 %v11449_v45  ;;  %2361 = vmatmul.mubr.bf16.gmra.mxu1 %v9224_v3  ;;  %v2459_v20 = vpack.c.bf16 %v1460_v6, %v1459_v42  ;;  %v1443_v8 = vmax.f32 %v1297_v37, 0.0  ;;  %v1457_v27 = vmax.f32 %v1353_v9, 0.0  ;;  %v1345_v24 = vadd.f32 %v9130_v46, %v11459_v62  ;;  %v11468_v36 = vld [vmem:[#allocation22_spill] sm:$0xff]  ;;  %v11471_v2 = vld [vmem:[#allocation32_spill] sm:$0xff]  ;;  %v11477_v16 = vld [vmem:[#allocation39_spill] sm:$0xff] }
 0x1d4   :  { %2529 = vmatprep.mubr.bf16.mxu0 %v11450_v35  ;;  %2368 = vmatprep.mubr.bf16.mxu1 %v9231_v50  ;;  %v1284_v43 = vadd.f32 %v8999_v28, %v11460_v48  ;;  %v1456_v45 = vmax.f32 %v1348_v31, 0.0  ;;  %v9297_v17 = vpop.permute.xlu1 %1671  ;;  %v9318_v49 = vpop.permute.xlu0 %1741  ;;  %v11476_v7 = vld [vmem:[#allocation40_spill] sm:$0xff]  ;;  %v11479_v6 = vld [vmem:[#allocation65_spill] sm:$0xff]  ;;  %v11482_v10 = vld [vmem:[#allocation66_spill] sm:$0xff] }
 0x1d5   :  { %6443 = vmatprep.subr.bf16.mxu1 %v2462_v5  ;;  %v2451_v55 = vpack.c.bf16 %v1444_v1, %v1443_v8  ;;  %v2458_v38 = vpack.c.bf16 %v1458_v57, %v1457_v27  ;;  %v1281_v5 = vadd.f32 %v8972_v41, %v11463_v12  ;;  %v1455_v46 = vmax.f32 %v1345_v24, 0.0  ;;  %11464 = vst [vmem:[#allocation61_spill] sm:$0xff] %v9297_v17  ;;  %v9310_v41 = vld [vmem:[%s11103_s2 + $0x1ec] ss:$16 sps:$4 sm:$0xff]   ;;  %v11483_v31 = vld [vmem:[#allocation67_spill] sm:$0xff]  ;;  %v11486_v27 = vld [vmem:[#allocation69_spill] sm:$0xff] }
 0x1d6   :  { %6444 = vmatpush3.bf16.msra.mxu1 %v2454_v29  ;;  %v1440_v28 = vmax.f32 %v1284_v43, 0.0  ;;  %v11466_v29 = vld [vmem:[#allocation20_spill] sm:$0xff]  ;;  %11469 = vst [vmem:[#allocation55_spill] sm:$0xff] %v9318_v49 }
 0x1d7   :  { %6445 = vmatprep.subr.bf16.mxu1 %v2461_v19  ;;  %v2457_v35 = vpack.c.bf16 %v1456_v45, %v1455_v46  ;;  %v1439_v22 = vmax.f32 %v1281_v5, 0.0  ;;  %v11485_v8 = vld [vmem:[#allocation68_spill] sm:$0xff] }
 0x1d8   :  { %v9314_v30 = vpop.permute.xlu1 %1676  ;;  %v9329_v47 = vpop.permute.xlu0 %1661 }
 0x1d9   :  { %v2449_v44 = vpack.c.bf16 %v1440_v28, %v1439_v22  ;;  %11467 = vst [vmem:[#allocation54_spill] sm:$0xff] %v9314_v30  ;;  %11472 = vst [vmem:[#allocation11_spill] sm:$0xff] %v9329_v47 }
 0x1da   :  { %6446 = vmatpush3.bf16.msra.mxu1 %v2453_v52 }
 0x1db   :  { %2530 = vmatmul.mubr.bf16.gmra.mxu0 %v11452_v58  ;;  %2369 = vmatmul.mubr.bf16.gmra.mxu1 %v9251_v51 }
 0x1dc   :  { %2537 = vmatprep.mubr.bf16.mxu0 %v11454_v34  ;;  %2376 = vmatprep.mubr.bf16.mxu1 %v9256_v11  ;;  %v9325_v19 = vpop.permute.xlu1 %1746  ;;  %v9337_v52 = vpop.permute.xlu0 %1731 }
 0x1dd   :  { %6447 = vmatprep.subr.bf16.mxu1 %v2460_v26  ;;  %11470 = vst [vmem:[#allocation56_spill] sm:$0xff] %v9325_v19  ;;  %11475 = vst [vmem:[#allocation10_spill] sm:$0xff] %v9337_v52  ;;  %v11478_v26 = vld [vmem:[#allocation64_spill] sm:$0xff] }
 0x1de   :  { %6448 = vmatpush3.bf16.msra.mxu1 %v9058_v18  ;;  %v11462_v18 = vld [vmem:[#allocation23_spill] sm:$0xff] }
 0x1df   :  { %6449 = vmatprep.subr.bf16.mxu1 %v2459_v20 }
 0x1e0   :  { %v9335_v59 = vpop.permute.xlu1 %1666  ;;  %v9347_v9 = vpop.permute.xlu0 %1651 }
 0x1e1   :  { %11474 = vst [vmem:[#allocation8_spill] sm:$0xff] %v9335_v59  ;;  %11481 = vst [vmem:[#allocation9_spill] sm:$0xff] %v9347_v9 }
 0x1e2   :  { %6450 = vmatpush3.bf16.msra.mxu1 %v2451_v55 }
 0x1e3   :  { %2538 = vmatmul.mubr.bf16.gmra.mxu0 %v11461_v33  ;;  %2377 = vmatmul.mubr.bf16.gmra.mxu1 %v9277_v39 }
 0x1e4   :  { %2545 = vmatprep.mubr.bf16.mxu0 %v11462_v18  ;;  %2384 = vmatprep.mubr.bf16.mxu1 %v9285_v15  ;;  %v9343_v53 = vpop.permute.xlu1 %1736  ;;  %v9357_v24 = vpop.permute.xlu0 %1721 }
 0x1e5   :  { %6451 = vmatprep.subr.bf16.mxu1 %v2458_v38  ;;  %11480 = vst [vmem:[#allocation15_spill] sm:$0xff] %v9343_v53  ;;  %11487 = vst [vmem:[#allocation16_spill] sm:$0xff] %v9357_v24 }
 0x1e6   :  { %6452 = vmatpush3.bf16.msra.mxu1 %v9012_v63  ;;  %v9323_v63 = vld [vmem:[%s11103_s2 + $0x1e8] ss:$16 sps:$4 sm:$0xff]  }
 0x1e7   :  { %6453 = vmatprep.subr.bf16.mxu1 %v2457_v35 }
 0x1e8   :  { %v9353_v20 = vpop.permute.xlu1 %1656  ;;  %v9367_v18 = vpop.permute.xlu0 %1641 }
 0x1e9   :  { %11484 = vst [vmem:[#allocation18_spill] sm:$0xff] %v9353_v20  ;;  %11489 = vst [vmem:[#allocation21_spill] sm:$0xff] %v9367_v18 }
 0x1ea   :  { %6454 = vmatpush3.bf16.msra.mxu1 %v2449_v44 }
 0x1eb   :  { %2546 = vmatmul.mubr.bf16.gmra.mxu0 %v11466_v29  ;;  %2385 = vmatmul.mubr.bf16.gmra.mxu1 %v9302_v32  ;;  %v11493_v29 = vld [vmem:[#allocation7_spill] sm:$0xff] }
 0x1ec   :  { %2553 = vmatprep.mubr.bf16.mxu0 %v11468_v36  ;;  %2392 = vmatprep.mubr.bf16.mxu1 %v9310_v41  ;;  %v9361_v33 = vpop.permute.xlu1 %1726  ;;  %v9375_v22 = vpop.permute.xlu0 %1711 }
 0x1ed   :  { %11488 = vst [vmem:[#allocation57_spill] sm:$0xff] %v9361_v33  ;;  %11491 = vst [vmem:[#allocation17_spill] sm:$0xff] %v9375_v22  ;;  %v11522_v33 = vld [vmem:[#allocation50_spill] sm:$0xff] }
 0x1f0   :  { %v9373_v28 = vpop.permute.xlu1 %1646 }
 0x1f1   :  { %11490 = vst [vmem:[#allocation58_spill] sm:$0xff] %v9373_v28 }
 0x1f3   :  { %2554 = vmatmul.mubr.bf16.gmra.mxu0 %v11471_v2  ;;  %2393 = vmatmul.mubr.bf16.gmra.mxu1 %v9323_v63 }
 0x1f4   :  { %2561 = vmatprep.mubr.bf16.mxu0 %v11473_v40  ;;  %2658 = vmatprep.mubr.bf16.mxu1 %v7731_v25  ;;  %v9383_v36 = vpop.permute.xlu1 %1716  ;;  %v9387_v25 = vpop.permute.xlu0 %1631 }
 0x1f5   :  { %11495 = vst [vmem:[#allocation45_spill] sm:$0xff] %v9383_v36  ;;  %11496 = vst [vmem:[#allocation60_spill] sm:$0xff] %v9387_v25 }
 0x1fb   :  { %v6119_v58 = vpop.f32.mrf.mxu0  ;;  %2562 = vmatmul.mubr.bf16.gmra.mxu0 %v11476_v7  ;;  %2659 = vmatmul.mubr.bf16.vlgmr.msra.gmra.mxu1 %v11477_v16 }
 0x1fc   :  { %2569 = vmatprep.mubr.bf16.mxu0 %v11478_v26  ;;  %2666 = vmatprep.mubr.bf16.mxu1 %v11479_v6  ;;  %v11497_v26 = vld [vmem:[#allocation12_spill] sm:$0xff]  ;;  %v9393_v6 = vpop.permute.xlu1 %1636 }
 0x1fd   :  { %v6120_v34 = vpop.f32.mrf.mxu0  ;;  %11499 = vst [vmem:[#allocation42_spill] sm:$0xff] %v9393_v6 }
 0x1fe   :  { %v9345_v37 = vadd.f32 %v6120_v34, %v6119_v58  ;;  %v11500_v34 = vld [vmem:[#allocation14_spill] sm:$0xff] }
 0x1ff   :  { %v6122_v4 = vpop.f32.mrf.mxu0 }
 0x201   :  { %v6123_v42 = vpop.f32.mrf.mxu0 }
 0x202   :  { %v9349_v1 = vadd.f32 %v6123_v42, %v6122_v4  ;;  %v11501_v4 = vld [vmem:[#allocation13_spill] sm:$0xff] }
 0x203   :  { %v6125_v57 = vpop.f32.mrf.mxu0  ;;  %2570 = vmatmul.mubr.bf16.gmra.mxu0 %v11482_v10  ;;  %2667 = vmatmul.mubr.bf16.gmra.mxu1 %v11483_v31 }
 0x204   :  { %2577 = vmatprep.mubr.bf16.mxu0 %v11485_v8  ;;  %2674 = vmatprep.mubr.bf16.mxu1 %v11486_v27  ;;  %v9405_v27 = vpop.permute.xlu1 %1706 }
 0x205   :  { %v6126_v62 = vpop.f32.mrf.mxu0  ;;  %11503 = vst [vmem:[#allocation49_spill] sm:$0xff] %v9405_v27 }
 0x206   :  { %v9359_v48 = vadd.f32 %v6126_v62, %v6125_v57  ;;  %v9397_v57 = vpop.permute.xlu0 %1701 }
 0x207   :  { %v6128_v43 = vpop.f32.mrf.mxu0  ;;  %11502 = vst [vmem:[#allocation29_spill] sm:$0xff] %v9397_v57 }
 0x209   :  { %v6129_v55 = vpop.f32.mrf.mxu0 }
 0x20a   :  { %v9363_v38 = vadd.f32 %v6129_v55, %v6128_v43  ;;  %v11504_v43 = vld [vmem:[#allocation28_spill] sm:$0xff] }
 0x20b   :  { %v6131_v45 = vpop.f32.mrf.mxu0  ;;  %2578 = vmatmul.mubr.bf16.gmra.mxu0 %v8938_v56  ;;  %2675 = vmatmul.mubr.bf16.gmra.mxu1 %v8945_v23  ;;  %v11492_v23 = vld [vmem:[#allocation6_spill] sm:$0xff]  ;;  %v11505_v55 = vld [vmem:[#allocation36_spill] sm:$0xff] }
 0x20c   :  { %2585 = vmatprep.mubr.bf16.mxu0 %v8950_v60  ;;  %2682 = vmatprep.mubr.bf16.mxu1 %v8957_v0  ;;  %v11494_v60 = vld [vmem:[#allocation5_spill] sm:$0xff] }
 0x20d   :  { %v6132_v12 = vpop.f32.mrf.mxu0 }
 0x20e   :  { %v9371_v5 = vadd.f32 %v6132_v12, %v6131_v45  ;;  %v9409_v45 = vpop.permute.xlu0 %1621  ;;  %v11507_v12 = vld [vmem:[#allocation35_spill] sm:$0xff] }
 0x20f   :  { %v6134_v46 = vpop.f32.mrf.mxu0  ;;  %11506 = vst [vmem:[#allocation63_spill] sm:$0xff] %v9409_v45 }
 0x211   :  { %v6135_v35 = vpop.f32.mrf.mxu0 }
 0x212   :  { %v9377_v44 = vadd.f32 %v6135_v35, %v6134_v46  ;;  %v11508_v46 = vld [vmem:[#allocation33_spill] sm:$0xff] }
 0x213   :  { %v6137_v56 = vpop.f32.mrf.mxu0  ;;  %2586 = vmatmul.mubr.bf16.gmra.mxu0 %v8979_v21  ;;  %2683 = vmatmul.mubr.bf16.gmra.mxu1 %v11492_v23  ;;  %v11498_v21 = vld [vmem:[#allocation19_spill] sm:$0xff] }
 0x214   :  { %2593 = vmatprep.mubr.bf16.mxu0 %v11493_v29  ;;  %2690 = vmatprep.mubr.bf16.mxu1 %v11494_v60  ;;  %v9417_v29 = vpop.permute.xlu1 %1626 }
 0x215   :  { %v6138_v0 = vpop.f32.mrf.mxu0  ;;  %11509 = vst [vmem:[#allocation41_spill] sm:$0xff] %v9417_v29 }
 0x216   :  { %v9385_v2 = vadd.f32 %v6138_v0, %v6137_v56  ;;  %v9421_v0 = vpop.permute.xlu0 %1691 }
 0x217   :  { %v6140_v40 = vpop.f32.mrf.mxu0  ;;  %11510 = vst [vmem:[#allocation48_spill] sm:$0xff] %v9421_v0 }
 0x219   :  { %v6141_v58 = vpop.f32.mrf.mxu0 }
 0x21a   :  { %v9389_v7 = vadd.f32 %v6141_v58, %v6140_v40  ;;  %v11511_v58 = vld [vmem:[#allocation34_spill] sm:$0xff] }
 0x21b   :  { %v6143_v16 = vpop.f32.mrf.mxu0  ;;  %2594 = vmatmul.mubr.bf16.gmra.mxu0 %v11497_v26  ;;  %2691 = vmatmul.mubr.bf16.gmra.mxu1 %v11498_v21  ;;  %v11513_v26 = vld [vmem:[#allocation37_spill] sm:$0xff]  ;;  %v11514_v21 = vld [vmem:[#allocation44_spill] sm:$0xff] }
 0x21c   :  { %2601 = vmatprep.mubr.bf16.mxu0 %v11500_v34  ;;  %2698 = vmatprep.mubr.bf16.mxu1 %v11501_v4  ;;  %v9427_v4 = vpop.permute.xlu1 %1696 }
 0x21d   :  { %v6144_v42 = vpop.f32.mrf.mxu0  ;;  %11515 = vst [vmem:[#allocation25_spill] sm:$0xff] %v9427_v4 }
 0x21e   :  { %v9399_v10 = vadd.f32 %v6144_v42, %v6143_v16  ;;  %v11512_v16 = vld [vmem:[#allocation38_spill] sm:$0xff] }
 0x21f   :  { %v9401_v31 = vpop.f32.mrf.mxu0 }
 0x221   :  { %v9403_v8 = vpop.f32.mrf.mxu0 }
 0x223   :  { %v6149_v62 = vpop.f32.mrf.mxu0  ;;  %2602 = vmatmul.mubr.bf16.gmra.mxu0 %v11504_v43  ;;  %2699 = vmatmul.mubr.bf16.gmra.mxu1 %v11505_v55  ;;  %v9433_v43 = vpop.permute.xlu0 %1611 }
 0x224   :  { %2609 = vmatprep.mubr.bf16.mxu0 %v11507_v12  ;;  %2706 = vmatprep.mubr.bf16.mxu1 %v11508_v46  ;;  %v11516_v46 = vld [vmem:[#allocation62_spill] sm:$0xff] }
 0x225   :  { %v6150_v35 = vpop.f32.mrf.mxu0 }
 0x226   :  { %v9413_v56 = vadd.f32 %v6150_v35, %v6149_v62  ;;  %v9438_v35 = vpop.permute.xlu1 %1616 }
 0x227   :  { %v9415_v23 = vpop.f32.mrf.mxu0 }
 0x229   :  { %v9419_v60 = vpop.f32.mrf.mxu0 }
 0x22a   :  { %v9450_v36 = vpop.permute.xlu1 %1686 }
 0x22b   :  { %v6155_v40 = vpop.f32.mrf.mxu0  ;;  %2610 = vmatmul.mubr.bf16.gmra.mxu0 %v11511_v58  ;;  %2707 = vmatmul.mubr.bf16.gmra.mxu1 %v11512_v16  ;;  %v11517_v58 = vld [vmem:[#allocation43_spill] sm:$0xff]  ;;  %11520 = vst [vmem:[#allocation27_spill] sm:$0xff] %v9450_v36 }
 0x22c   :  { %2617 = vmatprep.mubr.bf16.mxu0 %v11513_v26  ;;  %2714 = vmatprep.mubr.bf16.mxu1 %v11514_v21  ;;  %v11518_v16 = vld [vmem:[#allocation51_spill] sm:$0xff]  ;;  %v9442_v21 = vpop.permute.xlu0 %1681 }
 0x22d   :  { %v6156_v34 = vpop.f32.mrf.mxu0  ;;  %11519 = vst [vmem:[#allocation24_spill] sm:$0xff] %v9442_v21 }
 0x22e   :  { %v9429_v42 = vadd.f32 %v6156_v34, %v6155_v40  ;;  %v9462_v49 = vpop.permute.xlu1 %1606 }
 0x22f   :  { %v9431_v62 = vpop.f32.mrf.mxu0 }
 0x230   :  { %v9452_v24 = vpop.permute.xlu0 %1601 }
 0x231   :  { %v9435_v55 = vpop.f32.mrf.mxu0  ;;  %11521 = vst [vmem:[#allocation30_spill] sm:$0xff] %v9452_v24 }
 0x233   :  { %v6161_v12 = vpop.f32.mrf.mxu0  ;;  %2618 = vmatmul.mubr.bf16.gmra.mxu0 %v11516_v46  ;;  %2715 = vmatmul.mubr.bf16.gmra.mxu1 %v11517_v58  ;;  %v11523_v58 = vld [vmem:[#allocation53_spill] sm:$0xff] }
 0x234   :  { %2722 = vmatprep.mubr.bf16.mxu1 %v11518_v16 }
 0x235   :  { %v6162_v26 = vpop.f32.mrf.mxu0 }
 0x236   :  { %v9444_v40 = vadd.f32 %v6162_v26, %v6161_v12  ;;  %v2114_v12 = vadd.f32 %v9345_v37, %v9452_v24  ;;  %v11528_v37 = vld [vmem:[#allocation52_spill] sm:$0xff] }
 0x237   :  { %v9446_v34 = vpop.f32.mrf.mxu0 }
 0x239   :  { %v9448_v27 = vpop.f32.mrf.mxu0 }
 0x23b   :  { %v6167_v22 = vpop.f32.mrf.mxu0  ;;  %v6231_v46 = vpop.f32.mrf.mxu1  ;;  %2723 = vmatmul.mubr.bf16.gmra.mxu1 %v11522_v33  ;;  %v2117_v33 = vadd.f32 %v9349_v1, %v9462_v49 }
 0x23c   :  { %2730 = vmatprep.mubr.bf16.mxu1 %v11523_v58 }
 0x23d   :  { %v6168_v16 = vpop.f32.mrf.mxu0  ;;  %v6232_v53 = vpop.f32.mrf.mxu1 }
 0x23e   :  { %v9456_v52 = vadd.f32 %v6168_v16, %v6167_v22  ;;  %v6233_v26 = vadd.f32 %v6232_v53, %v6231_v46  ;;  %v11527_v16 = vld [vmem:[#allocation46_spill] sm:$0xff] }
 0x23f   :  { %v9460_v54 = vpop.f32.mrf.mxu0  ;;  %v6234_v13 = vpop.f32.mrf.mxu1 }
 0x240   :  { %11524 = vst [vmem:[#allocation23_spill] sm:$0xff] %v9456_v52  ;;  %11525 = vst [vmem:[#allocation26_spill] sm:$0xff] %v9460_v54  ;;  %v2275_v19 = vadd.f32 %v6233_v26, %v2114_v12  ;;  %v2122_v12 = vadd.f32 %v9359_v48, %v9433_v43 }
 0x241   :  { %v9464_v57 = vpop.f32.mrf.mxu0  ;;  %v6235_v4 = vpop.f32.mrf.mxu1 }
 0x242   :  { %11526 = vst [vmem:[#allocation20_spill] sm:$0xff] %v9464_v57  ;;  %v6236_v58 = vadd.f32 %v6235_v4, %v6234_v13  ;;  %v2401_v26 = vmax.f32 %v2275_v19, 0.0 }
 0x243   :  { %v6173_v0 = vpop.f32.mrf.mxu0  ;;  %v6237_v22 = vpop.f32.mrf.mxu1  ;;  %2731 = vmatmul.mubr.bf16.gmra.mxu1 %v11527_v16 }
 0x244   :  { %v2278_v36 = vadd.f32 %v6236_v58, %v2117_v33  ;;  %2738 = vmatprep.mubr.bf16.mxu1 %v11528_v37  ;;  %v2125_v58 = vadd.f32 %v9363_v38, %v9438_v35 }
 0x245   :  { %v6174_v53 = vpop.f32.mrf.mxu0  ;;  %v6238_v46 = vpop.f32.mrf.mxu1 }
 0x246   :  { %v9470_v24 = vadd.f32 %v6174_v53, %v6173_v0  ;;  %v2402_v57 = vmax.f32 %v2278_v36, 0.0  ;;  %v6239_v54 = vadd.f32 %v6238_v46, %v6237_v22 }
 0x247   :  { %v9474_v52 = vpop.f32.mrf.mxu0  ;;  %v6240_v13 = vpop.f32.mrf.mxu1 }
 0x248   :  { %v9476_v1 = vpack.c.bf16 %v2402_v57, %v2401_v26  ;;  %v2283_v4 = vadd.f32 %v6239_v54, %v2122_v12  ;;  %v2130_v54 = vadd.f32 %v9371_v5, %v9409_v45 }
 0x249   :  { %v9478_v16 = vpop.f32.mrf.mxu0  ;;  %v6241_v33 = vpop.f32.mrf.mxu1 }
 0x24a   :  { %11529 = vst [vmem:[#allocation22_spill] sm:$0xff] %v9476_v1  ;;  %v6242_v0 = vadd.f32 %v6241_v33, %v6240_v13  ;;  %v2403_v57 = vmax.f32 %v2283_v4, 0.0 }
 0x24b   :  { %v9482_v37 = vpop.f32.mrf.mxu0  ;;  %v6243_v53 = vpop.f32.mrf.mxu1  ;;  %2739 = vmatmul.mubr.bf16.gmra.mxu1 %v9199_v61 }
 0x24c   :  { %v2286_v19 = vadd.f32 %v6242_v0, %v2125_v58  ;;  %2746 = vmatprep.mubr.bf16.mxu1 %v9206_v14  ;;  %v2133_v14 = vadd.f32 %v9377_v44, %v9417_v29 }
 0x24d   :  { %v9486_v48 = vpop.f32.mrf.mxu0  ;;  %v6244_v36 = vpop.f32.mrf.mxu1 }
 0x24e   :  { %v2404_v22 = vmax.f32 %v2286_v19, 0.0  ;;  %v6245_v46 = vadd.f32 %v6244_v36, %v6243_v53  ;;  %v2138_v19 = vadd.f32 %v9385_v2, %v9387_v25 }
 0x24f   :  { %v9490_v12 = vpop.f32.mrf.mxu0  ;;  %v6246_v38 = vpop.f32.mrf.mxu1 }
 0x250   :  { %v9492_v26 = vpack.c.bf16 %v2404_v22, %v2403_v57  ;;  %v2291_v13 = vadd.f32 %v6245_v46, %v2130_v54 }
 0x251   :  { %v9494_v33 = vpop.f32.mrf.mxu0  ;;  %v6247_v61 = vpop.f32.mrf.mxu1 }
 0x252   :  { %11530 = vst [vmem:[#allocation32_spill] sm:$0xff] %v9492_v26  ;;  %v6248_v58 = vadd.f32 %v6247_v61, %v6246_v38  ;;  %v2405_v36 = vmax.f32 %v2291_v13, 0.0  ;;  %v2146_v13 = vadd.f32 %v9399_v10, %v9367_v18  ;;  %v11539_v18 = vld [vmem:[#allocation48_spill] sm:$0xff] }
 0x253   :  { %v9498_v0 = vpop.f32.mrf.mxu0  ;;  %v6249_v1 = vpop.f32.mrf.mxu1  ;;  %2747 = vmatmul.mubr.bf16.gmra.mxu1 %v9224_v3 }
 0x254   :  { %v2294_v5 = vadd.f32 %v6248_v58, %v2133_v14  ;;  %2754 = vmatprep.mubr.bf16.mxu1 %v9231_v50  ;;  %v2141_v50 = vadd.f32 %v9389_v7, %v9393_v6 }
 0x255   :  { %v9502_v4 = vpop.f32.mrf.mxu0  ;;  %v6250_v53 = vpop.f32.mrf.mxu1 }
 0x256   :  { %v2406_v54 = vmax.f32 %v2294_v5, 0.0  ;;  %v6251_v57 = vadd.f32 %v6250_v53, %v6249_v1 }
 0x257   :  { %v9506_v22 = vpop.f32.mrf.mxu0  ;;  %v6252_v44 = vpop.f32.mrf.mxu1 }
 0x258   :  { %v9508_v46 = vpack.c.bf16 %v2406_v54, %v2405_v36  ;;  %v2299_v38 = vadd.f32 %v6251_v57, %v2138_v19  ;;  %v6148_v19 = vadd.f32 %v9403_v8, %v9401_v31 }
 0x259   :  { %v9510_v61 = vpop.f32.mrf.mxu0  ;;  %v6253_v3 = vpop.f32.mrf.mxu1 }
 0x25a   :  { %11531 = vst [vmem:[#allocation31_spill] sm:$0xff] %v9508_v46  ;;  %v6254_v14 = vadd.f32 %v6253_v3, %v6252_v44  ;;  %v2407_v53 = vmax.f32 %v2299_v38, 0.0 }
 0x25b   :  { %v9514_v58 = vpop.f32.mrf.mxu0  ;;  %v6255_v26 = vpop.f32.mrf.mxu1  ;;  %2755 = vmatmul.mubr.bf16.gmra.mxu1 %v9251_v51 }
 0x25c   :  { %v2302_v2 = vadd.f32 %v6254_v14, %v2141_v50  ;;  %2762 = vmatprep.mubr.bf16.mxu1 %v9256_v11  ;;  %v2149_v50 = vadd.f32 %v6148_v19, %v9373_v28 }
 0x25d   :  { %v9518_v1 = vpop.f32.mrf.mxu0  ;;  %v6256_v5 = vpop.f32.mrf.mxu1 }
 0x25e   :  { %v2408_v7 = vmax.f32 %v2302_v2, 0.0  ;;  %v6257_v36 = vadd.f32 %v6256_v5, %v6255_v26  ;;  %v2154_v26 = vadd.f32 %v9413_v56, %v9347_v9  ;;  %v6154_v5 = vadd.f32 %v9419_v60, %v9415_v23 }
 0x25f   :  { %v9524_v54 = vpop.f32.mrf.mxu0  ;;  %v6258_v57 = vpop.f32.mrf.mxu1 }
 0x260   :  { %v9526_v44 = vpack.c.bf16 %v2408_v7, %v2407_v53  ;;  %v2307_v51 = vadd.f32 %v6257_v36, %v2146_v13 }
 0x261   :  { %v9528_v3 = vpop.f32.mrf.mxu0  ;;  %v6259_v11 = vpop.f32.mrf.mxu1 }
 0x262   :  { %11532 = vst [vmem:[#allocation40_spill] sm:$0xff] %v9526_v44  ;;  %v6260_v14 = vadd.f32 %v6259_v11, %v6258_v57  ;;  %v2409_v13 = vmax.f32 %v2307_v51, 0.0 }
 0x263   :  { %v9531_v10 = vpop.f32.mrf.mxu0  ;;  %v6261_v38 = vpop.f32.mrf.mxu1  ;;  %2763 = vmatmul.mubr.bf16.gmra.mxu1 %v9277_v39 }
 0x264   :  { %v2310_v31 = vadd.f32 %v6260_v14, %v2149_v50  ;;  %2770 = vmatprep.mubr.bf16.mxu1 %v9285_v15  ;;  %v2157_v50 = vadd.f32 %v6154_v5, %v9353_v20 }
 0x265   :  { %v9535_v8 = vpop.f32.mrf.mxu0  ;;  %v6262_v2 = vpop.f32.mrf.mxu1 }
 0x266   :  { %v2410_v53 = vmax.f32 %v2310_v31, 0.0  ;;  %v6263_v19 = vadd.f32 %v6262_v2, %v6261_v38  ;;  %v2162_v38 = vadd.f32 %v9429_v42, %v9329_v47  ;;  %v6160_v2 = vadd.f32 %v9435_v55, %v9431_v62 }
 0x267   :  { %v9541_v7 = vpop.f32.mrf.mxu0  ;;  %v6264_v36 = vpop.f32.mrf.mxu1 }
 0x268   :  { %v9543_v57 = vpack.c.bf16 %v2410_v53, %v2409_v13  ;;  %v2315_v39 = vadd.f32 %v6263_v19, %v2154_v26 }
 0x269   :  { %v9545_v11 = vpop.f32.mrf.mxu0  ;;  %v6265_v15 = vpop.f32.mrf.mxu1 }
 0x26a   :  { %11533 = vst [vmem:[#allocation39_spill] sm:$0xff] %v9543_v57  ;;  %v6266_v14 = vadd.f32 %v6265_v15, %v6264_v36  ;;  %v2411_v26 = vmax.f32 %v2315_v39, 0.0 }
 0x26b   :  { %v9548_v56 = vpop.f32.mrf.mxu0  ;;  %v6267_v51 = vpop.f32.mrf.mxu1  ;;  %2771 = vmatmul.mubr.bf16.gmra.mxu1 %v9302_v32 }
 0x26c   :  { %v2318_v23 = vadd.f32 %v6266_v14, %v2157_v50  ;;  %2778 = vmatprep.mubr.bf16.mxu1 %v9310_v41  ;;  %v2165_v50 = vadd.f32 %v6160_v2, %v9335_v59 }
 0x26d   :  { %v9552_v60 = vpop.f32.mrf.mxu0  ;;  %v6268_v31 = vpop.f32.mrf.mxu1 }
 0x26e   :  { %v2412_v13 = vmax.f32 %v2318_v23, 0.0  ;;  %v6269_v5 = vadd.f32 %v6268_v31, %v6267_v51  ;;  %v2170_v51 = vadd.f32 %v9444_v40, %v9297_v17 }
 0x26f   :  { %v9558_v53 = vpop.f32.mrf.mxu0  ;;  %v6270_v19 = vpop.f32.mrf.mxu1 }
 0x270   :  { %v9560_v36 = vpack.c.bf16 %v2412_v13, %v2411_v26  ;;  %v2323_v32 = vadd.f32 %v6269_v5, %v2162_v38  ;;  %v6166_v38 = vadd.f32 %v9448_v27, %v9446_v34  ;;  %v11535_v27 = vld [vmem:[#allocation23_spill] sm:$0xff] }
 0x271   :  { %v9562_v15 = vpop.f32.mrf.mxu0  ;;  %v6271_v41 = vpop.f32.mrf.mxu1  ;;  %v2178_v34 = vadd.f32 %v11535_v27, %v9442_v21 }
 0x272   :  { %11534 = vst [vmem:[#allocation64_spill] sm:$0xff] %v9560_v36  ;;  %v6272_v14 = vadd.f32 %v6271_v41, %v6270_v19  ;;  %v2413_v31 = vmax.f32 %v2323_v32, 0.0 }
 0x273   :  { %v9565_v42 = vpop.f32.mrf.mxu0  ;;  %v6273_v39 = vpop.f32.mrf.mxu1  ;;  %2779 = vmatmul.mubr.bf16.gmra.mxu1 %v9323_v63 }
 0x274   :  { %v2326_v62 = vadd.f32 %v6272_v14, %v2165_v50  ;;  %v2173_v14 = vadd.f32 %v6166_v38, %v9314_v30  ;;  %v11538_v30 = vld [vmem:[#allocation27_spill] sm:$0xff] }
 0x275   :  { %v9568_v55 = vpop.f32.mrf.mxu0  ;;  %v6274_v23 = vpop.f32.mrf.mxu1 }
 0x276   :  { %v2414_v26 = vmax.f32 %v2326_v62, 0.0  ;;  %v6275_v13 = vadd.f32 %v6274_v23, %v6273_v39 }
 0x277   :  { %v9574_v2 = vpop.f32.mrf.mxu0  ;;  %v6276_v5 = vpop.f32.mrf.mxu1 }
 0x278   :  { %v9576_v19 = vpack.c.bf16 %v2414_v26, %v2413_v31  ;;  %v2331_v41 = vadd.f32 %v6275_v13, %v2170_v51  ;;  %v11536_v31 = vld [vmem:[#allocation26_spill] sm:$0xff]  ;;  %v11537_v26 = vld [vmem:[#allocation20_spill] sm:$0xff] }
 0x279   :  { %v9578_v63 = vpop.f32.mrf.mxu0  ;;  %v6277_v50 = vpop.f32.mrf.mxu1  ;;  %v6172_v51 = vadd.f32 %v11537_v26, %v11536_v31 }
 0x27a   :  { %v6278_v59 = vadd.f32 %v6277_v50, %v6276_v5  ;;  %v2415_v23 = vmax.f32 %v2331_v41, 0.0 }
 0x27b   :  { %v6343_v40 = vpop.f32.mrf.mxu0  ;;  %v6279_v17 = vpop.f32.mrf.mxu1  ;;  %v2181_v27 = vadd.f32 %v6172_v51, %v11538_v30 }
 0x27c   :  { %v2334_v32 = vadd.f32 %v6278_v59, %v2173_v14 }
 0x27d   :  { %v6344_v47 = vpop.f32.mrf.mxu0  ;;  %v6280_v39 = vpop.f32.mrf.mxu1 }
 0x27e   :  { %v9583_v62 = vadd.f32 %v6344_v47, %v6343_v40  ;;  %v2416_v13 = vmax.f32 %v2334_v32, 0.0  ;;  %v6281_v20 = vadd.f32 %v6280_v39, %v6279_v17  ;;  %v2186_v32 = vadd.f32 %v9470_v24, %v11539_v18 }
 0x27f   :  { %v9587_v9 = vpop.f32.mrf.mxu0  ;;  %v6282_v38 = vpop.f32.mrf.mxu1 }
 0x280   :  { %v9589_v5 = vpack.c.bf16 %v2416_v13, %v2415_v23  ;;  %v2339_v50 = vadd.f32 %v6281_v20, %v2178_v34  ;;  %v6178_v20 = vadd.f32 %v9478_v16, %v9474_v52 }
 0x281   :  { %v9591_v59 = vpop.f32.mrf.mxu0  ;;  %v6283_v14 = vpop.f32.mrf.mxu1 }
 0x282   :  { %v6284_v21 = vadd.f32 %v6283_v14, %v6282_v38  ;;  %v2417_v31 = vmax.f32 %v2339_v50, 0.0 }
 0x283   :  { %v6349_v47 = vpop.f32.mrf.mxu0  ;;  %v6285_v40 = vpop.f32.mrf.mxu1 }
 0x284   :  { %v2342_v41 = vadd.f32 %v6284_v21, %v2181_v27  ;;  %v11541_v27 = vld [vmem:[#allocation25_spill] sm:$0xff] }
 0x285   :  { %v6350_v28 = vpop.f32.mrf.mxu0  ;;  %v6286_v17 = vpop.f32.mrf.mxu1  ;;  %v2189_v24 = vadd.f32 %v6178_v20, %v11541_v27 }
 0x286   :  { %v9596_v39 = vadd.f32 %v6350_v28, %v6349_v47  ;;  %v2418_v34 = vmax.f32 %v2342_v41, 0.0  ;;  %v6287_v23 = vadd.f32 %v6286_v17, %v6285_v40  ;;  %v6181_v28 = vadd.f32 %v9486_v48, %v9482_v37  ;;  %v11543_v17 = vld [vmem:[#allocation29_spill] sm:$0xff] }
 0x287   :  { %v9600_v26 = vpop.f32.mrf.mxu0  ;;  %v6288_v51 = vpop.f32.mrf.mxu1 }
 0x288   :  { %v2347_v13 = vadd.f32 %v6287_v23, %v2186_v32  ;;  %v9604_v21 = vpack.c.bf16 %v2418_v34, %v2417_v31  ;;  %v2194_v32 = vadd.f32 %v6181_v28, %v11543_v17 }
 0x289   :  { %v9602_v38 = vpop.f32.mrf.mxu0  ;;  %v6289_v14 = vpop.f32.mrf.mxu1 }
 0x28a   :  { %11540 = vst [vmem:[#allocation65_spill] sm:$0xff] %v9604_v21  ;;  %v6290_v50 = vadd.f32 %v6289_v14, %v6288_v51  ;;  %v2419_v23 = vmax.f32 %v2347_v13, 0.0 }
 0x28b   :  { %v6355_v47 = vpop.f32.mrf.mxu0  ;;  %v6291_v18 = vpop.f32.mrf.mxu1 }
 0x28c   :  { %v2350_v52 = vadd.f32 %v6290_v50, %v2189_v24 }
 0x28d   :  { %v6356_v16 = vpop.f32.mrf.mxu0  ;;  %v6292_v40 = vpop.f32.mrf.mxu1 }
 0x28e   :  { %v9609_v41 = vadd.f32 %v6356_v16, %v6355_v47  ;;  %v2420_v30 = vmax.f32 %v2350_v52, 0.0  ;;  %v6293_v31 = vadd.f32 %v6292_v40, %v6291_v18 }
 0x28f   :  { %v9612_v34 = vpop.f32.mrf.mxu0  ;;  %v9614_v21 = vpop.f32.mrf.mxu1 }
 0x290   :  { %11542 = vst [vmem:[#allocation66_spill] sm:$0xff] %v9609_v41  ;;  %11544 = vst [vmem:[#allocation67_spill] sm:$0xff] %v9612_v34  ;;  %v9616_v20 = vadd.f32 %v6293_v31, %v2194_v32  ;;  %v9620_v48 = vpack.c.bf16 %v2420_v30, %v2419_v23  ;;  %v6205_v41 = vadd.f32 %v9552_v60, %v9548_v56  ;;  %v11562_v56 = vld [vmem:[#allocation59_spill] sm:$0xff] }
 0x291   :  { %v9618_v37 = vpop.f32.mrf.mxu0  ;;  %v9622_v51 = vpop.f32.mrf.mxu1 }
 0x292   :  { %11545 = vst [vmem:[#allocation68_spill] sm:$0xff] %v9616_v20  ;;  %11546 = vst [vmem:[#allocation69_spill] sm:$0xff] %v9618_v37 }
 0x293   :  { %11547 = vst [vmem:[#allocation6_spill] sm:$0xff] %v9620_v48  ;;  %v6361_v14 = vpop.f32.mrf.mxu0  ;;  %v9624_v24 = vpop.f32.mrf.mxu1 }
 0x295   :  { %v6362_v50 = vpop.f32.mrf.mxu0  ;;  %v9626_v28 = vpop.f32.mrf.mxu1 }
 0x296   :  { %v9628_v13 = vadd.f32 %v6362_v50, %v6361_v14 }
 0x297   :  { %v9630_v18 = vpop.f32.mrf.mxu0  ;;  %v9632_v47 = vpop.f32.mrf.mxu1 }
 0x298   :  { %11548 = vst [vmem:[#allocation7_spill] sm:$0xff] %v9628_v13  ;;  %11549 = vst [vmem:[#allocation5_spill] sm:$0xff] %v9630_v18 }
 0x299   :  { %v9634_v52 = vpop.f32.mrf.mxu0  ;;  %v9636_v16 = vpop.f32.mrf.mxu1 }
 0x29a   :  { %11550 = vst [vmem:[#allocation12_spill] sm:$0xff] %v9634_v52 }
 0x29b   :  { %v6367_v30 = vpop.f32.mrf.mxu0  ;;  %v9638_v40 = vpop.f32.mrf.mxu1 }
 0x29d   :  { %v6368_v32 = vpop.f32.mrf.mxu0  ;;  %v9640_v23 = vpop.f32.mrf.mxu1 }
 0x29e   :  { %v9642_v31 = vadd.f32 %v6368_v32, %v6367_v30 }
 0x29f   :  { %v9644_v17 = vpop.f32.mrf.mxu0  ;;  %v6306_v14 = vpop.f32.mrf.mxu1 }
 0x2a0   :  { %11551 = vst [vmem:[#allocation19_spill] sm:$0xff] %v9642_v31  ;;  %11552 = vst [vmem:[#allocation14_spill] sm:$0xff] %v9644_v17 }
 0x2a1   :  { %v9646_v50 = vpop.f32.mrf.mxu0  ;;  %v6307_v27 = vpop.f32.mrf.mxu1 }
 0x2a2   :  { %11553 = vst [vmem:[#allocation13_spill] sm:$0xff] %v9646_v50 }
 0x2a3   :  { %v6373_v6 = vpop.f32.mrf.mxu0  ;;  %v6309_v48 = vpop.f32.mrf.mxu1 }
 0x2a5   :  { %v6374_v46 = vpop.f32.mrf.mxu0  ;;  %v6310_v52 = vpop.f32.mrf.mxu1 }
 0x2a6   :  { %v9648_v18 = vadd.f32 %v6374_v46, %v6373_v6 }
 0x2a7   :  { %v9650_v13 = vpop.f32.mrf.mxu0  ;;  %v6312_v25 = vpop.f32.mrf.mxu1 }
 0x2a8   :  { %11554 = vst [vmem:[#allocation28_spill] sm:$0xff] %v9648_v18  ;;  %11555 = vst [vmem:[#allocation36_spill] sm:$0xff] %v9650_v13  ;;  %v6208_v13 = vadd.f32 %v9562_v15, %v9558_v53  ;;  %v6199_v53 = vadd.f32 %v9535_v8, %v9531_v10  ;;  %v6202_v15 = vadd.f32 %v9545_v11, %v9541_v7  ;;  %v11564_v10 = vld [vmem:[#allocation47_spill] sm:$0xff] }
 0x2a9   :  { %v9652_v44 = vpop.f32.mrf.mxu0  ;;  %v6313_v29 = vpop.f32.mrf.mxu1 }
 0x2aa   :  { %11556 = vst [vmem:[#allocation35_spill] sm:$0xff] %v9652_v44  ;;  %v6211_v44 = vadd.f32 %v9568_v55, %v9565_v42  ;;  %v11561_v55 = vld [vmem:[#allocation56_spill] sm:$0xff] }
 0x2ab   :  { %v6379_v30 = vpop.f32.mrf.mxu0  ;;  %v6315_v32 = vpop.f32.mrf.mxu1  ;;  %v2229_v36 = vadd.f32 %v6208_v13, %v11561_v55  ;;  %v11565_v13 = vld [vmem:[#allocation10_spill] sm:$0xff] }
 0x2ac   :  { %v2234_v60 = vadd.f32 %v6211_v44, %v11562_v56  ;;  %v6193_v44 = vadd.f32 %v9518_v1, %v9514_v58  ;;  %v6348_v58 = vadd.f32 %v9591_v59, %v9587_v9  ;;  %v6305_v9 = vadd.f32 %v9640_v23, %v9638_v40 }
 0x2ad   :  { %v6380_v31 = vpop.f32.mrf.mxu0  ;;  %v6316_v17 = vpop.f32.mrf.mxu1 }
 0x2ae   :  { %v9654_v20 = vadd.f32 %v6380_v31, %v6379_v30  ;;  %v2503_v23 = vadd.f32 %v6348_v58, %v9462_v49  ;;  %v6299_v49 = vadd.f32 %v9626_v28, %v9624_v24 }
 0x2af   :  { %v9656_v50 = vpop.f32.mrf.mxu0  ;;  %v6318_v57 = vpop.f32.mrf.mxu1 }
 0x2b0   :  { %11557 = vst [vmem:[#allocation33_spill] sm:$0xff] %v9654_v20  ;;  %11558 = vst [vmem:[#allocation34_spill] sm:$0xff] %v9656_v50  ;;  %v6214_v50 = vadd.f32 %v9578_v63, %v9574_v2  ;;  %v11563_v2 = vld [vmem:[#allocation55_spill] sm:$0xff] }
 0x2b1   :  { %v9658_v37 = vpop.f32.mrf.mxu0  ;;  %v6319_v34 = vpop.f32.mrf.mxu1  ;;  %v2226_v63 = vadd.f32 %v6205_v41, %v11563_v2  ;;  %v6311_v41 = vadd.f32 %v6310_v52, %v6309_v48  ;;  %v6187_v48 = vadd.f32 %v9502_v4, %v9498_v0  ;;  %v11569_v0 = vld [vmem:[#allocation16_spill] sm:$0xff] }
 0x2b2   :  { %11559 = vst [vmem:[#allocation38_spill] sm:$0xff] %v9658_v37  ;;  %v6320_v37 = vadd.f32 %v6319_v34, %v6318_v57  ;;  %v9682_v57 = vadd.f32 %v9494_v33, %v9490_v12  ;;  %v6314_v34 = vadd.f32 %v6313_v29, %v6312_v25  ;;  %v2237_v8 = vadd.f32 %v6214_v50, %v11564_v10  ;;  %v11566_v12 = vld [vmem:[#allocation15_spill] sm:$0xff]  ;;  %v11567_v29 = vld [vmem:[#allocation30_spill] sm:$0xff] }
 0x2b3   :  { %v6385_v6 = vpop.f32.mrf.mxu0  ;;  %v6321_v46 = vpop.f32.mrf.mxu1  ;;  %v2221_v33 = vadd.f32 %v6202_v15, %v11566_v12  ;;  %v2500_v50 = vadd.f32 %v9583_v62, %v11567_v29  ;;  %v6190_v62 = vadd.f32 %v9510_v61, %v9506_v22  ;;  %v2210_v4 = vadd.f32 %v6193_v44, %v11569_v0 }
 0x2b4   :  { %v6302_v22 = vadd.f32 %v9636_v16, %v9632_v47  ;;  %v2508_v44 = vadd.f32 %v9596_v39, %v9433_v43  ;;  %v6354_v47 = vadd.f32 %v9602_v38, %v9600_v26 }
 0x2b5   :  { %v6386_v18 = vpop.f32.mrf.mxu0  ;;  %v6322_v31 = vpop.f32.mrf.mxu1 }
 0x2b6   :  { %v9666_v30 = vadd.f32 %v6386_v18, %v6385_v6  ;;  %v6323_v20 = vadd.f32 %v6322_v31, %v6321_v46  ;;  %v6317_v18 = vadd.f32 %v6316_v17, %v6315_v32  ;;  %v2390_v31 = vadd.f32 %v6320_v37, %v2229_v36 }
 0x2b7   :  { %v9670_v45 = vpop.f32.mrf.mxu0  ;;  %v6324_v42 = vpop.f32.mrf.mxu1  ;;  %v6196_v17 = vadd.f32 %v9528_v3, %v9524_v54  ;;  %v2218_v32 = vadd.f32 %v6199_v53, %v11565_v13  ;;  %v6308_v37 = vadd.f32 %v6307_v27, %v6306_v14  ;;  %v11568_v27 = vld [vmem:[#allocation57_spill] sm:$0xff] }
 0x2b8   :  { %11560 = vst [vmem:[#allocation37_spill] sm:$0xff] %v9670_v45  ;;  %v2395_v7 = vadd.f32 %v6323_v20, %v2234_v60  ;;  %v2387_v25 = vadd.f32 %v6317_v18, %v2226_v63  ;;  %v2430_v54 = vmax.f32 %v2390_v31, 0.0 }
 0x2b9   :  { %v9678_v6 = vpop.f32.mrf.mxu0  ;;  %v6325_v46 = vpop.f32.mrf.mxu1  ;;  %v2213_v52 = vadd.f32 %v6196_v17, %v11568_v27  ;;  %v2379_v14 = vadd.f32 %v6311_v41, %v2218_v32  ;;  %v11570_v17 = vld [vmem:[#allocation17_spill] sm:$0xff] }
 0x2ba   :  { %v6326_v11 = vadd.f32 %v6325_v46, %v6324_v42  ;;  %v2382_v42 = vadd.f32 %v6314_v34, %v2221_v33  ;;  %v2431_v3 = vmax.f32 %v2395_v7, 0.0  ;;  %v2202_v32 = vadd.f32 %v6187_v48, %v11570_v17  ;;  %v11571_v33 = vld [vmem:[#allocation45_spill] sm:$0xff] }
 0x2bb   :  { %v6391_v45 = vpop.f32.mrf.mxu0  ;;  %v6455_v56 = vpop.f32.mrf.mxu1  ;;  %v2374_v61 = vadd.f32 %v6308_v37, %v2213_v52  ;;  %v2205_v41 = vadd.f32 %v6190_v62, %v11571_v33  ;;  %v2427_v29 = vmax.f32 %v2379_v14, 0.0  ;;  %v2511_v62 = vadd.f32 %v6354_v47, %v9438_v35 }
 0x2bc   :  { %v2398_v36 = vadd.f32 %v6326_v11, %v2237_v8  ;;  %v2428_v40 = vmax.f32 %v2382_v42, 0.0 }
 0x2bd   :  { %v6392_v20 = vpop.f32.mrf.mxu0  ;;  %v6456_v1 = vpop.f32.mrf.mxu1  ;;  %v2366_v37 = vadd.f32 %v6302_v22, %v2205_v41  ;;  %v2426_v42 = vmax.f32 %v2374_v61, 0.0  ;;  %v11578_v22 = vld [vmem:[#allocation69_spill] sm:$0xff] }
 0x2be   :  { %v9696_v60 = vadd.f32 %v6392_v20, %v6391_v45  ;;  %v2432_v53 = vmax.f32 %v2398_v36, 0.0  ;;  %v6457_v15 = vadd.f32 %v6456_v1, %v6455_v56  ;;  %v7652_v45 = vld [vmem:[%s11104_s3 + $0x4] ss:$8 sps:$4 sm:$0xff]   ;;  %v2429_v56 = vmax.f32 %v2387_v25, 0.0 }
 0x2bf   :  { %v9698_v46 = vpop.f32.mrf.mxu0  ;;  %v6458_v59 = vpop.f32.mrf.mxu1  ;;  %3188 = vmatprep.mubr.bf16.mxu1 %v7652_v45  ;;  %3059 = vmatprep.mubr.bf16.mxu0 %v7652_v45  ;;  %v2371_v25 = vadd.f32 %v6305_v9, %v2210_v4  ;;  %v6296_v20 = vadd.f32 %v9622_v51, %v9614_v21  ;;  %v11572_v1 = vld [vmem:[#allocation49_spill] sm:$0xff]  ;;  %v2424_v48 = vmax.f32 %v2366_v37, 0.0  ;;  %v11574_v45 = vld [vmem:[#allocation64_spill] sm:$0xff]  ;;  %v11577_v4 = vld [vmem:[#allocation67_spill] sm:$0xff] }
 0x2c0   :  { %v2661_v18 = vadd.f32 %v6457_v15, %v2500_v50  ;;  %v2850_v63 = vpack.c.bf16 %v2432_v53, %v2431_v3  ;;  %v2849_v7 = vpack.c.bf16 %v2430_v54, %v2429_v56  ;;  %v2197_v24 = vadd.f32 %v9682_v57, %v11572_v1  ;;  %v11575_v56 = vld [vmem:[#allocation63_spill] sm:$0xff]  ;;  %v11583_v37 = vld [vmem:[#allocation40_spill] sm:$0xff] }
 0x2c1   :  { %v9710_v34 = vpop.f32.mrf.mxu0  ;;  %v6459_v8 = vpop.f32.mrf.mxu1  ;;  %v2363_v54 = vadd.f32 %v6299_v49, %v2202_v32  ;;  %v2425_v3 = vmax.f32 %v2371_v25, 0.0  ;;  %v6360_v61 = vadd.f32 %v11578_v22, %v11577_v4  ;;  %v11580_v32 = vld [vmem:[#allocation68_spill] sm:$0xff]  ;;  %v11582_v25 = vld [vmem:[#allocation41_spill] sm:$0xff]  ;;  %v11657_v1 = vld [vmem:[#allocation59_spill] sm:$0xff] }
 0x2c2   :  { %v6460_v31 = vadd.f32 %v6459_v8, %v6458_v59  ;;  %6551 = vmatprep.subr.bf16.mxu0 %v2850_v63  ;;  %v2787_v26 = vmax.f32 %v2661_v18, 0.0  ;;  %v2358_v51 = vadd.f32 %v6296_v20, %v2197_v24  ;;  %v11576_v18 = vld [vmem:[#allocation66_spill] sm:$0xff]  ;;  %v2421_v41 = vmax.f32 %v11580_v32, 0.0  ;;  %v11593_v4 = vld [vmem:[#allocation65_spill] sm:$0xff] }
 0x2c3   :  { %v6397_v11 = vpop.f32.mrf.mxu0  ;;  %v6461_v16 = vpop.f32.mrf.mxu1  ;;  %6552 = vmatpush3.bf16.msra.mxu0 %v9589_v5  ;;  %v2848_v5 = vpack.c.bf16 %v2428_v40, %v2427_v29  ;;  %v2847_v9 = vpack.c.bf16 %v2426_v42, %v2425_v3  ;;  %v2423_v57 = vmax.f32 %v2363_v54, 0.0  ;;  %v2516_v63 = vadd.f32 %v11576_v18, %v11575_v56  ;;  %v11587_v54 = vld [vmem:[#allocation12_spill] sm:$0xff] }
 0x2c4   :  { %v2664_v50 = vadd.f32 %v6460_v31, %v2503_v23  ;;  %6553 = vmatprep.subr.bf16.mxu0 %v2849_v7  ;;  %v2519_v29 = vadd.f32 %v6360_v61, %v11582_v25  ;;  %v11592_v18 = vld [vmem:[#allocation32_spill] sm:$0xff]  ;;  %v11594_v61 = vld [vmem:[#allocation21_spill] sm:$0xff]  ;;  %v11599_v25 = vld [vmem:[#allocation22_spill] sm:$0xff] }
 0x2c5   :  { %v6398_v36 = vpop.f32.mrf.mxu0  ;;  %v6462_v43 = vpop.f32.mrf.mxu1  ;;  %v2846_v35 = vpack.c.bf16 %v2424_v48, %v2423_v57  ;;  %v11588_v48 = vld [vmem:[#allocation31_spill] sm:$0xff]  ;;  %v11591_v57 = vld [vmem:[#allocation42_spill] sm:$0xff] }
 0x2c6   :  { %v9727_v39 = vadd.f32 %v6398_v36, %v6397_v11  ;;  %v2788_v38 = vmax.f32 %v2664_v50, 0.0  ;;  %v6463_v58 = vadd.f32 %v6462_v43, %v6461_v16  ;;  %v11579_v11 = vld [vmem:[#allocation39_spill] sm:$0xff] }
 0x2c7   :  { %v6464_v28 = vpop.f32.mrf.mxu1  ;;  %6554 = vmatpush3.bf16.msra.mxu0 %v9576_v19  ;;  %v2422_v19 = vmax.f32 %v2358_v51, 0.0  ;;  %v9744_v16 = vpop.f32.mrf.mxu0 }
 0x2c8   :  { %v9732_v53 = vpack.c.bf16 %v2788_v38, %v2787_v26  ;;  %v2669_v21 = vadd.f32 %v6463_v58, %v2508_v44  ;;  %6555 = vmatprep.subr.bf16.mxu0 %v2848_v5  ;;  %v11584_v26 = vld [vmem:[#allocation60_spill] sm:$0xff]  ;;  %v11585_v38 = vld [vmem:[#allocation7_spill] sm:$0xff] }
 0x2c9   :  { %v6465_v15 = vpop.f32.mrf.mxu1  ;;  %v2845_v36 = vpack.c.bf16 %v2422_v19, %v2421_v41  ;;  %v9748_v43 = vpop.f32.mrf.mxu0  ;;  %v2524_v58 = vadd.f32 %v11585_v38, %v11584_v26 }
 0x2ca   :  { %11573 = vst [vmem:[#allocation44_spill] sm:$0xff] %v9732_v53  ;;  %v6466_v52 = vadd.f32 %v6465_v15, %v6464_v28  ;;  %v2789_v40 = vmax.f32 %v2669_v21, 0.0  ;;  %v11586_v28 = vld [vmem:[#allocation5_spill] sm:$0xff] }
 0x2cb   :  { %v6467_v59 = vpop.f32.mrf.mxu1  ;;  %6556 = vmatpush3.bf16.msra.mxu0 %v11574_v45  ;;  %v6366_v3 = vadd.f32 %v11587_v54, %v11586_v28  ;;  %v11603_v28 = vld [vmem:[#allocation9_spill] sm:$0xff]  ;;  %v11604_v54 = vld [vmem:[#allocation28_spill] sm:$0xff] }
 0x2cc   :  { %v2672_v14 = vadd.f32 %v6466_v52, %v2511_v62  ;;  %6557 = vmatprep.subr.bf16.mxu0 %v2847_v9  ;;  %v11590_v9 = vld [vmem:[#allocation6_spill] sm:$0xff] }
 0x2cd   :  { %v6468_v8 = vpop.f32.mrf.mxu1 }
 0x2ce   :  { %v2790_v23 = vmax.f32 %v2672_v14, 0.0  ;;  %v6469_v31 = vadd.f32 %v6468_v8, %v6467_v59  ;;  %v9758_v59 = vpop.f32.mrf.mxu0  ;;  %v2527_v14 = vadd.f32 %v6366_v3, %v11591_v57  ;;  %v11595_v8 = vld [vmem:[#allocation19_spill] sm:$0xff]  ;;  %v2540_v3 = vadd.f32 %v11604_v54, %v11603_v28 }
 0x2cf   :  { %v6470_v7 = vpop.f32.mrf.mxu1  ;;  %6558 = vmatpush3.bf16.msra.mxu0 %v11579_v11  ;;  %v9796_v57 = vld [vmem:[%s11104_s3 + $0x10] ss:$8 sps:$4 sm:$0xff]  }
 0x2d0   :  { %v9742_v44 = vpack.c.bf16 %v2790_v23, %v2789_v40  ;;  %v2677_v47 = vadd.f32 %v6469_v31, %v2516_v63  ;;  %6559 = vmatprep.subr.bf16.mxu0 %v2846_v35  ;;  %v9763_v22 = vpop.f32.mrf.mxu0  ;;  %v2532_v40 = vadd.f32 %v11595_v8, %v11594_v61  ;;  %v11596_v35 = vld [vmem:[#allocation14_spill] sm:$0xff]  ;;  %11607 = vst [vmem:[#allocation46_spill] sm:$0xff] %v9796_v57 }
 0x2d1   :  { %v6471_v49 = vpop.f32.mrf.mxu1  ;;  %v11610_v61 = vld [vmem:[#allocation18_spill] sm:$0xff] }
 0x2d2   :  { %11581 = vst [vmem:[#allocation62_spill] sm:$0xff] %v9742_v44  ;;  %v6472_v50 = vadd.f32 %v6471_v49, %v6470_v7  ;;  %v2791_v24 = vmax.f32 %v2677_v47, 0.0  ;;  %v11597_v7 = vld [vmem:[#allocation13_spill] sm:$0xff] }
 0x2d3   :  { %v6473_v20 = vpop.f32.mrf.mxu1  ;;  %6560 = vmatpush3.bf16.msra.mxu0 %v11583_v37  ;;  %v6372_v11 = vadd.f32 %v11597_v7, %v11596_v35  ;;  %v9772_v47 = vld [vmem:[%s11104_s3] ss:$8 sps:$4 sm:$0xff]   ;;  %v11611_v7 = vld [vmem:[#allocation11_spill] sm:$0xff] }
 0x2d4   :  { %v2680_v42 = vadd.f32 %v6472_v50, %v2519_v29  ;;  %6561 = vmatprep.subr.bf16.mxu0 %v2845_v36  ;;  %11598 = vst [vmem:[#allocation51_spill] sm:$0xff] %v9772_v47  ;;  %v9778_v29 = vld [vmem:[%s11104_s3 + $0x14] ss:$8 sps:$4 sm:$0xff]  }
 0x2d5   :  { %v6474_v5 = vpop.f32.mrf.mxu1  ;;  %11600 = vst [vmem:[#allocation50_spill] sm:$0xff] %v9778_v29 }
 0x2d6   :  { %v2792_v21 = vmax.f32 %v2680_v42, 0.0  ;;  %v6475_v51 = vadd.f32 %v6474_v5, %v6473_v20  ;;  %v9782_v20 = vpop.f32.mrf.mxu0  ;;  %v11602_v42 = vld [vmem:[#allocation58_spill] sm:$0xff] }
 0x2d7   :  { %v6476_v15 = vpop.f32.mrf.mxu1  ;;  %6562 = vmatpush3.bf16.msra.mxu0 %v11588_v48  ;;  %v2535_v26 = vadd.f32 %v6372_v11, %v11602_v42  ;;  %v11606_v48 = vld [vmem:[#allocation35_spill] sm:$0xff]  ;;  %v11612_v11 = vld [vmem:[#allocation33_spill] sm:$0xff] }
 0x2d8   :  { %v9755_v62 = vpack.c.bf16 %v2792_v21, %v2791_v24  ;;  %v2685_v52 = vadd.f32 %v6475_v51, %v2524_v58  ;;  %6563 = vmatprep.subr.bf16.mxu0 %v11590_v9  ;;  %v9787_v24 = vpop.f32.mrf.mxu0 }
 0x2d9   :  { %v6477_v45 = vpop.f32.mrf.mxu1 }
 0x2da   :  { %11589 = vst [vmem:[#allocation43_spill] sm:$0xff] %v9755_v62  ;;  %v6478_v19 = vadd.f32 %v6477_v45, %v6476_v15  ;;  %v2793_v31 = vmax.f32 %v2685_v52, 0.0  ;;  %v11605_v15 = vld [vmem:[#allocation36_spill] sm:$0xff] }
 0x2db   :  { %v6479_v56 = vpop.f32.mrf.mxu1  ;;  %6564 = vmatpush3.bf16.msra.mxu0 %v11592_v18  ;;  %v6378_v52 = vadd.f32 %v11606_v48, %v11605_v15 }
 0x2dc   :  { %v2688_v63 = vadd.f32 %v6478_v19, %v2527_v14  ;;  %6565 = vmatprep.subr.bf16.mxu0 %v11593_v4  ;;  %v9801_v19 = vld [vmem:[%s11104_s3 + $0x24] ss:$8 sps:$4 sm:$0xff]  }
 0x2dd   :  { %v6480_v23 = vpop.f32.mrf.mxu1  ;;  %11608 = vst [vmem:[#allocation52_spill] sm:$0xff] %v9801_v19  ;;  %v2543_v8 = vadd.f32 %v6378_v52, %v11610_v61 }
 0x2de   :  { %v2794_v32 = vmax.f32 %v2688_v63, 0.0  ;;  %v6481_v41 = vadd.f32 %v6480_v23, %v6479_v56  ;;  %v9805_v63 = vpop.f32.mrf.mxu0 }
 0x2df   :  { %v6482_v49 = vpop.f32.mrf.mxu1  ;;  %6566 = vmatpush3.bf16.msra.mxu0 %v11599_v25  ;;  %v11613_v25 = vld [vmem:[#allocation34_spill] sm:$0xff] }
 0x2e0   :  { %v9780_v50 = vpack.c.bf16 %v2794_v32, %v2793_v31  ;;  %v2693_v36 = vadd.f32 %v6481_v41, %v2532_v40  ;;  %v9810_v35 = vpop.f32.mrf.mxu0  ;;  %v2548_v32 = vadd.f32 %v11612_v11, %v11611_v7  ;;  %v9842_v7 = vld [vmem:[%s11104_s3 + $0x30] ss:$8 sps:$4 sm:$0xff]  }
 0x2e1   :  { %v6483_v37 = vpop.f32.mrf.mxu1  ;;  %11621 = vst [vmem:[#allocation55_spill] sm:$0xff] %v9842_v7 }
 0x2e2   :  { %11601 = vst [vmem:[#allocation53_spill] sm:$0xff] %v9780_v50  ;;  %v6484_v38 = vadd.f32 %v6483_v37, %v6482_v49  ;;  %3060 = vmatmul.mubr.bf16.vlgmr.msra.gmra.mxu0 %v9772_v47  ;;  %v2795_v51 = vmax.f32 %v2693_v36, 0.0  ;;  %v11614_v36 = vld [vmem:[#allocation38_spill] sm:$0xff] }
 0x2e3   :  { %v6485_v58 = vpop.f32.mrf.mxu1  ;;  %3067 = vmatprep.mubr.bf16.mxu0 %v9778_v29  ;;  %v6384_v37 = vadd.f32 %v11614_v36, %v11613_v25 }
 0x2e4   :  { %v2696_v5 = vadd.f32 %v6484_v38, %v2535_v26  ;;  %v9819_v38 = vld [vmem:[%s11104_s3 + $0x20] ss:$8 sps:$4 sm:$0xff]  }
 0x2e5   :  { %v6486_v21 = vpop.f32.mrf.mxu1  ;;  %11615 = vst [vmem:[#allocation26_spill] sm:$0xff] %v9819_v38 }
 0x2e6   :  { %v2796_v9 = vmax.f32 %v2696_v5, 0.0  ;;  %v6487_v45 = vadd.f32 %v6486_v21, %v6485_v58  ;;  %v9824_v5 = vld [vmem:[%s11104_s3 + $0x34] ss:$8 sps:$4 sm:$0xff]  }
 0x2e7   :  { %v6488_v14 = vpop.f32.mrf.mxu1  ;;  %11616 = vst [vmem:[#allocation20_spill] sm:$0xff] %v9824_v5 }
 0x2e8   :  { %v9803_v56 = vpack.c.bf16 %v2796_v9, %v2795_v51  ;;  %v2701_v18 = vadd.f32 %v6487_v45, %v2540_v3  ;;  %v9828_v3 = vpop.f32.mrf.mxu0  ;;  %v11618_v51 = vld [vmem:[#allocation8_spill] sm:$0xff] }
 0x2e9   :  { %v6489_v4 = vpop.f32.mrf.mxu1  ;;  %v2551_v15 = vadd.f32 %v6384_v37, %v11618_v51 }
 0x2ea   :  { %11609 = vst [vmem:[#allocation23_spill] sm:$0xff] %v9803_v56  ;;  %v6490_v40 = vadd.f32 %v6489_v4, %v6488_v14  ;;  %3068 = vmatmul.mubr.bf16.gmra.mxu0 %v9796_v57  ;;  %v2797_v49 = vmax.f32 %v2701_v18, 0.0  ;;  %v9833_v45 = vpop.f32.mrf.mxu0  ;;  %v11619_v14 = vld [vmem:[#allocation61_spill] sm:$0xff] }
 0x2eb   :  { %v6491_v23 = vpop.f32.mrf.mxu1  ;;  %3075 = vmatprep.mubr.bf16.mxu0 %v9801_v19  ;;  %v2556_v18 = vadd.f32 %v9666_v30, %v11619_v14  ;;  %v9865_v14 = vld [vmem:[%s11104_s3 + $0x40] ss:$8 sps:$4 sm:$0xff]  }
 0x2ec   :  { %v2704_v31 = vadd.f32 %v6490_v40, %v2543_v8  ;;  %v11620_v8 = vld [vmem:[#allocation37_spill] sm:$0xff]  ;;  %11626 = vst [vmem:[#allocation15_spill] sm:$0xff] %v9865_v14 }
 0x2ed   :  { %v6492_v41 = vpop.f32.mrf.mxu1  ;;  %v6390_v40 = vadd.f32 %v9678_v6, %v11620_v8  ;;  %v11624_v6 = vld [vmem:[#allocation54_spill] sm:$0xff] }
 0x2ee   :  { %v2798_v42 = vmax.f32 %v2704_v31, 0.0  ;;  %v6493_v26 = vadd.f32 %v6492_v41, %v6491_v23 }
 0x2ef   :  { %v6494_v58 = vpop.f32.mrf.mxu1  ;;  %v2559_v36 = vadd.f32 %v6390_v40, %v11624_v6 }
 0x2f0   :  { %v9826_v28 = vpack.c.bf16 %v2798_v42, %v2797_v49  ;;  %v2709_v54 = vadd.f32 %v6493_v26, %v2548_v32  ;;  %v9847_v32 = vld [vmem:[%s11104_s3 + $0x44] ss:$8 sps:$4 sm:$0xff]   ;;  %v9851_v49 = vpop.f32.mrf.mxu0 }
 0x2f1   :  { %v6495_v21 = vpop.f32.mrf.mxu1  ;;  %11622 = vst [vmem:[#allocation47_spill] sm:$0xff] %v9847_v32 }
 0x2f2   :  { %11617 = vst [vmem:[#allocation56_spill] sm:$0xff] %v9826_v28  ;;  %v6496_v48 = vadd.f32 %v6495_v21, %v6494_v58  ;;  %3076 = vmatmul.mubr.bf16.gmra.mxu0 %v9819_v38  ;;  %v2799_v61 = vmax.f32 %v2709_v54, 0.0  ;;  %v9856_v58 = vpop.f32.mrf.mxu0  ;;  %v11625_v54 = vld [vmem:[#allocation24_spill] sm:$0xff] }
 0x2f3   :  { %v6497_v52 = vpop.f32.mrf.mxu1  ;;  %3083 = vmatprep.mubr.bf16.mxu0 %v9824_v5  ;;  %v2564_v21 = vadd.f32 %v9696_v60, %v11625_v54 }
 0x2f4   :  { %v2712_v9 = vadd.f32 %v6496_v48, %v2551_v15  ;;  %v6396_v48 = vadd.f32 %v9710_v34, %v9698_v46  ;;  %v9874_v8 = vpop.f32.mrf.mxu0  ;;  %v11628_v46 = vld [vmem:[#allocation27_spill] sm:$0xff] }
 0x2f5   :  { %v6498_v4 = vpop.f32.mrf.mxu1 }
 0x2f6   :  { %v2800_v23 = vmax.f32 %v2712_v9, 0.0  ;;  %v6499_v31 = vadd.f32 %v6498_v4, %v6497_v52  ;;  %v9870_v4 = vld [vmem:[%s11104_s3 + $0x54] ss:$8 sps:$4 sm:$0xff]   ;;  %v2567_v34 = vadd.f32 %v6396_v48, %v11628_v46 }
 0x2f7   :  { %v6500_v11 = vpop.f32.mrf.mxu1  ;;  %11627 = vst [vmem:[#allocation30_spill] sm:$0xff] %v9870_v4 }
 0x2f8   :  { %v9849_v41 = vpack.c.bf16 %v2800_v23, %v2799_v61  ;;  %v2717_v30 = vadd.f32 %v6499_v31, %v2556_v18 }
 0x2f9   :  { %v6501_v25 = vpop.f32.mrf.mxu1 }
 0x2fa   :  { %11623 = vst [vmem:[#allocation10_spill] sm:$0xff] %v9849_v41  ;;  %v6502_v37 = vadd.f32 %v6501_v25, %v6500_v11  ;;  %3084 = vmatmul.mubr.bf16.gmra.mxu0 %v9842_v7  ;;  %v2801_v15 = vmax.f32 %v2717_v30, 0.0  ;;  %v9879_v30 = vpop.f32.mrf.mxu0  ;;  %v11629_v25 = vld [vmem:[#allocation48_spill] sm:$0xff]  ;;  %v10035_v7 = vld [vmem:[%s11106_s5] sm:$0xff] }
 0x2fb   :  { %v6503_v42 = vpop.f32.mrf.mxu1  ;;  %3091 = vmatprep.mubr.bf16.mxu0 %v9847_v32  ;;  %v2572_v6 = vadd.f32 %v9727_v39, %v11629_v25  ;;  %11655 = vst [vmem:[#allocation19_spill] sm:$0xff] %v10035_v7 }
 0x2fc   :  { %v2720_v26 = vadd.f32 %v6502_v37, %v2559_v36  ;;  %v9895_v39 = vpop.f32.mrf.mxu0 }
 0x2fd   :  { %v6504_v51 = vpop.f32.mrf.mxu1 }
 0x2fe   :  { %v2802_v52 = vmax.f32 %v2720_v26, 0.0  ;;  %v6505_v9 = vadd.f32 %v6504_v51, %v6503_v42  ;;  %v6402_v42 = vadd.f32 %v9748_v43, %v9744_v16  ;;  %v6405_v16 = vadd.f32 %v9763_v22, %v9758_v59  ;;  %v9910_v59 = vld [vmem:[%s11104_s3 + $0x60] ss:$8 sps:$4 sm:$0xff]  }
 0x2ff   :  { %v6506_v18 = vpop.f32.mrf.mxu1  ;;  %11635 = vst [vmem:[#allocation45_spill] sm:$0xff] %v9910_v59 }
 0x300   :  { %v9872_v61 = vpack.c.bf16 %v2802_v52, %v2801_v15  ;;  %v2725_v60 = vadd.f32 %v6505_v9, %v2564_v21  ;;  %v9888_v21 = vld [vmem:[%s11104_s3 + $0x50] ss:$8 sps:$4 sm:$0xff]   ;;  %v9893_v15 = vld [vmem:[%s11104_s3 + $0x64] ss:$8 sps:$4 sm:$0xff]  }
 0x301   :  { %v6507_v40 = vpop.f32.mrf.mxu1  ;;  %11630 = vst [vmem:[#allocation57_spill] sm:$0xff] %v9888_v21  ;;  %11631 = vst [vmem:[#allocation16_spill] sm:$0xff] %v9893_v15  ;;  %v11633_v9 = vld [vmem:[#allocation25_spill] sm:$0xff] }
 0x302   :  { %v6508_v23 = vadd.f32 %v6507_v40, %v6506_v18  ;;  %3092 = vmatmul.mubr.bf16.gmra.mxu0 %v9865_v14  ;;  %v2803_v37 = vmax.f32 %v2725_v60, 0.0  ;;  %v2575_v18 = vadd.f32 %v6402_v42, %v11633_v9  ;;  %v7791_v42 = vmov 2   ;;  %v9940_v9 = vld [vmem:[%s11106_s5 + $0x70] sm:$0xff] }
 0x303   :  { %v6509_v31 = vpop.f32.mrf.mxu1  ;;  %3099 = vmatprep.mubr.bf16.mxu0 %v9870_v4  ;;  %7505 = vset.pattern.permute.xlu1 %v7791_v42  ;;  %11641 = vst [vmem:[#allocation39_spill] sm:$0xff] %v9940_v9  ;;  %v10023_v4 = vld [vmem:[%s11106_s5 + $0x10] sm:$0xff] }
 0x304   :  { %v2728_v11 = vadd.f32 %v6508_v23, %v2567_v34  ;;  %v9904_v34 = vpop.f32.mrf.mxu0  ;;  %v11634_v23 = vld [vmem:[#allocation29_spill] sm:$0xff]  ;;  %7504 = vset.pattern.permute.xlu0 %v7791_v42  ;;  %11653 = vst [vmem:[#allocation65_spill] sm:$0xff] %v10023_v4 }
 0x305   :  { %v6510_v36 = vpop.f32.mrf.mxu1  ;;  %2939 = vperm.xlu0 %7504, %v9940_v9   ;;  %v9983_v42 = vld [vmem:[%s11106_s5 + $0x40] sm:$0xff]  ;;  %v9999_v9 = vld [vmem:[%s11106_s5 + $0x30] sm:$0xff] }
 0x306   :  { %v2804_v26 = vmax.f32 %v2728_v11, 0.0  ;;  %v6511_v54 = vadd.f32 %v6510_v36, %v6509_v31  ;;  %v2580_v31 = vadd.f32 %v6405_v16, %v11634_v23  ;;  %11647 = vst [vmem:[#allocation5_spill] sm:$0xff] %v9983_v42  ;;  %11649 = vst [vmem:[#allocation31_spill] sm:$0xff] %v9999_v9 }
 0x307   :  { %v6512_v51 = vpop.f32.mrf.mxu1 }
 0x308   :  { %v2733_v48 = vadd.f32 %v6511_v54, %v2572_v6  ;;  %v9897_v52 = vpack.c.bf16 %v2804_v26, %v2803_v37  ;;  %v9917_v37 = vld [vmem:[%s11104_s3 + $0x74] ss:$8 sps:$4 sm:$0xff]  }
 0x309   :  { %v6513_v43 = vpop.f32.mrf.mxu1  ;;  %11636 = vst [vmem:[#allocation64_spill] sm:$0xff] %v9917_v37  ;;  %v9922_v26 = vld [vmem:[%s11106_s5 + $0x78] sm:$0xff] }
 0x30a   :  { %11632 = vst [vmem:[#allocation17_spill] sm:$0xff] %v9897_v52  ;;  %v6514_v60 = vadd.f32 %v6513_v43, %v6512_v51  ;;  %3100 = vmatmul.mubr.bf16.gmra.mxu0 %v9888_v21  ;;  %v2805_v25 = vmax.f32 %v2733_v48, 0.0  ;;  %11637 = vst [vmem:[#allocation63_spill] sm:$0xff] %v9922_v26  ;;  %v9926_v51 = vpop.f32.mrf.mxu0  ;;  %2944 = vperm.xlu1 %7505, %v9922_v26  }
 0x30b   :  { %v6515_v40 = vpop.f32.mrf.mxu1  ;;  %3107 = vmatprep.mubr.bf16.mxu0 %v9893_v15 }
 0x30c   :  { %v2736_v46 = vadd.f32 %v6514_v60, %v2575_v18  ;;  %v9945_v18 = vld [vmem:[%s11106_s5 + $0x60] sm:$0xff]  ;;  %v9947_v60 = vpop.f32.mrf.mxu0 }
 0x30d   :  { %v6516_v11 = vpop.f32.mrf.mxu1  ;;  %11642 = vst [vmem:[#allocation68_spill] sm:$0xff] %v9945_v18  ;;  %v6426_v56 = vadd.f32 %v9947_v60, %v9926_v51  ;;  %v11659_v51 = vld [vmem:[#allocation10_spill] sm:$0xff] }
 0x30e   :  { %v2806_v6 = vmax.f32 %v2736_v46, 0.0  ;;  %v6517_v36 = vadd.f32 %v6516_v11, %v6515_v40  ;;  %2929 = vperm.xlu1 %7505, %v9945_v18   ;;  %v9956_v46 = vld [vmem:[%s11104_s3 + $0x70] ss:$8 sps:$4 sm:$0xff]  }
 0x30f   :  { %v9912_v22 = vpop.f32.mrf.mxu1  ;;  %11643 = vst [vmem:[#allocation41_spill] sm:$0xff] %v9956_v46  ;;  %v9968_v11 = vld [vmem:[%s11106_s5 + $0x50] sm:$0xff] }
 0x310   :  { %v9924_v54 = vadd.f32 %v6517_v36, %v2580_v31  ;;  %v9928_v48 = vpack.c.bf16 %v2806_v6, %v2805_v25  ;;  %v9963_v31 = vld [vmem:[%s11106_s5 + $0x68] sm:$0xff]  ;;  %11645 = vst [vmem:[#allocation60_spill] sm:$0xff] %v9968_v11  ;;  %v6427_v25 = vpop.f32.mrf.mxu0  ;;  %v9978_v36 = vld [vmem:[%s11106_s5 + $0x58] sm:$0xff] }
 0x311   :  { %v9931_v16 = vpop.f32.mrf.mxu1  ;;  %11644 = vst [vmem:[#allocation40_spill] sm:$0xff] %v9963_v31  ;;  %2934 = vperm.xlu0 %7504, %v9963_v31   ;;  %11646 = vst [vmem:[#allocation7_spill] sm:$0xff] %v9978_v36 }
 0x312   :  { %11638 = vst [vmem:[#allocation66_spill] sm:$0xff] %v9924_v54  ;;  %11639 = vst [vmem:[#allocation67_spill] sm:$0xff] %v9928_v48  ;;  %3108 = vmatmul.mubr.bf16.gmra.mxu0 %v9910_v59  ;;  %2919 = vperm.xlu1 %7505, %v9968_v11   ;;  %v6428_v26 = vpop.f32.mrf.mxu0  ;;  %v9994_v11 = vld [vmem:[%s11106_s5 + $0x48] sm:$0xff]  ;;  %v10011_v59 = vld [vmem:[%s11106_s5 + $0x20] sm:$0xff] }
 0x313   :  { %11640 = vst [vmem:[#allocation69_spill] sm:$0xff] %v9931_v16  ;;  %v9934_v43 = vpop.f32.mrf.mxu1  ;;  %3115 = vmatprep.mubr.bf16.mxu0 %v9917_v37  ;;  %11648 = vst [vmem:[#allocation12_spill] sm:$0xff] %v9994_v11  ;;  %v6429_v48 = vadd.f32 %v6428_v26, %v6427_v25 }
 0x314   :  { %v6430_v37 = vpop.f32.mrf.mxu0  ;;  %11651 = vst [vmem:[#allocation42_spill] sm:$0xff] %v10011_v59 }
 0x315   :  { %v9951_v40 = vpop.f32.mrf.mxu1  ;;  %2924 = vperm.xlu0 %7504, %v9978_v36  }
 0x316   :  { %2909 = vperm.xlu1 %7505, %v9983_v42   ;;  %v10006_v42 = vld [vmem:[%s11106_s5 + $0x38] sm:$0xff]  ;;  %v6431_v21 = vpop.f32.mrf.mxu0 }
 0x317   :  { %v9958_v23 = vpop.f32.mrf.mxu1  ;;  %11650 = vst [vmem:[#allocation6_spill] sm:$0xff] %v10006_v42  ;;  %v6432_v52 = vadd.f32 %v6431_v21, %v6430_v37  ;;  %v2612_v21 = vadd.f32 %v6429_v48, %v11563_v2 }
 0x318   :  { %v6433_v32 = vpop.f32.mrf.mxu0 }
 0x319   :  { %v9972_v6 = vpop.f32.mrf.mxu1  ;;  %2914 = vperm.xlu0 %7504, %v9994_v11   ;;  %v2615_v28 = vadd.f32 %v6432_v52, %v11561_v55  ;;  %v2607_v55 = vadd.f32 %v6426_v56, %v11566_v12  ;;  %v11666_v25 = vld [vmem:[#allocation67_spill] sm:$0xff] }
 0x31a   :  { %3116 = vmatmul.mubr.bf16.gmra.mxu0 %v9956_v46  ;;  %2899 = vperm.xlu1 %7505, %v9999_v9   ;;  %v10018_v9 = vld [vmem:[%s11106_s5 + $0x28] sm:$0xff]  ;;  %v6434_v38 = vpop.f32.mrf.mxu0 }
 0x31b   :  { %v9985_v18 = vpop.f32.mrf.mxu1  ;;  %11652 = vst [vmem:[#allocation32_spill] sm:$0xff] %v10018_v9  ;;  %v6435_v44 = vadd.f32 %v6434_v38, %v6433_v32  ;;  %v6420_v32 = vadd.f32 %v9879_v30, %v9874_v8 }
 0x31c   :  { %v6436_v19 = vpop.f32.mrf.mxu0 }
 0x31d   :  { %v9989_v31 = vpop.f32.mrf.mxu1  ;;  %2904 = vperm.xlu0 %7504, %v10006_v42   ;;  %v2620_v41 = vadd.f32 %v6435_v44, %v11657_v1 }
 0x31e   :  { %2889 = vperm.xlu1 %7505, %v10011_v59   ;;  %v10030_v59 = vld [vmem:[%s11106_s5 + $0x18] sm:$0xff]  ;;  %v6437_v47 = vpop.f32.mrf.mxu0  ;;  %v6529_v12 = vadd.f32 %v9989_v31, %v9985_v18  ;;  %v11664_v31 = vld [vmem:[#allocation53_spill] sm:$0xff] }
 0x31f   :  { %v6530_v46 = vpop.f32.mrf.mxu1  ;;  %11654 = vst [vmem:[#allocation21_spill] sm:$0xff] %v10030_v59  ;;  %v6438_v62 = vadd.f32 %v6437_v47, %v6436_v19 }
 0x321   :  { %v6531_v36 = vpop.f32.mrf.mxu1  ;;  %2894 = vperm.xlu0 %7504, %v10018_v9   ;;  %v2623_v38 = vadd.f32 %v6438_v62, %v11564_v10 }
 0x322   :  { %2879 = vperm.xlu1 %7505, %v10023_v4   ;;  %v10042_v4 = vld [vmem:[%s11106_s5 + $0x8] sm:$0xff] }
 0x323   :  { %v6533_v15 = vpop.f32.mrf.mxu1  ;;  %11656 = vst [vmem:[#allocation14_spill] sm:$0xff] %v10042_v4 }
 0x325   :  { %v6534_v11 = vpop.f32.mrf.mxu1  ;;  %2884 = vperm.xlu0 %7504, %v10030_v59  }
 0x326   :  { %2869 = vperm.xlu1 %7505, %v10035_v7   ;;  %v6535_v52 = vadd.f32 %v6534_v11, %v6533_v15  ;;  %v6523_v15 = vadd.f32 %v9951_v40, %v9934_v43  ;;  %v11663_v40 = vld [vmem:[#allocation66_spill] sm:$0xff]  ;;  %v11665_v11 = vld [vmem:[#allocation43_spill] sm:$0xff] }
 0x327   :  { %v6536_v14 = vpop.f32.mrf.mxu1 }
 0x329   :  { %v6537_v42 = vpop.f32.mrf.mxu1  ;;  %2874 = vperm.xlu0 %7504, %v10042_v4   ;;  %v6423_v4 = vadd.f32 %v9904_v34, %v9895_v39  ;;  %v6532_v39 = vadd.f32 %v6531_v36, %v6530_v46  ;;  %v11658_v34 = vld [vmem:[#allocation69_spill] sm:$0xff]  ;;  %v2807_v46 = vmax.f32 %v11663_v40, 0.0 }
 0x32a   :  { %v6538_v19 = vadd.f32 %v6537_v42, %v6536_v14  ;;  %v11668_v36 = vld [vmem:[#allocation17_spill] sm:$0xff]  ;;  %v11669_v42 = vld [vmem:[#allocation44_spill] sm:$0xff] }
 0x32b   :  { %v6539_v5 = vpop.f32.mrf.mxu1  ;;  %v2604_v2 = vadd.f32 %v6423_v4, %v11565_v13 }
 0x32c   :  { %v2768_v10 = vadd.f32 %v6538_v19, %v2607_v55  ;;  %v11673_v19 = vld [vmem:[#allocation52_spill] sm:$0xff]  ;;  %v11678_v55 = vld [vmem:[#allocation15_spill] sm:$0xff] }
 0x32d   :  { %v6540_v9 = vpop.f32.mrf.mxu1  ;;  %v2765_v56 = vadd.f32 %v6535_v52, %v2604_v2  ;;  %v11679_v52 = vld [vmem:[#allocation30_spill] sm:$0xff]  ;;  %v11683_v2 = vld [vmem:[#allocation64_spill] sm:$0xff] }
 0x32e   :  { %v6541_v16 = vadd.f32 %v6540_v9, %v6539_v5  ;;  %v6417_v5 = vadd.f32 %v9856_v58, %v9851_v49  ;;  %v6411_v49 = vadd.f32 %v9810_v35, %v9805_v63  ;;  %v6526_v58 = vadd.f32 %v9972_v6, %v9958_v23  ;;  %v11661_v9 = vld [vmem:[#allocation56_spill] sm:$0xff]  ;;  %v11667_v6 = vld [vmem:[#allocation62_spill] sm:$0xff] }
 0x32f   :  { %v6542_v57 = vpop.f32.mrf.mxu1  ;;  %v2814_v30 = vmax.f32 %v2768_v10, 0.0  ;;  %v2813_v35 = vmax.f32 %v2765_v56, 0.0 }
 0x330   :  { %v2773_v1 = vadd.f32 %v6541_v16, %v2612_v21  ;;  %v2596_v13 = vadd.f32 %v6417_v5, %v11569_v0  ;;  %v2588_v0 = vadd.f32 %v6411_v49, %v11570_v17  ;;  %v11670_v21 = vld [vmem:[#allocation51_spill] sm:$0xff]  ;;  %v11682_v5 = vld [vmem:[#allocation45_spill] sm:$0xff] }
 0x331   :  { %v6543_v29 = vpop.f32.mrf.mxu1 }
 0x332   :  { %v6544_v50 = vadd.f32 %v6543_v29, %v6542_v57  ;;  %v2757_v63 = vadd.f32 %v6529_v12, %v2596_v13 }
 0x333   :  { %v6545_v53 = vpop.f32.mrf.mxu1 }
 0x334   :  { %v2776_v29 = vadd.f32 %v6544_v50, %v2615_v28  ;;  %v6414_v28 = vadd.f32 %v9833_v45, %v9828_v3 }
 0x335   :  { %v6546_v59 = vpop.f32.mrf.mxu1 }
 0x336   :  { %v6547_v7 = vadd.f32 %v6546_v59, %v6545_v53  ;;  %v2816_v62 = vmax.f32 %v2776_v29, 0.0  ;;  %v2591_v45 = vadd.f32 %v6414_v28, %v11571_v33  ;;  %v6520_v59 = vadd.f32 %v11658_v34, %v9912_v22  ;;  %v11662_v22 = vld [vmem:[#allocation23_spill] sm:$0xff]  ;;  %v11674_v29 = vld [vmem:[#allocation26_spill] sm:$0xff] }
 0x337   :  { %v6548_v54 = vpop.f32.mrf.mxu1  ;;  %v2811_v33 = vmax.f32 %v2757_v63, 0.0 }
 0x338   :  { %v2781_v53 = vadd.f32 %v6547_v7, %v2620_v41  ;;  %v2599_v7 = vadd.f32 %v6420_v32, %v11568_v27  ;;  %v2815_v41 = vmax.f32 %v2773_v1, 0.0  ;;  %v6408_v27 = vadd.f32 %v9787_v24, %v9782_v20  ;;  %v11660_v20 = vld [vmem:[#allocation49_spill] sm:$0xff]  ;;  %v11677_v32 = vld [vmem:[#allocation47_spill] sm:$0xff] }
 0x339   :  { %v6549_v47 = vpop.f32.mrf.mxu1  ;;  %v2752_v37 = vadd.f32 %v6526_v58, %v2591_v45  ;;  %v11680_v1 = vld [vmem:[#allocation57_spill] sm:$0xff] }
 0x33a   :  { %v6550_v57 = vadd.f32 %v6549_v47, %v6548_v54  ;;  %v2817_v14 = vmax.f32 %v2781_v53, 0.0  ;;  %v2760_v4 = vadd.f32 %v6532_v39, %v2599_v7  ;;  %v3154_v3 = vpack.c.bf16 %v2816_v62, %v2815_v41  ;;  %v11672_v47 = vld [vmem:[#allocation46_spill] sm:$0xff]  ;;  %v11675_v53 = vld [vmem:[#allocation20_spill] sm:$0xff]  ;;  %v11684_v39 = vld [vmem:[#allocation41_spill] sm:$0xff] }
 0x33b   :  { %v3153_v54 = vpack.c.bf16 %v2814_v30, %v2813_v35  ;;  %v2583_v24 = vadd.f32 %v6408_v27, %v11660_v20  ;;  %v2810_v16 = vmax.f32 %v2752_v37, 0.0 }
 0x33c   :  { %v2784_v44 = vadd.f32 %v6550_v57, %v2623_v38  ;;  %v2812_v26 = vmax.f32 %v2760_v4, 0.0  ;;  %v11671_v38 = vld [vmem:[#allocation50_spill] sm:$0xff]  ;;  %v11676_v57 = vld [vmem:[#allocation55_spill] sm:$0xff] }
 0x33d   :  { %v2744_v48 = vadd.f32 %v6520_v59, %v2583_v24 }
 0x33e   :  { %v2818_v50 = vmax.f32 %v2784_v44, 0.0  ;;  %v3152_v43 = vpack.c.bf16 %v2812_v26, %v2811_v33  ;;  %v11681_v44 = vld [vmem:[#allocation16_spill] sm:$0xff] }
 0x33f   :  { %v2808_v17 = vmax.f32 %v2744_v48, 0.0 }
 0x340   :  { %v3155_v8 = vpack.c.bf16 %v2818_v50, %v2817_v14 }
 0x341   :  { %v3150_v23 = vpack.c.bf16 %v2808_v17, %v2807_v46 }
 0x342   :  { %6615 = vmatprep.subr.bf16.mxu1 %v3155_v8 }
 0x343   :  { %6616 = vmatpush3.bf16.msra.mxu1 %v9872_v61  ;;  %v2749_v61 = vadd.f32 %v6523_v15, %v2588_v0 }
 0x344   :  { %6617 = vmatprep.subr.bf16.mxu1 %v3154_v3 }
 0x345   :  { %v2809_v18 = vmax.f32 %v2749_v61, 0.0 }
 0x347   :  { %6618 = vmatpush3.bf16.msra.mxu1 %v11659_v51  ;;  %v3151_v60 = vpack.c.bf16 %v2810_v16, %v2809_v18 }
 0x348   :  { %6619 = vmatprep.subr.bf16.mxu1 %v3153_v54 }
 0x34b   :  { %6620 = vmatpush3.bf16.msra.mxu1 %v11661_v9 }
 0x34c   :  { %6621 = vmatprep.subr.bf16.mxu1 %v3152_v43 }
 0x34f   :  { %6622 = vmatpush3.bf16.msra.mxu1 %v11662_v22 }
 0x350   :  { %6623 = vmatprep.subr.bf16.mxu1 %v3151_v60 }
 0x353   :  { %6624 = vmatpush3.bf16.msra.mxu1 %v11664_v31 }
 0x354   :  { %6625 = vmatprep.subr.bf16.mxu1 %v3150_v23 }
 0x357   :  { %6626 = vmatpush3.bf16.msra.mxu1 %v11665_v11 }
 0x358   :  { %6627 = vmatprep.subr.bf16.mxu1 %v11666_v25 }
 0x35b   :  { %6628 = vmatpush3.bf16.msra.mxu1 %v11667_v6 }
 0x35c   :  { %6629 = vmatprep.subr.bf16.mxu1 %v11668_v36 }
 0x35f   :  { %6630 = vmatpush3.bf16.msra.mxu1 %v11669_v42 }
 0x362   :  { %3189 = vmatmul.mubr.bf16.vlgmr.msra.gmra.mxu1 %v11670_v21 }
 0x363   :  { %3196 = vmatprep.mubr.bf16.mxu1 %v11671_v38 }
 0x36a   :  { %3197 = vmatmul.mubr.bf16.gmra.mxu1 %v11672_v47 }
 0x36b   :  { %3204 = vmatprep.mubr.bf16.mxu1 %v11673_v19 }
 0x372   :  { %3205 = vmatmul.mubr.bf16.gmra.mxu1 %v11674_v29 }
 0x373   :  { %3212 = vmatprep.mubr.bf16.mxu1 %v11675_v53 }
 0x37a   :  { %3213 = vmatmul.mubr.bf16.gmra.mxu1 %v11676_v57 }
 0x37b   :  { %3220 = vmatprep.mubr.bf16.mxu1 %v11677_v32 }
 0x380   :  { %v10108_v49 = vpop.permute.xlu0 %2939 }
 0x382   :  { %3221 = vmatmul.mubr.bf16.gmra.mxu1 %v11678_v55 }
 0x383   :  { %3228 = vmatprep.mubr.bf16.mxu1 %v11679_v52 }
 0x385   :  { %v10106_v8 = vpop.permute.xlu1 %2944 }
 0x389   :  { %v10116_v30 = vpop.permute.xlu1 %2929 }
 0x38a   :  { %3229 = vmatmul.mubr.bf16.gmra.mxu1 %v11680_v1 }
 0x38b   :  { %3236 = vmatprep.mubr.bf16.mxu1 %v11681_v44 }
 0x38c   :  { %v10118_v3 = vpop.permute.xlu0 %2934 }
 0x38d   :  { %v10126_v63 = vpop.permute.xlu1 %2919 }
 0x390   :  { %v10128_v35 = vpop.permute.xlu0 %2924 }
 0x391   :  { %v10130_v37 = vpop.permute.xlu1 %2909 }
 0x392   :  { %3237 = vmatmul.mubr.bf16.gmra.mxu1 %v11682_v5 }
 0x393   :  { %3244 = vmatprep.mubr.bf16.mxu1 %v11683_v2 }
 0x394   :  { %v10132_v54 = vpop.permute.xlu0 %2914 }
 0x395   :  { %v10134_v61 = vpop.permute.xlu1 %2899 }
 0x398   :  { %v10136_v33 = vpop.permute.xlu0 %2904 }
 0x399   :  { %v10138_v18 = vpop.permute.xlu1 %2889 }
 0x39a   :  { %3245 = vmatmul.mubr.bf16.gmra.mxu1 %v11684_v39 }
 0x39c   :  { %v10140_v17 = vpop.permute.xlu0 %2894 }
 0x39d   :  { %v10142_v23 = vpop.permute.xlu1 %2879 }
 0x3a0   :  { %v10144_v31 = vpop.permute.xlu0 %2884 }
 0x3a1   :  { %v10148_v53 = vpop.permute.xlu1 %2869 }
 0x3a2   :  { %v6567_v10 = vpop.f32.mrf.mxu0 }
 0x3a4   :  { %v6568_v62 = vpop.f32.mrf.mxu0  ;;  %v10150_v32 = vpop.permute.xlu0 %2874 }
 0x3a5   :  { %v6569_v26 = vadd.f32 %v6568_v62, %v6567_v10 }
 0x3a6   :  { %v6570_v14 = vpop.f32.mrf.mxu0 }
 0x3a7   :  { %v3062_v5 = vadd.f32 %v6569_v26, %v10148_v53 }
 0x3a8   :  { %v6571_v50 = vpop.f32.mrf.mxu0 }
 0x3a9   :  { %v6572_v36 = vadd.f32 %v6571_v50, %v6570_v14  ;;  %v3124_v50 = vmax.f32 %v3062_v5, 0.0  ;;  %v10185_v5 = vld [vmem:[#allocation2 + $0x28] sm:$0xff]  }
 0x3aa   :  { %v6573_v28 = vpop.f32.mrf.mxu0 }
 0x3ab   :  { %v3065_v2 = vadd.f32 %v6572_v36, %v10150_v32 }
 0x3ac   :  { %v6574_v7 = vpop.f32.mrf.mxu0 }
 0x3ad   :  { %v6575_v16 = vadd.f32 %v6574_v7, %v6573_v28  ;;  %v3125_v28 = vmax.f32 %v3065_v2, 0.0  ;;  %v10187_v2 = vld [vmem:[#allocation2 + $0x30] sm:$0xff]  }
 0x3ae   :  { %v6576_v12 = vpop.f32.mrf.mxu0 }
 0x3af   :  { %v3070_v42 = vadd.f32 %v6575_v16, %v10142_v23 }
 0x3b0   :  { %v6577_v56 = vpop.f32.mrf.mxu0 }
 0x3b1   :  { %v6578_v46 = vadd.f32 %v6577_v56, %v6576_v12  ;;  %v3126_v19 = vmax.f32 %v3070_v42, 0.0 }
 0x3b2   :  { %v10104_v41 = vpop.f32.mrf.mxu0 }
 0x3b3   :  { %v3073_v21 = vadd.f32 %v6578_v46, %v10144_v31 }
 0x3b4   :  { %v10110_v13 = vpop.f32.mrf.mxu0 }
 0x3b5   :  { %v3127_v29 = vmax.f32 %v3073_v21, 0.0 }
 0x3b6   :  { %v10112_v58 = vpop.f32.mrf.mxu0 }
 0x3b7   :  { %v3286_v14 = vpack.c.bf16 %v3127_v29, %v3126_v19 }
 0x3b8   :  { %v10114_v4 = vpop.f32.mrf.mxu0 }
 0x3ba   :  { %v10120_v27 = vpop.f32.mrf.mxu0 }
 0x3bc   :  { %v10122_v45 = vpop.f32.mrf.mxu0 }
 0x3be   :  { %v10124_v15 = vpop.f32.mrf.mxu0 }
 0x3c0   :  { %v6589_v0 = vpop.f32.mrf.mxu0 }
 0x3c1   :  { %v6590_v46 = vadd.f32 %v6589_v0, %v10124_v15 }
 0x3c2   :  { %v6591_v34 = vpop.f32.mrf.mxu0 }
 0x3c3   :  { %v3089_v15 = vadd.f32 %v6590_v46, %v10136_v33 }
 0x3c4   :  { %v6592_v59 = vpop.f32.mrf.mxu0 }
 0x3c5   :  { %v6593_v7 = vadd.f32 %v6592_v59, %v6591_v34 }
 0x3c6   :  { %v6594_v51 = vpop.f32.mrf.mxu0 }
 0x3c7   :  { %v3094_v34 = vadd.f32 %v6593_v7, %v10130_v37 }
 0x3c8   :  { %v6595_v20 = vpop.f32.mrf.mxu0 }
 0x3c9   :  { %v6596_v56 = vadd.f32 %v6595_v20, %v6594_v51  ;;  %v7674_v51 = vld [vmem:[#allocation2] sm:$0xff]   ;;  %v3132_v42 = vmax.f32 %v3094_v34, 0.0 }
 0x3ca   :  { %v6597_v24 = vpop.f32.mrf.mxu0  ;;  %7087 = vmatprep.mubr.bf16.mxu1 %v7674_v51  ;;  %7055 = vmatprep.mubr.bf16.mxu0 %v7674_v51 }
 0x3cb   :  { %v3097_v59 = vadd.f32 %v6596_v56, %v10132_v54  ;;  %v11687_v56 = vld [vmem:[#allocation68_spill] sm:$0xff] }
 0x3cc   :  { %v6598_v48 = vpop.f32.mrf.mxu0 }
 0x3cd   :  { %v6599_v55 = vadd.f32 %v6598_v48, %v6597_v24  ;;  %v3133_v21 = vmax.f32 %v3097_v59, 0.0 }
 0x3ce   :  { %v6600_v43 = vpop.f32.mrf.mxu0 }
 0x3cf   :  { %v3102_v24 = vadd.f32 %v6599_v55, %v10126_v63 }
 0x3d0   :  { %v6601_v9 = vpop.f32.mrf.mxu0 }
 0x3d1   :  { %v6602_v52 = vadd.f32 %v6601_v9, %v6600_v43  ;;  %v3134_v20 = vmax.f32 %v3102_v24, 0.0  ;;  %v11688_v24 = vld [vmem:[#allocation60_spill] sm:$0xff] }
 0x3d2   :  { %v6603_v60 = vpop.f32.mrf.mxu0 }
 0x3d3   :  { %v3105_v48 = vadd.f32 %v6602_v52, %v10128_v35 }
 0x3d4   :  { %v6604_v22 = vpop.f32.mrf.mxu0 }
 0x3d5   :  { %v6605_v25 = vadd.f32 %v6604_v22, %v6603_v60  ;;  %v3285_v60 = vpack.c.bf16 %v3125_v28, %v3124_v50  ;;  %v11686_v50 = vld [vmem:[#allocation63_spill] sm:$0xff] }
 0x3d6   :  { %v6606_v40 = vpop.f32.mrf.mxu0 }
 0x3d7   :  { %v3110_v1 = vadd.f32 %v6605_v25, %v10116_v30 }
 0x3d8   :  { %v6607_v11 = vpop.f32.mrf.mxu0 }
 0x3d9   :  { %v6608_v38 = vadd.f32 %v6607_v11, %v6606_v40  ;;  %v3136_v16 = vmax.f32 %v3110_v1, 0.0  ;;  %v6587_v40 = vadd.f32 %v10122_v45, %v10120_v27  ;;  %v3135_v11 = vmax.f32 %v3105_v48, 0.0  ;;  %v10179_v1 = vld [vmem:[#allocation2 + $0x18] sm:$0xff]  }
 0x3da   :  { %v6609_v6 = vpop.f32.mrf.mxu0  ;;  %v6581_v27 = vadd.f32 %v10110_v13, %v10104_v41  ;;  %v6584_v45 = vadd.f32 %v10114_v4, %v10112_v58  ;;  %v10173_v58 = vld [vmem:[#allocation2 + $0x8] sm:$0xff]   ;;  %v10175_v4 = vld [vmem:[#allocation2 + $0x10] sm:$0xff]  }
 0x3db   :  { %v3113_v39 = vadd.f32 %v6608_v38, %v10118_v3  ;;  %v3086_v36 = vadd.f32 %v6587_v40, %v10134_v61  ;;  %v3290_v0 = vpack.c.bf16 %v3135_v11, %v3134_v20  ;;  %v3289_v38 = vpack.c.bf16 %v3133_v21, %v3132_v42  ;;  %v11691_v11 = vld [vmem:[#allocation7_spill] sm:$0xff]  ;;  %v11693_v21 = vld [vmem:[#allocation12_spill] sm:$0xff] }
 0x3dc   :  { %v6610_v47 = vpop.f32.mrf.mxu0  ;;  %v3081_v19 = vadd.f32 %v6584_v45, %v10140_v17 }
 0x3dd   :  { %v6611_v57 = vadd.f32 %v6610_v47, %v6609_v6  ;;  %v3137_v43 = vmax.f32 %v3113_v39, 0.0  ;;  %v3078_v47 = vadd.f32 %v6581_v27, %v10138_v18  ;;  %v3130_v29 = vmax.f32 %v3086_v36, 0.0  ;;  %v10191_v39 = vld [vmem:[#allocation2 + $0x38] sm:$0xff]   ;;  %v11694_v27 = vld [vmem:[#allocation42_spill] sm:$0xff] }
 0x3de   :  { %v6612_v44 = vpop.f32.mrf.mxu0  ;;  %v3129_v52 = vmax.f32 %v3081_v19, 0.0  ;;  %v11695_v19 = vld [vmem:[#allocation6_spill] sm:$0xff] }
 0x3df   :  { %v3118_v10 = vadd.f32 %v6611_v57, %v10108_v49  ;;  %v3291_v6 = vpack.c.bf16 %v3137_v43, %v3136_v16  ;;  %v3131_v57 = vmax.f32 %v3089_v15, 0.0  ;;  %v3128_v55 = vmax.f32 %v3078_v47, 0.0 }
 0x3e0   :  { %v6613_v62 = vpop.f32.mrf.mxu0 }
 0x3e1   :  { %v6614_v12 = vadd.f32 %v6613_v62, %v6612_v44  ;;  %v3138_v26 = vmax.f32 %v3118_v10, 0.0  ;;  %v3288_v41 = vpack.c.bf16 %v3131_v57, %v3130_v29  ;;  %v3287_v13 = vpack.c.bf16 %v3129_v52, %v3128_v55  ;;  %v10181_v44 = vld [vmem:[#allocation2 + $0x20] sm:$0xff]   ;;  %v11697_v55 = vld [vmem:[#allocation32_spill] sm:$0xff] }
 0x3e2   :  { %v7792_v62 = vmov 3   ;;  %v11696_v29 = vld [vmem:[#allocation65_spill] sm:$0xff] }
 0x3e3   :  { %v3121_v9 = vadd.f32 %v6614_v12, %v10106_v8  ;;  %7506 = vset.pattern.permute.xlu1 %v7792_v62  ;;  %7507 = vset.pattern.permute.xlu0 %v7792_v62 }
 0x3e4   :  { %3354 = vperm.xlu0 %7507, %v11686_v50  }
 0x3e5   :  { %v3139_v22 = vmax.f32 %v3121_v9, 0.0 }
 0x3e7   :  { %v3292_v25 = vpack.c.bf16 %v3139_v22, %v3138_v26  ;;  %v11690_v22 = vld [vmem:[#allocation5_spill] sm:$0xff] }
 0x3e8   :  { %3334 = vperm.xlu0 %7507, %v11688_v24  }
 0x3e9   :  { %7039 = vmatprep.subr.bf16.mxu0 %v3292_v25 }
 0x3ea   :  { %7040 = vmatpush3.bf16.msra.mxu0 %v3292_v25  ;;  %v11692_v25 = vld [vmem:[#allocation31_spill] sm:$0xff] }
 0x3eb   :  { %7041 = vmatprep.subr.bf16.mxu0 %v3291_v6 }
 0x3ec   :  { %3326 = vperm.xlu0 %7507, %v11690_v22  }
 0x3ee   :  { %7042 = vmatpush3.bf16.msra.mxu0 %v3291_v6 }
 0x3ef   :  { %7043 = vmatprep.subr.bf16.mxu0 %v3290_v0 }
 0x3f0   :  { %3318 = vperm.xlu0 %7507, %v11692_v25  }
 0x3f2   :  { %7044 = vmatpush3.bf16.msra.mxu0 %v3290_v0 }
 0x3f3   :  { %7045 = vmatprep.subr.bf16.mxu0 %v3289_v38 }
 0x3f4   :  { %3310 = vperm.xlu0 %7507, %v11694_v27  }
 0x3f6   :  { %7046 = vmatpush3.bf16.msra.mxu0 %v3289_v38 }
 0x3f7   :  { %7047 = vmatprep.subr.bf16.mxu0 %v3288_v41 }
 0x3f8   :  { %3302 = vperm.xlu0 %7507, %v11696_v29  }
 0x3fa   :  { %7048 = vmatpush3.bf16.msra.mxu0 %v3288_v41 }
 0x3fb   :  { %7049 = vmatprep.subr.bf16.mxu0 %v3287_v13 }
 0x3fe   :  { %7050 = vmatpush3.bf16.msra.mxu0 %v3287_v13  ;;  %v11699_v13 = vld [vmem:[#allocation21_spill] sm:$0xff] }
 0x3ff   :  { %7051 = vmatprep.subr.bf16.mxu0 %v3286_v14 }
 0x402   :  { %7052 = vmatpush3.bf16.msra.mxu0 %v3286_v14  ;;  %v11685_v14 = vld [vmem:[#allocation39_spill] sm:$0xff] }
 0x403   :  { %7053 = vmatprep.subr.bf16.mxu0 %v3285_v60  ;;  %3350 = vperm.xlu1 %7506, %v11685_v14   ;;  %v11700_v14 = vld [vmem:[#allocation14_spill] sm:$0xff] }
 0x406   :  { %7054 = vmatpush3.bf16.msra.mxu0 %v3285_v60  ;;  %v11689_v60 = vld [vmem:[#allocation40_spill] sm:$0xff] }
 0x407   :  { %3342 = vperm.xlu1 %7506, %v11687_v56  }
 0x409   :  { %7056 = vmatmul.mubr.bf16.vlgmr.msra.gmra.mxu0 %v10173_v58 }
 0x40a   :  { %7059 = vmatprep.mubr.bf16.mxu0 %v10175_v4 }
 0x40b   :  { %3346 = vperm.xlu1 %7506, %v11689_v60  }
 0x40f   :  { %3338 = vperm.xlu1 %7506, %v11691_v11  }
 0x411   :  { %7060 = vmatmul.mubr.bf16.gmra.mxu0 %v10179_v1 }
 0x412   :  { %7063 = vmatprep.mubr.bf16.mxu0 %v10181_v44 }
 0x413   :  { %3330 = vperm.xlu1 %7506, %v11693_v21  }
 0x417   :  { %3322 = vperm.xlu1 %7506, %v11695_v19  }
 0x419   :  { %7064 = vmatmul.mubr.bf16.gmra.mxu0 %v10185_v5 }
 0x41a   :  { %7067 = vmatprep.mubr.bf16.mxu0 %v10187_v2 }
 0x41b   :  { %3314 = vperm.xlu1 %7506, %v11697_v55  }
 0x41f   :  { %3306 = vperm.xlu1 %7506, %v11699_v13  }
 0x421   :  { %7068 = vmatmul.mubr.bf16.gmra.mxu0 %v10191_v39 }
 0x422   :  { %v6631_v10 = vpop.f32.mrf.mxu1 }
 0x423   :  { %3298 = vperm.xlu1 %7506, %v11700_v14  }
 0x424   :  { %v6632_v28 = vpop.f32.mrf.mxu1 }
 0x425   :  { %v6633_v7 = vadd.f32 %v6632_v28, %v6631_v10 }
 0x426   :  { %v6634_v12 = vpop.f32.mrf.mxu1 }
 0x427   :  { %v3191_v43 = vadd.f32 %v6633_v7, %v10148_v53 }
 0x428   :  { %v6635_v48 = vpop.f32.mrf.mxu1 }
 0x429   :  { %v6636_v16 = vadd.f32 %v6635_v48, %v6634_v12  ;;  %v3253_v34 = vmax.f32 %v3191_v43, 0.0 }
 0x42a   :  { %v6637_v26 = vpop.f32.mrf.mxu1 }
 0x42b   :  { %v3194_v9 = vadd.f32 %v6636_v16, %v10150_v32 }
 0x42c   :  { %v6638_v40 = vpop.f32.mrf.mxu1 }
 0x42d   :  { %v6639_v46 = vadd.f32 %v6638_v40, %v6637_v26  ;;  %v3254_v59 = vmax.f32 %v3194_v9, 0.0 }
 0x42e   :  { %v6640_v51 = vpop.f32.mrf.mxu1 }
 0x42f   :  { %v10202_v20 = vpack.c.bf16 %v3254_v59, %v3253_v34  ;;  %v3199_v36 = vadd.f32 %v6639_v46, %v10142_v23 }
 0x430   :  { %v6641_v6 = vpop.f32.mrf.mxu1 }
 0x431   :  { %v6642_v53 = vadd.f32 %v6641_v6, %v6640_v51  ;;  %v3255_v15 = vmax.f32 %v3199_v36, 0.0 }
 0x432   :  { %v10207_v32 = vpop.f32.mrf.mxu1 }
 0x433   :  { %v3202_v42 = vadd.f32 %v6642_v53, %v10144_v31  ;;  %v11698_v31 = vld [vmem:[#allocation19_spill] sm:$0xff] }
 0x434   :  { %v10212_v45 = vpop.f32.mrf.mxu1  ;;  %3294 = vperm.xlu0 %7507, %v11698_v31  }
 0x435   :  { %v3256_v0 = vmax.f32 %v3202_v42, 0.0 }
 0x436   :  { %v6646_v38 = vpop.f32.mrf.mxu1 }
 0x437   :  { %v10214_v47 = vpack.c.bf16 %v3256_v0, %v3255_v15 }
 0x438   :  { %v6647_v23 = vpop.f32.mrf.mxu1 }
 0x43a   :  { %v6649_v57 = vpop.f32.mrf.mxu1 }
 0x43c   :  { %v6650_v52 = vpop.f32.mrf.mxu1 }
 0x43e   :  { %v6652_v41 = vpop.f32.mrf.mxu1 }
 0x440   :  { %v6653_v10 = vpop.f32.mrf.mxu1 }
 0x442   :  { %v6655_v62 = vpop.f32.mrf.mxu1 }
 0x444   :  { %v6656_v50 = vpop.f32.mrf.mxu1 }
 0x446   :  { %v6658_v28 = vpop.f32.mrf.mxu1 }
 0x448   :  { %v6659_v7 = vpop.f32.mrf.mxu1 }
 0x449   :  { %v6660_v15 = vadd.f32 %v6659_v7, %v6658_v28 }
 0x44a   :  { %v6661_v12 = vpop.f32.mrf.mxu1 }
 0x44c   :  { %v6662_v56 = vpop.f32.mrf.mxu1 }
 0x44d   :  { %v6663_v36 = vadd.f32 %v6662_v56, %v6661_v12 }
 0x44e   :  { %v6664_v24 = vpop.f32.mrf.mxu1 }
 0x450   :  { %v6665_v48 = vpop.f32.mrf.mxu1 }
 0x451   :  { %v6666_v11 = vadd.f32 %v6665_v48, %v6664_v24 }
 0x452   :  { %v6667_v16 = vpop.f32.mrf.mxu1 }
 0x453   :  { %v3234_v0 = vadd.f32 %v6666_v11, %v10128_v35  ;;  %v6648_v35 = vadd.f32 %v6647_v23, %v6646_v38 }
 0x454   :  { %v6668_v43 = vpop.f32.mrf.mxu1 }
 0x455   :  { %v6669_v59 = vadd.f32 %v6668_v43, %v6667_v16  ;;  %v3231_v16 = vadd.f32 %v6663_v36, %v10126_v63  ;;  %v3264_v43 = vmax.f32 %v3234_v0, 0.0  ;;  %v6645_v63 = vadd.f32 %v10212_v45, %v10207_v32 }
 0x456   :  { %v6670_v26 = vpop.f32.mrf.mxu1 }
 0x457   :  { %v3239_v42 = vadd.f32 %v6669_v59, %v10116_v30  ;;  %v6651_v30 = vadd.f32 %v6650_v52, %v6649_v57  ;;  %v3210_v57 = vadd.f32 %v6648_v35, %v10140_v17  ;;  %v3207_v38 = vadd.f32 %v6645_v63, %v10138_v18 }
 0x458   :  { %v6671_v9 = vpop.f32.mrf.mxu1 }
 0x459   :  { %v6672_v40 = vadd.f32 %v6671_v9, %v6670_v26  ;;  %v3265_v24 = vmax.f32 %v3239_v42, 0.0  ;;  %v3258_v23 = vmax.f32 %v3210_v57, 0.0 }
 0x45a   :  { %v6673_v60 = vpop.f32.mrf.mxu1 }
 0x45b   :  { %v3242_v25 = vadd.f32 %v6672_v40, %v10118_v3  ;;  %v6654_v3 = vadd.f32 %v6653_v10, %v6652_v41 }
 0x45c   :  { %v6674_v22 = vpop.f32.mrf.mxu1 }
 0x45d   :  { %v6675_v46 = vadd.f32 %v6674_v22, %v6673_v60  ;;  %v3266_v14 = vmax.f32 %v3242_v25, 0.0  ;;  %v6657_v60 = vadd.f32 %v6656_v50, %v6655_v62  ;;  %v3218_v62 = vadd.f32 %v6654_v3, %v10136_v33 }
 0x45e   :  { %v6676_v34 = vpop.f32.mrf.mxu1 }
 0x45f   :  { %v3247_v6 = vadd.f32 %v6675_v46, %v10108_v49  ;;  %v3226_v49 = vadd.f32 %v6660_v15, %v10132_v54  ;;  %v3524_v12 = vpack.c.bf16 %v3266_v14, %v3265_v24  ;;  %v3223_v28 = vadd.f32 %v6657_v60, %v10130_v37  ;;  %v10259_v32 = vpop.permute.xlu0 %3354 }
 0x460   :  { %v6677_v51 = vpop.f32.mrf.mxu1  ;;  %v3215_v54 = vadd.f32 %v6651_v30, %v10134_v61  ;;  %v3260_v10 = vmax.f32 %v3218_v62, 0.0  ;;  %v3257_v14 = vmax.f32 %v3207_v38, 0.0 }
 0x461   :  { %v6678_v53 = vadd.f32 %v6677_v51, %v6676_v34  ;;  %v3267_v26 = vmax.f32 %v3247_v6, 0.0  ;;  %v3262_v7 = vmax.f32 %v3226_v49, 0.0  ;;  %v3261_v41 = vmax.f32 %v3223_v28, 0.0  ;;  %v7682_v49 = vld [vmem:[#allocation2 + $0x40] sm:$0xff]  }
 0x462   :  { %v3259_v37 = vmax.f32 %v3215_v54, 0.0  ;;  %v3520_v56 = vpack.c.bf16 %v3258_v23, %v3257_v14  ;;  %7119 = vmatprep.mubr.bf16.mxu0 %v7682_v49 }
 0x463   :  { %v3250_v21 = vadd.f32 %v6678_v53, %v10106_v8  ;;  %v3263_v8 = vmax.f32 %v3231_v16, 0.0  ;;  %v3522_v52 = vpack.c.bf16 %v3262_v7, %v3261_v41 }
 0x464   :  { %v3521_v33 = vpack.c.bf16 %v3260_v10, %v3259_v37 }
 0x465   :  { %v3268_v9 = vmax.f32 %v3250_v21, 0.0  ;;  %v3523_v50 = vpack.c.bf16 %v3264_v43, %v3263_v8 }
 0x467   :  { %v3525_v48 = vpack.c.bf16 %v3268_v9, %v3267_v26 }
 0x469   :  { %7071 = vmatprep.subr.bf16.mxu1 %v3525_v48 }
 0x46a   :  { %7072 = vmatpush3.bf16.msra.mxu1 %v3525_v48 }
 0x46b   :  { %7073 = vmatprep.subr.bf16.mxu1 %v3524_v12 }
 0x46e   :  { %7074 = vmatpush3.bf16.msra.mxu1 %v3524_v12 }
 0x46f   :  { %7075 = vmatprep.subr.bf16.mxu1 %v3523_v50 }
 0x472   :  { %7076 = vmatpush3.bf16.msra.mxu1 %v3523_v50 }
 0x473   :  { %7077 = vmatprep.subr.bf16.mxu1 %v3522_v52 }
 0x476   :  { %7078 = vmatpush3.bf16.msra.mxu1 %v3522_v52 }
 0x477   :  { %7079 = vmatprep.subr.bf16.mxu1 %v3521_v33 }
 0x47a   :  { %7080 = vmatpush3.bf16.msra.mxu1 %v3521_v33 }
 0x47b   :  { %7081 = vmatprep.subr.bf16.mxu1 %v3520_v56 }
 0x47e   :  { %7082 = vmatpush3.bf16.msra.mxu1 %v3520_v56  ;;  %v10247_v61 = vpop.permute.xlu1 %3350 }
 0x47f   :  { %7083 = vmatprep.subr.bf16.mxu1 %v10214_v47 }
 0x482   :  { %7084 = vmatpush3.bf16.msra.mxu1 %v10214_v47  ;;  %v10263_v47 = vpop.permute.xlu0 %3334 }
 0x483   :  { %7085 = vmatprep.subr.bf16.mxu1 %v10202_v20 }
 0x486   :  { %7086 = vmatpush3.bf16.msra.mxu1 %v10202_v20  ;;  %v10267_v59 = vpop.permute.xlu0 %3326 }
 0x489   :  { %7088 = vmatmul.mubr.bf16.vlgmr.msra.gmra.mxu1 %v10173_v58  ;;  %v10255_v58 = vpop.permute.xlu1 %3342 }
 0x48a   :  { %7091 = vmatprep.mubr.bf16.mxu1 %v10175_v4  ;;  %v10274_v21 = vpop.permute.xlu0 %3318 }
 0x48e   :  { %v10286_v50 = vpop.permute.xlu0 %3310 }
 0x491   :  { %7092 = vmatmul.mubr.bf16.gmra.mxu1 %v10179_v1 }
 0x492   :  { %7095 = vmatprep.mubr.bf16.mxu1 %v10181_v44  ;;  %v10293_v14 = vpop.permute.xlu0 %3302 }
 0x499   :  { %7096 = vmatmul.mubr.bf16.gmra.mxu1 %v10185_v5  ;;  %v10261_v5 = vpop.permute.xlu1 %3346 }
 0x49a   :  { %7099 = vmatprep.mubr.bf16.mxu1 %v10187_v2 }
 0x49d   :  { %v10265_v22 = vpop.permute.xlu1 %3338 }
 0x4a1   :  { %7100 = vmatmul.mubr.bf16.gmra.mxu1 %v10191_v39  ;;  %v10269_v51 = vpop.permute.xlu1 %3330 }
 0x4a2   :  { %7151 = vmatprep.mubr.bf16.mxu1 %v7682_v49  ;;  %v10355_v49 = vld [vmem:[%s11106_s5 + $0x50] sm:$0xff] }
 0x4a5   :  { %v10278_v9 = vpop.permute.xlu1 %3322 }
 0x4a9   :  { %v10284_v62 = vpop.permute.xlu1 %3314 }
 0x4ad   :  { %v10291_v33 = vpop.permute.xlu1 %3306 }
 0x4c9   :  { %v10249_v18 = vpop.f32.mrf.mxu0 }
 0x4cb   :  { %v10251_v17 = vpop.f32.mrf.mxu0 }
 0x4cd   :  { %v10253_v20 = vpop.f32.mrf.mxu0 }
 0x4cf   :  { %v10257_v4 = vpop.f32.mrf.mxu0 }
 0x4d1   :  { %v7061_v1 = vpop.f32.mrf.mxu0 }
 0x4d2   :  { %v3464_v41 = vadd.f32 %v7061_v1, %v10274_v21  ;;  %v3451_v1 = vadd.f32 %v10253_v20, %v10291_v33 }
 0x4d3   :  { %v3455_v44 = vpop.f32.mrf.mxu0 }
 0x4d4   :  { %v3456_v52 = vadd.f32 %v3455_v44, %v10286_v50  ;;  %v3508_v38 = vmax.f32 %v3464_v41, 0.0 }
 0x4d5   :  { %v7062_v2 = vpop.f32.mrf.mxu0 }
 0x4d6   :  { %v3467_v7 = vadd.f32 %v7062_v2, %v10278_v9  ;;  %v3506_v2 = vmax.f32 %v3456_v52, 0.0 }
 0x4d7   :  { %v3458_v39 = vpop.f32.mrf.mxu0 }
 0x4d8   :  { %v3459_v57 = vadd.f32 %v3458_v39, %v10284_v62  ;;  %v3509_v37 = vmax.f32 %v3467_v7, 0.0  ;;  %v3448_v39 = vadd.f32 %v10249_v18, %v10293_v14 }
 0x4d9   :  { %v7065_v45 = vpop.f32.mrf.mxu0 }
 0x4da   :  { %v3480_v36 = vadd.f32 %v7065_v45, %v10263_v47  ;;  %v3507_v56 = vmax.f32 %v3459_v57, 0.0  ;;  %v3659_v44 = vpack.c.bf16 %v3509_v37, %v3508_v38  ;;  %v10299_v45 = vpop.permute.xlu1 %3298 }
 0x4db   :  { %v3471_v40 = vpop.f32.mrf.mxu0 }
 0x4dc   :  { %v3512_v3 = vmax.f32 %v3480_v36, 0.0  ;;  %v3472_v43 = vadd.f32 %v3471_v40, %v10267_v59  ;;  %v10301_v40 = vpop.permute.xlu0 %3294 }
 0x4dd   :  { %v7066_v46 = vpop.f32.mrf.mxu0 }
 0x4de   :  { %v3483_v15 = vadd.f32 %v7066_v46, %v10265_v22  ;;  %v3510_v63 = vmax.f32 %v3472_v43, 0.0  ;;  %v3658_v46 = vpack.c.bf16 %v3507_v56, %v3506_v2  ;;  %v10349_v43 = vld [vmem:[%s11106_s5 + $0x68] sm:$0xff] }
 0x4df   :  { %v3474_v34 = vpop.f32.mrf.mxu0 }
 0x4e0   :  { %v3513_v12 = vmax.f32 %v3483_v15, 0.0  ;;  %v3475_v30 = vadd.f32 %v3474_v34, %v10269_v51  ;;  %v3505_v34 = vmax.f32 %v3451_v1, 0.0  ;;  %v10309_v15 = vld [vmem:[#allocation2 + $0x50] sm:$0xff]  }
 0x4e1   :  { %v7069_v11 = vpop.f32.mrf.mxu0 }
 0x4e2   :  { %v3496_v25 = vadd.f32 %v7069_v11, %v10247_v61  ;;  %v3661_v54 = vpack.c.bf16 %v3513_v12, %v3512_v3  ;;  %v3511_v10 = vmax.f32 %v3475_v30, 0.0  ;;  %v3504_v11 = vmax.f32 %v3448_v39, 0.0  ;;  %v10343_v3 = vld [vmem:[%s11106_s5 + $0x60] sm:$0xff]  ;;  %v10361_v12 = vld [vmem:[%s11106_s5 + $0x58] sm:$0xff] }
 0x4e3   :  { %v3487_v6 = vpop.f32.mrf.mxu0  ;;  %v10367_v30 = vld [vmem:[%s11106_s5 + $0x40] sm:$0xff] }
 0x4e4   :  { %v3488_v53 = vadd.f32 %v3487_v6, %v10255_v58  ;;  %v3516_v0 = vmax.f32 %v3496_v25, 0.0  ;;  %v3660_v23 = vpack.c.bf16 %v3511_v10, %v3510_v63  ;;  %v3443_v25 = vadd.f32 %v10257_v4, %v10299_v45  ;;  %v10315_v4 = vld [vmem:[#allocation2 + $0x60] sm:$0xff]  }
 0x4e5   :  { %v7070_v42 = vpop.f32.mrf.mxu0  ;;  %v3440_v6 = vadd.f32 %v10251_v17, %v10301_v40  ;;  %v10313_v17 = vld [vmem:[#allocation2 + $0x58] sm:$0xff]  }
 0x4e6   :  { %v3499_v26 = vadd.f32 %v7070_v42, %v10259_v32  ;;  %v3514_v16 = vmax.f32 %v3488_v53, 0.0  ;;  %v3503_v20 = vmax.f32 %v3443_v25, 0.0  ;;  %v3657_v53 = vpack.c.bf16 %v3505_v34, %v3504_v11  ;;  %v10307_v42 = vld [vmem:[#allocation2 + $0x48] sm:$0xff]  }
 0x4e7   :  { %v3490_v60 = vpop.f32.mrf.mxu0  ;;  %v3502_v18 = vmax.f32 %v3440_v6, 0.0 }
 0x4e8   :  { %v3517_v24 = vmax.f32 %v3499_v26, 0.0  ;;  %v3491_v48 = vadd.f32 %v3490_v60, %v10261_v5  ;;  %v10321_v26 = vld [vmem:[#allocation2 + $0x70] sm:$0xff]   ;;  %v10325_v60 = vld [vmem:[#allocation2 + $0x78] sm:$0xff]  }
 0x4e9   :  { %v3656_v36 = vpack.c.bf16 %v3503_v20, %v3502_v18 }
 0x4ea   :  { %v3663_v8 = vpack.c.bf16 %v3517_v24, %v3516_v0  ;;  %v3515_v28 = vmax.f32 %v3491_v48, 0.0  ;;  %v10319_v0 = vld [vmem:[#allocation2 + $0x68] sm:$0xff]   ;;  %v10331_v24 = vld [vmem:[%s11106_s5 + $0x78] sm:$0xff]  ;;  %v10337_v48 = vld [vmem:[%s11106_s5 + $0x70] sm:$0xff] }
 0x4ec   :  { %v3662_v35 = vpack.c.bf16 %v3515_v28, %v3514_v16  ;;  %7103 = vmatprep.subr.bf16.mxu0 %v3663_v8  ;;  %v7793_v16 = vmov 4   ;;  %v10379_v28 = vld [vmem:[%s11106_s5 + $0x30] sm:$0xff] }
 0x4ed   :  { %7104 = vmatpush3.bf16.msra.mxu0 %v3663_v8  ;;  %7509 = vset.pattern.permute.xlu1 %v7793_v16  ;;  %v10373_v8 = vld [vmem:[%s11106_s5 + $0x48] sm:$0xff] }
 0x4ee   :  { %7105 = vmatprep.subr.bf16.mxu0 %v3662_v35  ;;  %7508 = vset.pattern.permute.xlu0 %v7793_v16 }
 0x4ef   :  { %3725 = vperm.xlu1 %7509, %v10331_v24   ;;  %3721 = vperm.xlu0 %7508, %v10337_v48  }
 0x4f1   :  { %7106 = vmatpush3.bf16.msra.mxu0 %v3662_v35  ;;  %v11701_v35 = vld [vmem:[#allocation14_spill] sm:$0xff] }
 0x4f2   :  { %7107 = vmatprep.subr.bf16.mxu0 %v3661_v54 }
 0x4f3   :  { %3713 = vperm.xlu1 %7509, %v10343_v3   ;;  %3717 = vperm.xlu0 %7508, %v10349_v43  }
 0x4f5   :  { %7108 = vmatpush3.bf16.msra.mxu0 %v3661_v54 }
 0x4f6   :  { %7109 = vmatprep.subr.bf16.mxu0 %v3660_v23 }
 0x4f7   :  { %3705 = vperm.xlu1 %7509, %v10355_v49   ;;  %3709 = vperm.xlu0 %7508, %v10361_v12  }
 0x4f9   :  { %7110 = vmatpush3.bf16.msra.mxu0 %v3660_v23 }
 0x4fa   :  { %7111 = vmatprep.subr.bf16.mxu0 %v3659_v44 }
 0x4fb   :  { %3697 = vperm.xlu1 %7509, %v10367_v30   ;;  %3701 = vperm.xlu0 %7508, %v10373_v8  }
 0x4fd   :  { %7112 = vmatpush3.bf16.msra.mxu0 %v3659_v44 }
 0x4fe   :  { %7113 = vmatprep.subr.bf16.mxu0 %v3658_v46 }
 0x4ff   :  { %3689 = vperm.xlu1 %7509, %v10379_v28   ;;  %3693 = vperm.xlu0 %7508, %v11695_v19  }
 0x501   :  { %7114 = vmatpush3.bf16.msra.mxu0 %v3658_v46 }
 0x502   :  { %7115 = vmatprep.subr.bf16.mxu0 %v3657_v53 }
 0x503   :  { %3681 = vperm.xlu1 %7509, %v11694_v27   ;;  %3685 = vperm.xlu0 %7508, %v11697_v55  }
 0x505   :  { %7116 = vmatpush3.bf16.msra.mxu0 %v3657_v53 }
 0x506   :  { %7117 = vmatprep.subr.bf16.mxu0 %v3656_v36 }
 0x507   :  { %3673 = vperm.xlu1 %7509, %v11696_v29   ;;  %3677 = vperm.xlu0 %7508, %v11699_v13  }
 0x509   :  { %7118 = vmatpush3.bf16.msra.mxu0 %v3656_v36 }
 0x50b   :  { %3665 = vperm.xlu1 %7509, %v11698_v31   ;;  %3669 = vperm.xlu0 %7508, %v11701_v35  }
 0x50c   :  { %7120 = vmatmul.mubr.bf16.vlgmr.msra.gmra.mxu0 %v10307_v42 }
 0x50d   :  { %7123 = vmatprep.mubr.bf16.mxu0 %v10309_v15 }
 0x514   :  { %7124 = vmatmul.mubr.bf16.gmra.mxu0 %v10313_v17 }
 0x515   :  { %7127 = vmatprep.mubr.bf16.mxu0 %v10315_v4 }
 0x51c   :  { %7128 = vmatmul.mubr.bf16.gmra.mxu0 %v10319_v0 }
 0x51d   :  { %7131 = vmatprep.mubr.bf16.mxu0 %v10321_v26 }
 0x524   :  { %7132 = vmatmul.mubr.bf16.gmra.mxu0 %v10325_v60 }
 0x549   :  { %v7089_v7 = vpop.f32.mrf.mxu1 }
 0x54b   :  { %v3560_v63 = vpop.f32.mrf.mxu1 }
 0x54d   :  { %v7090_v41 = vpop.f32.mrf.mxu1 }
 0x54f   :  { %v3563_v54 = vpop.f32.mrf.mxu1 }
 0x551   :  { %v7093_v10 = vpop.f32.mrf.mxu1 }
 0x552   :  { %v3585_v35 = vadd.f32 %v7093_v10, %v10274_v21  ;;  %v3564_v10 = vadd.f32 %v3563_v54, %v10299_v45 }
 0x553   :  { %v3576_v57 = vpop.f32.mrf.mxu1 }
 0x555   :  { %v7094_v52 = vpop.f32.mrf.mxu1 }
 0x557   :  { %v3579_v19 = vpop.f32.mrf.mxu1 }
 0x559   :  { %v7097_v37 = vpop.f32.mrf.mxu1 }
 0x55a   :  { %v3601_v20 = vadd.f32 %v7097_v37, %v10263_v47 }
 0x55b   :  { %v3592_v27 = vpop.f32.mrf.mxu1 }
 0x55d   :  { %v7098_v38 = vpop.f32.mrf.mxu1 }
 0x55e   :  { %v3604_v34 = vadd.f32 %v7098_v38, %v10265_v22  ;;  %v3580_v38 = vadd.f32 %v3579_v19, %v10284_v62  ;;  %v3561_v19 = vadd.f32 %v3560_v63, %v10301_v40 }
 0x55f   :  { %v3595_v55 = vpop.f32.mrf.mxu1 }
 0x560   :  { %v3596_v53 = vadd.f32 %v3595_v55, %v10269_v51  ;;  %v3629_v51 = vmax.f32 %v3585_v35, 0.0  ;;  %v3577_v55 = vadd.f32 %v3576_v57, %v10286_v50  ;;  %v3623_v57 = vmax.f32 %v3561_v19, 0.0 }
 0x561   :  { %v7101_v23 = vpop.f32.mrf.mxu1 }
 0x562   :  { %v3617_v13 = vadd.f32 %v7101_v23, %v10247_v61  ;;  %v3634_v61 = vmax.f32 %v3604_v34, 0.0  ;;  %v3632_v36 = vmax.f32 %v3596_v53, 0.0  ;;  %v3628_v23 = vmax.f32 %v3580_v38, 0.0 }
 0x563   :  { %v3608_v29 = vpop.f32.mrf.mxu1 }
 0x564   :  { %v3609_v31 = vadd.f32 %v3608_v29, %v10255_v58  ;;  %v3637_v39 = vmax.f32 %v3617_v13, 0.0  ;;  %v3633_v58 = vmax.f32 %v3601_v20, 0.0  ;;  %v3624_v13 = vmax.f32 %v3564_v10, 0.0 }
 0x565   :  { %v7102_v56 = vpop.f32.mrf.mxu1 }
 0x566   :  { %v3620_v2 = vadd.f32 %v7102_v56, %v10259_v32  ;;  %v3635_v11 = vmax.f32 %v3609_v31, 0.0  ;;  %v3593_v32 = vadd.f32 %v3592_v27, %v10267_v59  ;;  %v3894_v16 = vpack.c.bf16 %v3634_v61, %v3633_v58 }
 0x567   :  { %v3611_v1 = vpop.f32.mrf.mxu1  ;;  %v3572_v27 = vadd.f32 %v7090_v41, %v10291_v33  ;;  %v3889_v33 = vpack.c.bf16 %v3624_v13, %v3623_v57 }
 0x568   :  { %v3638_v44 = vmax.f32 %v3620_v2, 0.0  ;;  %v3612_v46 = vadd.f32 %v3611_v1, %v10261_v5  ;;  %v3588_v5 = vadd.f32 %v7094_v52, %v10278_v9  ;;  %v3631_v22 = vmax.f32 %v3593_v32, 0.0 }
 0x569   :  { %v3627_v9 = vmax.f32 %v3577_v55, 0.0  ;;  %v3569_v52 = vadd.f32 %v7089_v7, %v10293_v14  ;;  %v3626_v29 = vmax.f32 %v3572_v27, 0.0 }
 0x56a   :  { %v3896_v25 = vpack.c.bf16 %v3638_v44, %v3637_v39  ;;  %v3636_v6 = vmax.f32 %v3612_v46, 0.0  ;;  %v3630_v47 = vmax.f32 %v3588_v5, 0.0  ;;  %v3893_v37 = vpack.c.bf16 %v3632_v36, %v3631_v22  ;;  %v10418_v7 = vpop.permute.xlu1 %3725 }
 0x56b   :  { %v3891_v21 = vpack.c.bf16 %v3628_v23, %v3627_v9  ;;  %v3625_v62 = vmax.f32 %v3569_v52, 0.0 }
 0x56c   :  { %v3895_v18 = vpack.c.bf16 %v3636_v6, %v3635_v11  ;;  %7135 = vmatprep.subr.bf16.mxu1 %v3896_v25  ;;  %v3892_v59 = vpack.c.bf16 %v3630_v47, %v3629_v51 }
 0x56d   :  { %7136 = vmatpush3.bf16.msra.mxu1 %v3896_v25  ;;  %v3890_v50 = vpack.c.bf16 %v3626_v29, %v3625_v62 }
 0x56e   :  { %7137 = vmatprep.subr.bf16.mxu1 %v3895_v18  ;;  %v10424_v63 = vpop.permute.xlu1 %3713 }
 0x571   :  { %7138 = vmatpush3.bf16.msra.mxu1 %v3895_v18 }
 0x572   :  { %7139 = vmatprep.subr.bf16.mxu1 %v3894_v16  ;;  %v10428_v54 = vpop.permute.xlu1 %3705 }
 0x575   :  { %7140 = vmatpush3.bf16.msra.mxu1 %v3894_v16 }
 0x576   :  { %7141 = vmatprep.subr.bf16.mxu1 %v3893_v37  ;;  %v10432_v39 = vpop.permute.xlu1 %3697 }
 0x579   :  { %7142 = vmatpush3.bf16.msra.mxu1 %v3893_v37  ;;  %v7690_v37 = vld [vmem:[#allocation2 + $0x80] sm:$0xff]  }
 0x57a   :  { %7143 = vmatprep.subr.bf16.mxu1 %v3892_v59  ;;  %v10439_v18 = vpop.permute.xlu1 %3689  ;;  %7183 = vmatprep.mubr.bf16.mxu0 %v7690_v37 }
 0x57d   :  { %7144 = vmatpush3.bf16.msra.mxu1 %v3892_v59 }
 0x57e   :  { %7145 = vmatprep.subr.bf16.mxu1 %v3891_v21  ;;  %v10449_v9 = vpop.permute.xlu1 %3681 }
 0x581   :  { %7146 = vmatpush3.bf16.msra.mxu1 %v3891_v21 }
 0x582   :  { %7147 = vmatprep.subr.bf16.mxu1 %v3890_v50 }
 0x585   :  { %7148 = vmatpush3.bf16.msra.mxu1 %v3890_v50 }
 0x586   :  { %7149 = vmatprep.subr.bf16.mxu1 %v3889_v33 }
 0x589   :  { %7150 = vmatpush3.bf16.msra.mxu1 %v3889_v33 }
 0x58c   :  { %7152 = vmatmul.mubr.bf16.vlgmr.msra.gmra.mxu1 %v10307_v42  ;;  %v10420_v42 = vpop.permute.xlu0 %3721 }
 0x58d   :  { %7155 = vmatprep.mubr.bf16.mxu1 %v10309_v15 }
 0x594   :  { %7156 = vmatmul.mubr.bf16.gmra.mxu1 %v10313_v17 }
 0x595   :  { %7159 = vmatprep.mubr.bf16.mxu1 %v10315_v4 }
 0x59c   :  { %7160 = vmatmul.mubr.bf16.gmra.mxu1 %v10319_v0  ;;  %v10426_v0 = vpop.permute.xlu0 %3717 }
 0x59d   :  { %7163 = vmatprep.mubr.bf16.mxu1 %v10321_v26 }
 0x5a0   :  { %v10430_v56 = vpop.permute.xlu0 %3709 }
 0x5a4   :  { %7164 = vmatmul.mubr.bf16.gmra.mxu1 %v10325_v60  ;;  %v10434_v44 = vpop.permute.xlu0 %3701 }
 0x5a5   :  { %7215 = vmatprep.mubr.bf16.mxu1 %v7690_v37  ;;  %v10511_v37 = vld [vmem:[%s11106_s5 + $0x38] sm:$0xff] }
 0x5a8   :  { %v10443_v32 = vpop.permute.xlu0 %3693 }
 0x5ac   :  { %v10451_v52 = vpop.permute.xlu0 %3685 }
 0x5cc   :  { %v10412_v14 = vpop.f32.mrf.mxu0 }
 0x5ce   :  { %v10414_v45 = vpop.f32.mrf.mxu0 }
 0x5d0   :  { %v10416_v40 = vpop.f32.mrf.mxu0 }
 0x5d2   :  { %v10422_v15 = vpop.f32.mrf.mxu0 }
 0x5d4   :  { %v7125_v17 = vpop.f32.mrf.mxu0 }
 0x5d5   :  { %v3835_v27 = vadd.f32 %v7125_v17, %v10439_v18  ;;  %v10456_v17 = vpop.permute.xlu1 %3673 }
 0x5d6   :  { %v3826_v4 = vpop.f32.mrf.mxu0 }
 0x5d7   :  { %v3827_v19 = vadd.f32 %v3826_v4, %v10449_v9  ;;  %v3879_v50 = vmax.f32 %v3835_v27, 0.0 }
 0x5d8   :  { %v7126_v26 = vpop.f32.mrf.mxu0 }
 0x5d9   :  { %v3838_v21 = vadd.f32 %v7126_v26, %v10443_v32  ;;  %v3819_v26 = vadd.f32 %v10412_v14, %v10456_v17 }
 0x5da   :  { %v3829_v60 = vpop.f32.mrf.mxu0 }
 0x5db   :  { %v3830_v13 = vadd.f32 %v3829_v60, %v10451_v52  ;;  %v3880_v57 = vmax.f32 %v3838_v21, 0.0 }
 0x5dc   :  { %v7129_v41 = vpop.f32.mrf.mxu0 }
 0x5dd   :  { %v3851_v6 = vadd.f32 %v7129_v41, %v10428_v54  ;;  %v10458_v41 = vpop.permute.xlu0 %3677  ;;  %v4030_v60 = vpack.c.bf16 %v3880_v57, %v3879_v50 }
 0x5de   :  { %v3842_v31 = vpop.f32.mrf.mxu0  ;;  %v3822_v4 = vadd.f32 %v10416_v40, %v10458_v41 }
 0x5df   :  { %v3883_v35 = vmax.f32 %v3851_v6, 0.0  ;;  %v3843_v47 = vadd.f32 %v3842_v31, %v10432_v39  ;;  %v3877_v31 = vmax.f32 %v3827_v19, 0.0 }
 0x5e0   :  { %v7130_v2 = vpop.f32.mrf.mxu0 }
 0x5e1   :  { %v3854_v61 = vadd.f32 %v7130_v2, %v10430_v56  ;;  %v3881_v29 = vmax.f32 %v3843_v47, 0.0  ;;  %v3878_v2 = vmax.f32 %v3830_v13, 0.0  ;;  %v10505_v47 = vld [vmem:[%s11106_s5 + $0x20] sm:$0xff] }
 0x5e2   :  { %v3845_v1 = vpop.f32.mrf.mxu0 }
 0x5e3   :  { %v3884_v38 = vmax.f32 %v3854_v61, 0.0  ;;  %v3846_v51 = vadd.f32 %v3845_v1, %v10434_v44  ;;  %v10464_v1 = vpop.permute.xlu1 %3665 }
 0x5e4   :  { %v7133_v46 = vpop.f32.mrf.mxu0  ;;  %v3811_v6 = vadd.f32 %v10414_v45, %v10464_v1  ;;  %v10478_v45 = vld [vmem:[#allocation2 + $0x98] sm:$0xff]  }
 0x5e5   :  { %v3867_v34 = vadd.f32 %v7133_v46, %v10420_v42  ;;  %v4032_v10 = vpack.c.bf16 %v3884_v38, %v3883_v35  ;;  %v3882_v62 = vmax.f32 %v3846_v51, 0.0  ;;  %v10466_v46 = vpop.permute.xlu0 %3669  ;;  %v7794_v35 = vmov 5   ;;  %v10517_v38 = vld [vmem:[%s11106_s5 + $0x10] sm:$0xff]  ;;  %v10523_v51 = vld [vmem:[%s11106_s5 + $0x28] sm:$0xff] }
 0x5e6   :  { %v3858_v11 = vpop.f32.mrf.mxu0  ;;  %v3873_v14 = vmax.f32 %v3811_v6, 0.0  ;;  %7510 = vset.pattern.permute.xlu1 %v7794_v35  ;;  %7511 = vset.pattern.permute.xlu0 %v7794_v35 }
 0x5e7   :  { %v3859_v25 = vadd.f32 %v3858_v11, %v10424_v63  ;;  %v3887_v53 = vmax.f32 %v3867_v34, 0.0  ;;  %v4031_v33 = vpack.c.bf16 %v3882_v62, %v3881_v29  ;;  %v4029_v34 = vpack.c.bf16 %v3878_v2, %v3877_v31  ;;  %4092 = vperm.xlu1 %7510, %v10337_v48   ;;  %4096 = vperm.xlu0 %7511, %v10331_v24  }
 0x5e8   :  { %v7134_v20 = vpop.f32.mrf.mxu0  ;;  %v3875_v11 = vmax.f32 %v3819_v26, 0.0 }
 0x5e9   :  { %v3870_v58 = vadd.f32 %v7134_v20, %v10418_v7  ;;  %v3885_v16 = vmax.f32 %v3859_v25, 0.0  ;;  %v3876_v25 = vmax.f32 %v3822_v4, 0.0  ;;  %v3814_v20 = vadd.f32 %v10422_v15, %v10466_v46  ;;  %v10480_v15 = vld [vmem:[#allocation2 + $0xa0] sm:$0xff]  }
 0x5ea   :  { %v3861_v36 = vpop.f32.mrf.mxu0 }
 0x5eb   :  { %v3888_v5 = vmax.f32 %v3870_v58, 0.0  ;;  %v3862_v22 = vadd.f32 %v3861_v36, %v10426_v0  ;;  %v3874_v40 = vmax.f32 %v3814_v20, 0.0  ;;  %v4028_v61 = vpack.c.bf16 %v3876_v25, %v3875_v11  ;;  %v10472_v58 = vld [vmem:[#allocation2 + $0x88] sm:$0xff]   ;;  %v10474_v36 = vld [vmem:[#allocation2 + $0x90] sm:$0xff]   ;;  %4084 = vperm.xlu1 %7510, %v10343_v3   ;;  %4076 = vperm.xlu0 %7511, %v10355_v49  }
 0x5ed   :  { %v4034_v55 = vpack.c.bf16 %v3888_v5, %v3887_v53  ;;  %v3886_v23 = vmax.f32 %v3862_v22, 0.0  ;;  %v4027_v53 = vpack.c.bf16 %v3874_v40, %v3873_v14  ;;  %v10486_v5 = vld [vmem:[#allocation2 + $0xb0] sm:$0xff]   ;;  %v10490_v22 = vld [vmem:[#allocation2 + $0xb8] sm:$0xff]  }
 0x5ef   :  { %v4033_v59 = vpack.c.bf16 %v3886_v23, %v3885_v16  ;;  %7167 = vmatprep.subr.bf16.mxu0 %v4034_v55  ;;  %v10484_v16 = vld [vmem:[#allocation2 + $0xa8] sm:$0xff]   ;;  %4088 = vperm.xlu1 %7510, %v10349_v43   ;;  %v10535_v23 = vld [vmem:[%s11106_s5 + $0x18] sm:$0xff] }
 0x5f0   :  { %7168 = vmatpush3.bf16.msra.mxu0 %v4034_v55  ;;  %4068 = vperm.xlu0 %7511, %v10367_v30   ;;  %v10529_v55 = vld [vmem:[%s11106_s5] sm:$0xff]  ;;  %11703 = vst [vmem:[#allocation22_spill] sm:$0xff] %v10535_v23 }
 0x5f1   :  { %7169 = vmatprep.subr.bf16.mxu0 %v4033_v59  ;;  %11702 = vst [vmem:[#allocation13_spill] sm:$0xff] %v10529_v55 }
 0x5f3   :  { %4080 = vperm.xlu1 %7510, %v10361_v12  }
 0x5f4   :  { %7170 = vmatpush3.bf16.msra.mxu0 %v4033_v59  ;;  %4060 = vperm.xlu0 %7511, %v10379_v28   ;;  %v10541_v59 = vld [vmem:[%s11106_s5 + $0x8] sm:$0xff] }
 0x5f5   :  { %7171 = vmatprep.subr.bf16.mxu0 %v4032_v10  ;;  %11704 = vst [vmem:[#allocation58_spill] sm:$0xff] %v10541_v59 }
 0x5f7   :  { %4072 = vperm.xlu1 %7510, %v10373_v8  }
 0x5f8   :  { %7172 = vmatpush3.bf16.msra.mxu0 %v4032_v10  ;;  %4052 = vperm.xlu0 %7511, %v10505_v47  }
 0x5f9   :  { %7173 = vmatprep.subr.bf16.mxu0 %v4031_v33 }
 0x5fb   :  { %4064 = vperm.xlu1 %7510, %v10511_v37  }
 0x5fc   :  { %7174 = vmatpush3.bf16.msra.mxu0 %v4031_v33  ;;  %4044 = vperm.xlu0 %7511, %v10517_v38  }
 0x5fd   :  { %7175 = vmatprep.subr.bf16.mxu0 %v4030_v60 }
 0x5ff   :  { %4056 = vperm.xlu1 %7510, %v10523_v51  }
 0x600   :  { %7176 = vmatpush3.bf16.msra.mxu0 %v4030_v60  ;;  %4036 = vperm.xlu0 %7511, %v10529_v55  }
 0x601   :  { %7177 = vmatprep.subr.bf16.mxu0 %v4029_v34 }
 0x603   :  { %4048 = vperm.xlu1 %7510, %v10535_v23  }
 0x604   :  { %7178 = vmatpush3.bf16.msra.mxu0 %v4029_v34 }
 0x605   :  { %7179 = vmatprep.subr.bf16.mxu0 %v4028_v61 }
 0x607   :  { %4040 = vperm.xlu1 %7510, %v10541_v59  }
 0x608   :  { %7180 = vmatpush3.bf16.msra.mxu0 %v4028_v61 }
 0x609   :  { %7181 = vmatprep.subr.bf16.mxu0 %v4027_v53 }
 0x60c   :  { %7182 = vmatpush3.bf16.msra.mxu0 %v4027_v53 }
 0x60f   :  { %7184 = vmatmul.mubr.bf16.vlgmr.msra.gmra.mxu0 %v10472_v58 }
 0x610   :  { %7187 = vmatprep.mubr.bf16.mxu0 %v10474_v36 }
 0x617   :  { %7188 = vmatmul.mubr.bf16.gmra.mxu0 %v10478_v45 }
 0x618   :  { %7191 = vmatprep.mubr.bf16.mxu0 %v10480_v15 }
 0x61f   :  { %7192 = vmatmul.mubr.bf16.gmra.mxu0 %v10484_v16 }
 0x620   :  { %7195 = vmatprep.mubr.bf16.mxu0 %v10486_v5 }
 0x627   :  { %7196 = vmatmul.mubr.bf16.gmra.mxu0 %v10490_v22 }
 0x64c   :  { %v7153_v27 = vpop.f32.mrf.mxu1 }
 0x64e   :  { %v3931_v29 = vpop.f32.mrf.mxu1 }
 0x650   :  { %v7154_v21 = vpop.f32.mrf.mxu1 }
 0x652   :  { %v3934_v10 = vpop.f32.mrf.mxu1 }
 0x654   :  { %v7157_v62 = vpop.f32.mrf.mxu1 }
 0x656   :  { %v3947_v19 = vpop.f32.mrf.mxu1 }
 0x658   :  { %v7158_v13 = vpop.f32.mrf.mxu1 }
 0x65a   :  { %v3950_v50 = vpop.f32.mrf.mxu1 }
 0x65c   :  { %v7161_v57 = vpop.f32.mrf.mxu1 }
 0x65d   :  { %v3972_v55 = vadd.f32 %v7161_v57, %v10428_v54  ;;  %v3951_v57 = vadd.f32 %v3950_v50, %v10451_v52  ;;  %v3932_v50 = vadd.f32 %v3931_v29, %v10464_v1 }
 0x65e   :  { %v3963_v33 = vpop.f32.mrf.mxu1 }
 0x660   :  { %v7162_v31 = vpop.f32.mrf.mxu1 }
 0x661   :  { %v3975_v61 = vadd.f32 %v7162_v31, %v10430_v56  ;;  %v3956_v31 = vadd.f32 %v7157_v62, %v10439_v18  ;;  %v3935_v62 = vadd.f32 %v3934_v10, %v10466_v46 }
 0x662   :  { %v3966_v2 = vpop.f32.mrf.mxu1  ;;  %v10579_v29 = vpop.permute.xlu0 %4096 }
 0x664   :  { %v7165_v26 = vpop.f32.mrf.mxu1 }
 0x665   :  { %v3988_v60 = vadd.f32 %v7165_v26, %v10420_v42  ;;  %v4005_v42 = vmax.f32 %v3975_v61, 0.0  ;;  %v3967_v26 = vadd.f32 %v3966_v2, %v10434_v44  ;;  %v4000_v44 = vmax.f32 %v3956_v31, 0.0 }
 0x666   :  { %v3979_v4 = vpop.f32.mrf.mxu1  ;;  %v3999_v2 = vmax.f32 %v3951_v57, 0.0  ;;  %v10583_v10 = vpop.permute.xlu0 %4076 }
 0x667   :  { %v3980_v25 = vadd.f32 %v3979_v4, %v10424_v63  ;;  %v4008_v20 = vmax.f32 %v3988_v60, 0.0  ;;  %v3964_v63 = vadd.f32 %v3963_v33, %v10432_v39  ;;  %v4003_v4 = vmax.f32 %v3967_v26, 0.0 }
 0x668   :  { %v7166_v34 = vpop.f32.mrf.mxu1  ;;  %v3943_v33 = vadd.f32 %v7154_v21, %v10458_v41 }
 0x669   :  { %v3991_v11 = vadd.f32 %v7166_v34, %v10418_v7  ;;  %v4006_v35 = vmax.f32 %v3980_v25, 0.0  ;;  %v4004_v7 = vmax.f32 %v3972_v55, 0.0  ;;  %v4002_v56 = vmax.f32 %v3964_v63, 0.0 }
 0x66a   :  { %v3982_v6 = vpop.f32.mrf.mxu1  ;;  %v3948_v55 = vadd.f32 %v3947_v19, %v10449_v9  ;;  %v3995_v34 = vmax.f32 %v3935_v62, 0.0  ;;  %v3994_v19 = vmax.f32 %v3932_v50, 0.0 }
 0x66b   :  { %v4009_v14 = vmax.f32 %v3991_v11, 0.0  ;;  %v3983_v40 = vadd.f32 %v3982_v6, %v10426_v0  ;;  %v4265_v60 = vpack.c.bf16 %v4005_v42, %v4004_v7  ;;  %v3959_v0 = vadd.f32 %v7158_v13, %v10443_v32 }
 0x66c   :  { %v3998_v32 = vmax.f32 %v3948_v55, 0.0  ;;  %v3997_v13 = vmax.f32 %v3943_v33, 0.0  ;;  %v4260_v41 = vpack.c.bf16 %v3995_v34, %v3994_v19 }
 0x66d   :  { %v4267_v53 = vpack.c.bf16 %v4009_v14, %v4008_v20  ;;  %v4007_v59 = vmax.f32 %v3983_v40, 0.0  ;;  %v4001_v54 = vmax.f32 %v3959_v0, 0.0  ;;  %v10587_v14 = vpop.permute.xlu0 %4068 }
 0x66e   :  { %v4262_v18 = vpack.c.bf16 %v3999_v2, %v3998_v32  ;;  %v7698_v2 = vld [vmem:[#allocation2 + $0xc0] sm:$0xff]  }
 0x66f   :  { %v4266_v23 = vpack.c.bf16 %v4007_v59, %v4006_v35  ;;  %7199 = vmatprep.subr.bf16.mxu1 %v4267_v53  ;;  %v4264_v59 = vpack.c.bf16 %v4003_v4, %v4002_v56  ;;  %v4263_v39 = vpack.c.bf16 %v4001_v54, %v4000_v44  ;;  %7247 = vmatprep.mubr.bf16.mxu0 %v7698_v2 }
 0x670   :  { %7200 = vmatpush3.bf16.msra.mxu1 %v4267_v53 }
 0x671   :  { %7201 = vmatprep.subr.bf16.mxu1 %v4266_v23  ;;  %v10594_v63 = vpop.permute.xlu0 %4060 }
 0x674   :  { %7202 = vmatpush3.bf16.msra.mxu1 %v4266_v23  ;;  %v3940_v23 = vadd.f32 %v7153_v27, %v10456_v17  ;;  %v10567_v17 = vpop.permute.xlu1 %4092 }
 0x675   :  { %7203 = vmatprep.subr.bf16.mxu1 %v4265_v60 }
 0x676   :  { %v3996_v52 = vmax.f32 %v3940_v23, 0.0 }
 0x678   :  { %7204 = vmatpush3.bf16.msra.mxu1 %v4265_v60  ;;  %v4261_v9 = vpack.c.bf16 %v3997_v13, %v3996_v52  ;;  %v10606_v52 = vpop.permute.xlu0 %4052 }
 0x679   :  { %7205 = vmatprep.subr.bf16.mxu1 %v4264_v59 }
 0x67c   :  { %7206 = vmatpush3.bf16.msra.mxu1 %v4264_v59 }
 0x67d   :  { %7207 = vmatprep.subr.bf16.mxu1 %v4263_v39 }
 0x680   :  { %7208 = vmatpush3.bf16.msra.mxu1 %v4263_v39 }
 0x681   :  { %7209 = vmatprep.subr.bf16.mxu1 %v4262_v18 }
 0x684   :  { %7210 = vmatpush3.bf16.msra.mxu1 %v4262_v18 }
 0x685   :  { %7211 = vmatprep.subr.bf16.mxu1 %v4261_v9 }
 0x688   :  { %7212 = vmatpush3.bf16.msra.mxu1 %v4261_v9 }
 0x689   :  { %7213 = vmatprep.subr.bf16.mxu1 %v4260_v41 }
 0x68c   :  { %7214 = vmatpush3.bf16.msra.mxu1 %v4260_v41 }
 0x68f   :  { %7216 = vmatmul.mubr.bf16.vlgmr.msra.gmra.mxu1 %v10472_v58  ;;  %v10575_v58 = vpop.permute.xlu1 %4084 }
 0x690   :  { %7219 = vmatprep.mubr.bf16.mxu1 %v10474_v36 }
 0x697   :  { %7220 = vmatmul.mubr.bf16.gmra.mxu1 %v10478_v45 }
 0x698   :  { %7223 = vmatprep.mubr.bf16.mxu1 %v10480_v15 }
 0x69f   :  { %7224 = vmatmul.mubr.bf16.gmra.mxu1 %v10484_v16  ;;  %v10581_v16 = vpop.permute.xlu1 %4088 }
 0x6a0   :  { %7227 = vmatprep.mubr.bf16.mxu1 %v10486_v5 }
 0x6a3   :  { %v10585_v11 = vpop.permute.xlu1 %4080 }
 0x6a7   :  { %7228 = vmatmul.mubr.bf16.gmra.mxu1 %v10490_v22  ;;  %v10589_v40 = vpop.permute.xlu1 %4072 }
 0x6a8   :  { %7279 = vmatprep.mubr.bf16.mxu1 %v7698_v2  ;;  %v10641_v2 = vld [vmem:[#allocation2 + $0xf0] sm:$0xff]  }
 0x6ab   :  { %v10598_v56 = vpop.permute.xlu1 %4064 }
 0x6af   :  { %v10604_v62 = vpop.permute.xlu1 %4056 }
 0x6cf   :  { %v10569_v1 = vpop.f32.mrf.mxu0 }
 0x6d1   :  { %v10571_v46 = vpop.f32.mrf.mxu0 }
 0x6d3   :  { %v10573_v27 = vpop.f32.mrf.mxu0 }
 0x6d5   :  { %v10577_v36 = vpop.f32.mrf.mxu0 }
 0x6d7   :  { %v7189_v45 = vpop.f32.mrf.mxu0 }
 0x6d8   :  { %v4206_v34 = vadd.f32 %v7189_v45, %v10594_v63 }
 0x6d9   :  { %v4197_v15 = vpop.f32.mrf.mxu0 }
 0x6db   :  { %v7190_v5 = vpop.f32.mrf.mxu0 }
 0x6dc   :  { %v4209_v18 = vadd.f32 %v7190_v5, %v10598_v56  ;;  %v10611_v5 = vpop.permute.xlu1 %4048 }
 0x6dd   :  { %v4200_v22 = vpop.f32.mrf.mxu0  ;;  %v4193_v45 = vadd.f32 %v10573_v27, %v10611_v5 }
 0x6de   :  { %v4201_v41 = vadd.f32 %v4200_v22, %v10604_v62 }
 0x6df   :  { %v7193_v21 = vpop.f32.mrf.mxu0 }
 0x6e0   :  { %v4222_v26 = vadd.f32 %v7193_v21, %v10583_v10  ;;  %v4198_v21 = vadd.f32 %v4197_v15, %v10606_v52 }
 0x6e1   :  { %v4213_v25 = vpop.f32.mrf.mxu0 }
 0x6e2   :  { %v4254_v44 = vmax.f32 %v4222_v26, 0.0  ;;  %v4214_v55 = vadd.f32 %v4213_v25, %v10587_v14  ;;  %v4251_v25 = vmax.f32 %v4209_v18, 0.0 }
 0x6e3   :  { %v7194_v6 = vpop.f32.mrf.mxu0 }
 0x6e4   :  { %v4225_v4 = vadd.f32 %v7194_v6, %v10585_v11  ;;  %v4252_v50 = vmax.f32 %v4214_v55, 0.0  ;;  %v4250_v6 = vmax.f32 %v4206_v34, 0.0  ;;  %v10639_v55 = vld [vmem:[#allocation2 + $0xe8] sm:$0xff]  }
 0x6e5   :  { %v4216_v20 = vpop.f32.mrf.mxu0 }
 0x6e6   :  { %v4255_v39 = vmax.f32 %v4225_v4, 0.0  ;;  %v4217_v33 = vadd.f32 %v4216_v20, %v10589_v40  ;;  %v4401_v15 = vpack.c.bf16 %v4251_v25, %v4250_v6  ;;  %v4247_v4 = vmax.f32 %v4193_v45, 0.0 }
 0x6e7   :  { %v7197_v61 = vpop.f32.mrf.mxu0 }
 0x6e8   :  { %v4238_v53 = vadd.f32 %v7197_v61, %v10567_v17  ;;  %v4403_v9 = vpack.c.bf16 %v4255_v39, %v4254_v44  ;;  %v4253_v19 = vmax.f32 %v4217_v33, 0.0  ;;  %v10613_v61 = vpop.permute.xlu0 %4044  ;;  %v10629_v44 = vld [vmem:[#allocation2 + $0xd0] sm:$0xff]   ;;  %v10645_v39 = vld [vmem:[#allocation2 + $0xf8] sm:$0xff]   ;;  %v7795_v33 = vmov 6  }
 0x6e9   :  { %v4229_v35 = vpop.f32.mrf.mxu0  ;;  %v4190_v22 = vadd.f32 %v10569_v1, %v10613_v61  ;;  %7513 = vset.pattern.permute.xlu1 %v7795_v33  ;;  %7512 = vset.pattern.permute.xlu0 %v7795_v33 }
 0x6ea   :  { %v4230_v42 = vadd.f32 %v4229_v35, %v10575_v58  ;;  %v4258_v60 = vmax.f32 %v4238_v53, 0.0  ;;  %v4402_v20 = vpack.c.bf16 %v4253_v19, %v4252_v50  ;;  %v4249_v53 = vmax.f32 %v4201_v41, 0.0  ;;  %4467 = vperm.xlu1 %7513, %v10331_v24   ;;  %4463 = vperm.xlu0 %7512, %v10337_v48   ;;  %v11705_v24 = vld [vmem:[#allocation22_spill] sm:$0xff]  ;;  %v11706_v48 = vld [vmem:[#allocation13_spill] sm:$0xff] }
 0x6eb   :  { %v7198_v7 = vpop.f32.mrf.mxu0  ;;  %v4248_v35 = vmax.f32 %v4198_v21, 0.0 }
 0x6ec   :  { %v4241_v0 = vadd.f32 %v7198_v7, %v10579_v29  ;;  %v4256_v54 = vmax.f32 %v4230_v42, 0.0  ;;  %v10619_v42 = vpop.permute.xlu1 %4040  ;;  %v10621_v26 = vpop.permute.xlu0 %4036 }
 0x6ed   :  { %v4232_v31 = vpop.f32.mrf.mxu0  ;;  %v4400_v7 = vpack.c.bf16 %v4249_v53, %v4248_v35 }
 0x6ee   :  { %v4259_v59 = vmax.f32 %v4241_v0, 0.0  ;;  %v4233_v57 = vadd.f32 %v4232_v31, %v10581_v16  ;;  %v4185_v0 = vadd.f32 %v10577_v36, %v10619_v42  ;;  %v4182_v31 = vadd.f32 %v10571_v46, %v10621_v26  ;;  %v10633_v46 = vld [vmem:[#allocation2 + $0xd8] sm:$0xff]   ;;  %v10635_v36 = vld [vmem:[#allocation2 + $0xe0] sm:$0xff]   ;;  %4455 = vperm.xlu1 %7513, %v10343_v3   ;;  %4459 = vperm.xlu0 %7512, %v10349_v43   ;;  %v11707_v3 = vld [vmem:[#allocation58_spill] sm:$0xff] }
 0x6f0   :  { %v4405_v32 = vpack.c.bf16 %v4259_v59, %v4258_v60  ;;  %v4257_v23 = vmax.f32 %v4233_v57, 0.0  ;;  %v4246_v60 = vmax.f32 %v4190_v22, 0.0  ;;  %v4245_v27 = vmax.f32 %v4185_v0, 0.0  ;;  %v10627_v57 = vld [vmem:[#allocation2 + $0xc8] sm:$0xff]  }
 0x6f1   :  { %v4244_v1 = vmax.f32 %v4182_v31, 0.0 }
 0x6f2   :  { %v4404_v13 = vpack.c.bf16 %v4257_v23, %v4256_v54  ;;  %7231 = vmatprep.subr.bf16.mxu0 %v4405_v32  ;;  %v4399_v54 = vpack.c.bf16 %v4247_v4, %v4246_v60  ;;  %4447 = vperm.xlu1 %7513, %v10355_v49  }
 0x6f3   :  { %7232 = vmatpush3.bf16.msra.mxu0 %v4405_v32  ;;  %v4398_v59 = vpack.c.bf16 %v4245_v27, %v4244_v1  ;;  %4451 = vperm.xlu0 %7512, %v10361_v12  }
 0x6f4   :  { %7233 = vmatprep.subr.bf16.mxu0 %v4404_v13 }
 0x6f6   :  { %4439 = vperm.xlu1 %7513, %v10367_v30  }
 0x6f7   :  { %7234 = vmatpush3.bf16.msra.mxu0 %v4404_v13  ;;  %4443 = vperm.xlu0 %7512, %v10373_v8  }
 0x6f8   :  { %7235 = vmatprep.subr.bf16.mxu0 %v4403_v9 }
 0x6fa   :  { %4431 = vperm.xlu1 %7513, %v10379_v28  }
 0x6fb   :  { %7236 = vmatpush3.bf16.msra.mxu0 %v4403_v9  ;;  %4435 = vperm.xlu0 %7512, %v10511_v37  }
 0x6fc   :  { %7237 = vmatprep.subr.bf16.mxu0 %v4402_v20 }
 0x6fe   :  { %4423 = vperm.xlu1 %7513, %v10505_v47  }
 0x6ff   :  { %7238 = vmatpush3.bf16.msra.mxu0 %v4402_v20  ;;  %4427 = vperm.xlu0 %7512, %v10523_v51  }
 0x700   :  { %7239 = vmatprep.subr.bf16.mxu0 %v4401_v15 }
 0x702   :  { %4415 = vperm.xlu1 %7513, %v10517_v38  }
 0x703   :  { %7240 = vmatpush3.bf16.msra.mxu0 %v4401_v15  ;;  %4419 = vperm.xlu0 %7512, %v11705_v24  }
 0x704   :  { %7241 = vmatprep.subr.bf16.mxu0 %v4400_v7 }
 0x706   :  { %4407 = vperm.xlu1 %7513, %v11706_v48  }
 0x707   :  { %7242 = vmatpush3.bf16.msra.mxu0 %v4400_v7  ;;  %4411 = vperm.xlu0 %7512, %v11707_v3  }
 0x708   :  { %7243 = vmatprep.subr.bf16.mxu0 %v4399_v54 }
 0x70b   :  { %7244 = vmatpush3.bf16.msra.mxu0 %v4399_v54 }
 0x70c   :  { %7245 = vmatprep.subr.bf16.mxu0 %v4398_v59 }
 0x70f   :  { %7246 = vmatpush3.bf16.msra.mxu0 %v4398_v59 }
 0x712   :  { %7248 = vmatmul.mubr.bf16.vlgmr.msra.gmra.mxu0 %v10627_v57 }
 0x713   :  { %7251 = vmatprep.mubr.bf16.mxu0 %v10629_v44 }
 0x71a   :  { %7252 = vmatmul.mubr.bf16.gmra.mxu0 %v10633_v46 }
 0x71b   :  { %7255 = vmatprep.mubr.bf16.mxu0 %v10635_v36 }
 0x722   :  { %7256 = vmatmul.mubr.bf16.gmra.mxu0 %v10639_v55 }
 0x723   :  { %7259 = vmatprep.mubr.bf16.mxu0 %v10641_v2 }
 0x72a   :  { %7260 = vmatmul.mubr.bf16.gmra.mxu0 %v10645_v39 }
 0x74f   :  { %v7217_v43 = vpop.f32.mrf.mxu1 }
 0x751   :  { %v4302_v49 = vpop.f32.mrf.mxu1 }
 0x753   :  { %v7218_v12 = vpop.f32.mrf.mxu1 }
 0x755   :  { %v4305_v30 = vpop.f32.mrf.mxu1 }
 0x757   :  { %v7221_v8 = vpop.f32.mrf.mxu1 }
 0x758   :  { %v4327_v54 = vadd.f32 %v7221_v8, %v10594_v63  ;;  %v4306_v8 = vadd.f32 %v4305_v30, %v10619_v42 }
 0x759   :  { %v4318_v28 = vpop.f32.mrf.mxu1 }
 0x75b   :  { %v7222_v32 = vpop.f32.mrf.mxu1 }
 0x75d   :  { %v4321_v23 = vpop.f32.mrf.mxu1 }
 0x75e   :  { %v4322_v33 = vadd.f32 %v4321_v23, %v10604_v62  ;;  %v4303_v23 = vadd.f32 %v4302_v49, %v10621_v26 }
 0x75f   :  { %v7225_v13 = vpop.f32.mrf.mxu1 }
 0x760   :  { %v4343_v60 = vadd.f32 %v7225_v13, %v10583_v10  ;;  %v4319_v13 = vadd.f32 %v4318_v28, %v10606_v52  ;;  %v4365_v28 = vmax.f32 %v4303_v23, 0.0 }
 0x761   :  { %v4334_v18 = vpop.f32.mrf.mxu1 }
 0x763   :  { %v7226_v50 = vpop.f32.mrf.mxu1 }
 0x764   :  { %v4346_v22 = vadd.f32 %v7226_v50, %v10585_v11  ;;  %v4370_v50 = vmax.f32 %v4322_v33, 0.0 }
 0x765   :  { %v4337_v34 = vpop.f32.mrf.mxu1 }
 0x766   :  { %v4338_v31 = vadd.f32 %v4337_v34, %v10589_v40  ;;  %v4371_v40 = vmax.f32 %v4327_v54, 0.0  ;;  %v7706_v54 = vld [vmem:[#allocation2 + $0x100] sm:$0xff]  }
 0x767   :  { %v7229_v9 = vpop.f32.mrf.mxu1  ;;  %7311 = vmatprep.mubr.bf16.mxu0 %v7706_v54 }
 0x768   :  { %v4359_v41 = vadd.f32 %v7229_v9, %v10567_v17  ;;  %v4376_v17 = vmax.f32 %v4346_v22, 0.0  ;;  %v4374_v27 = vmax.f32 %v4338_v31, 0.0  ;;  %v4366_v9 = vmax.f32 %v4306_v8, 0.0 }
 0x769   :  { %v4350_v19 = vpop.f32.mrf.mxu1 }
 0x76a   :  { %v4351_v25 = vadd.f32 %v4350_v19, %v10575_v58  ;;  %v4379_v53 = vmax.f32 %v4359_v41, 0.0  ;;  %v4375_v58 = vmax.f32 %v4343_v60, 0.0 }
 0x76b   :  { %v7230_v21 = vpop.f32.mrf.mxu1 }
 0x76c   :  { %v4362_v6 = vadd.f32 %v7230_v21, %v10579_v29  ;;  %v4377_v15 = vmax.f32 %v4351_v25, 0.0  ;;  %v4335_v29 = vadd.f32 %v4334_v18, %v10587_v14  ;;  %v4636_v1 = vpack.c.bf16 %v4376_v17, %v4375_v58 }
 0x76d   :  { %v4353_v20 = vpop.f32.mrf.mxu1  ;;  %v4314_v18 = vadd.f32 %v7218_v12, %v10611_v5  ;;  %v4631_v5 = vpack.c.bf16 %v4366_v9, %v4365_v28 }
 0x76e   :  { %v4380_v35 = vmax.f32 %v4362_v6, 0.0  ;;  %v4354_v45 = vadd.f32 %v4353_v20, %v10581_v16  ;;  %v4330_v16 = vadd.f32 %v7222_v32, %v10598_v56  ;;  %v4373_v11 = vmax.f32 %v4335_v29, 0.0 }
 0x76f   :  { %v4369_v56 = vmax.f32 %v4319_v13, 0.0  ;;  %v4311_v32 = vadd.f32 %v7217_v43, %v10613_v61  ;;  %v4368_v34 = vmax.f32 %v4314_v18, 0.0  ;;  %v10693_v43 = vpop.permute.xlu1 %4467 }
 0x770   :  { %v4638_v7 = vpack.c.bf16 %v4380_v35, %v4379_v53  ;;  %v4378_v4 = vmax.f32 %v4354_v45, 0.0  ;;  %v4372_v10 = vmax.f32 %v4330_v16, 0.0  ;;  %v4635_v59 = vpack.c.bf16 %v4374_v27, %v4373_v11 }
 0x771   :  { %v4633_v63 = vpack.c.bf16 %v4370_v50, %v4369_v56  ;;  %v4367_v62 = vmax.f32 %v4311_v32, 0.0 }
 0x772   :  { %v4637_v0 = vpack.c.bf16 %v4378_v4, %v4377_v15  ;;  %7263 = vmatprep.subr.bf16.mxu1 %v4638_v7  ;;  %v4634_v14 = vpack.c.bf16 %v4372_v10, %v4371_v40 }
 0x773   :  { %7264 = vmatpush3.bf16.msra.mxu1 %v4638_v7  ;;  %v4632_v52 = vpack.c.bf16 %v4368_v34, %v4367_v62  ;;  %v10699_v49 = vpop.permute.xlu1 %4455 }
 0x774   :  { %7265 = vmatprep.subr.bf16.mxu1 %v4637_v0 }
 0x777   :  { %7266 = vmatpush3.bf16.msra.mxu1 %v4637_v0  ;;  %v10703_v30 = vpop.permute.xlu1 %4447 }
 0x778   :  { %7267 = vmatprep.subr.bf16.mxu1 %v4636_v1 }
 0x77b   :  { %7268 = vmatpush3.bf16.msra.mxu1 %v4636_v1  ;;  %v10707_v6 = vpop.permute.xlu1 %4439 }
 0x77c   :  { %7269 = vmatprep.subr.bf16.mxu1 %v4635_v59 }
 0x77f   :  { %7270 = vmatpush3.bf16.msra.mxu1 %v4635_v59  ;;  %v10714_v4 = vpop.permute.xlu1 %4431 }
 0x780   :  { %7271 = vmatprep.subr.bf16.mxu1 %v4634_v14 }
 0x783   :  { %7272 = vmatpush3.bf16.msra.mxu1 %v4634_v14  ;;  %v10724_v14 = vpop.permute.xlu1 %4423 }
 0x784   :  { %7273 = vmatprep.subr.bf16.mxu1 %v4633_v63 }
 0x787   :  { %7274 = vmatpush3.bf16.msra.mxu1 %v4633_v63  ;;  %v10731_v28 = vpop.permute.xlu1 %4415 }
 0x788   :  { %7275 = vmatprep.subr.bf16.mxu1 %v4632_v52 }
 0x78b   :  { %7276 = vmatpush3.bf16.msra.mxu1 %v4632_v52 }
 0x78c   :  { %7277 = vmatprep.subr.bf16.mxu1 %v4631_v5 }
 0x78f   :  { %7278 = vmatpush3.bf16.msra.mxu1 %v4631_v5 }
 0x792   :  { %7280 = vmatmul.mubr.bf16.vlgmr.msra.gmra.mxu1 %v10627_v57  ;;  %v10695_v57 = vpop.permute.xlu0 %4463 }
 0x793   :  { %7283 = vmatprep.mubr.bf16.mxu1 %v10629_v44 }
 0x79a   :  { %7284 = vmatmul.mubr.bf16.gmra.mxu1 %v10633_v46 }
 0x79b   :  { %7287 = vmatprep.mubr.bf16.mxu1 %v10635_v36 }
 0x7a2   :  { %7288 = vmatmul.mubr.bf16.gmra.mxu1 %v10639_v55  ;;  %v10701_v55 = vpop.permute.xlu0 %4459 }
 0x7a3   :  { %7291 = vmatprep.mubr.bf16.mxu1 %v10641_v2 }
 0x7a6   :  { %v10705_v19 = vpop.permute.xlu0 %4451 }
 0x7aa   :  { %7292 = vmatmul.mubr.bf16.gmra.mxu1 %v10645_v39  ;;  %v10709_v20 = vpop.permute.xlu0 %4443 }
 0x7ab   :  { %7343 = vmatprep.mubr.bf16.mxu1 %v7706_v54  ;;  %v10789_v54 = vld [vmem:[%s11106_s5 + $0x50] sm:$0xff] }
 0x7ae   :  { %v10718_v31 = vpop.permute.xlu0 %4435 }
 0x7b2   :  { %v10726_v18 = vpop.permute.xlu0 %4427 }
 0x7b6   :  { %v10733_v5 = vpop.permute.xlu0 %4419 }
 0x7d2   :  { %v10687_v61 = vpop.f32.mrf.mxu0 }
 0x7d4   :  { %v10689_v42 = vpop.f32.mrf.mxu0 }
 0x7d6   :  { %v10691_v26 = vpop.f32.mrf.mxu0 }
 0x7d8   :  { %v10697_v44 = vpop.f32.mrf.mxu0 }
 0x7da   :  { %v7253_v46 = vpop.f32.mrf.mxu0 }
 0x7db   :  { %v4577_v50 = vadd.f32 %v7253_v46, %v10714_v4 }
 0x7dc   :  { %v4568_v36 = vpop.f32.mrf.mxu0 }
 0x7dd   :  { %v4569_v8 = vadd.f32 %v4568_v36, %v10724_v14  ;;  %v4621_v23 = vmax.f32 %v4577_v50, 0.0  ;;  %v4564_v36 = vadd.f32 %v10691_v26, %v10733_v5 }
 0x7de   :  { %v7254_v2 = vpop.f32.mrf.mxu0 }
 0x7df   :  { %v4580_v32 = vadd.f32 %v7254_v2, %v10718_v31  ;;  %v4619_v46 = vmax.f32 %v4569_v8, 0.0  ;;  %v4561_v2 = vadd.f32 %v10687_v61, %v10731_v28 }
 0x7e0   :  { %v4571_v39 = vpop.f32.mrf.mxu0 }
 0x7e1   :  { %v4572_v62 = vadd.f32 %v4571_v39, %v10726_v18  ;;  %v4622_v9 = vmax.f32 %v4580_v32, 0.0 }
 0x7e2   :  { %v7257_v12 = vpop.f32.mrf.mxu0 }
 0x7e3   :  { %v4593_v15 = vadd.f32 %v7257_v12, %v10703_v30  ;;  %v4620_v12 = vmax.f32 %v4572_v62, 0.0  ;;  %v4772_v39 = vpack.c.bf16 %v4622_v9, %v4621_v23 }
 0x7e4   :  { %v4584_v41 = vpop.f32.mrf.mxu0 }
 0x7e5   :  { %v4625_v16 = vmax.f32 %v4593_v15, 0.0  ;;  %v4585_v11 = vadd.f32 %v4584_v41, %v10707_v6  ;;  %v10739_v41 = vpop.permute.xlu1 %4407 }
 0x7e6   :  { %v7258_v21 = vpop.f32.mrf.mxu0 }
 0x7e7   :  { %v4596_v60 = vadd.f32 %v7258_v21, %v10705_v19  ;;  %v4623_v56 = vmax.f32 %v4585_v11, 0.0  ;;  %v10741_v21 = vpop.permute.xlu0 %4411  ;;  %v10783_v11 = vld [vmem:[%s11106_s5 + $0x60] sm:$0xff] }
 0x7e8   :  { %v4587_v25 = vpop.f32.mrf.mxu0 }
 0x7e9   :  { %v4626_v10 = vmax.f32 %v4596_v60, 0.0  ;;  %v4588_v59 = vadd.f32 %v4587_v25, %v10709_v20  ;;  %v4771_v25 = vpack.c.bf16 %v4620_v12, %v4619_v46  ;;  %v10747_v60 = vld [vmem:[#allocation2 + $0x108] sm:$0xff]  }
 0x7ea   :  { %v7261_v53 = vpop.f32.mrf.mxu0 }
 0x7eb   :  { %v4609_v35 = vadd.f32 %v7261_v53, %v10695_v57  ;;  %v4774_v34 = vpack.c.bf16 %v4626_v10, %v4625_v16  ;;  %v4624_v63 = vmax.f32 %v4588_v59, 0.0  ;;  %v4617_v53 = vmax.f32 %v4561_v2, 0.0  ;;  %v10777_v16 = vld [vmem:[%s11106_s5 + $0x78] sm:$0xff]  ;;  %v10795_v10 = vld [vmem:[%s11106_s5 + $0x68] sm:$0xff]  ;;  %v10801_v59 = vld [vmem:[%s11106_s5 + $0x40] sm:$0xff] }
 0x7ec   :  { %v4600_v45 = vpop.f32.mrf.mxu0 }
 0x7ed   :  { %v4601_v22 = vadd.f32 %v4600_v45, %v10699_v49  ;;  %v4629_v0 = vmax.f32 %v4609_v35, 0.0  ;;  %v4773_v52 = vpack.c.bf16 %v4624_v63, %v4623_v56  ;;  %v4618_v35 = vmax.f32 %v4564_v36, 0.0 }
 0x7ee   :  { %v7262_v7 = vpop.f32.mrf.mxu0  ;;  %v4553_v45 = vadd.f32 %v10689_v42, %v10739_v41  ;;  %v10753_v42 = vld [vmem:[#allocation2 + $0x118] sm:$0xff]  }
 0x7ef   :  { %v4612_v17 = vadd.f32 %v7262_v7, %v10693_v43  ;;  %v4627_v29 = vmax.f32 %v4601_v22, 0.0  ;;  %v4556_v22 = vadd.f32 %v10697_v44, %v10741_v21  ;;  %v4770_v15 = vpack.c.bf16 %v4618_v35, %v4617_v53  ;;  %v10755_v44 = vld [vmem:[#allocation2 + $0x120] sm:$0xff]  }
 0x7f0   :  { %v4603_v58 = vpop.f32.mrf.mxu0  ;;  %v4615_v61 = vmax.f32 %v4553_v45, 0.0 }
 0x7f1   :  { %v4630_v27 = vmax.f32 %v4612_v17, 0.0  ;;  %v4604_v1 = vadd.f32 %v4603_v58, %v10701_v55  ;;  %v4616_v26 = vmax.f32 %v4556_v22, 0.0  ;;  %v10759_v17 = vld [vmem:[#allocation2 + $0x128] sm:$0xff]   ;;  %v10761_v58 = vld [vmem:[#allocation2 + $0x130] sm:$0xff]  }
 0x7f3   :  { %v4776_v33 = vpack.c.bf16 %v4630_v27, %v4629_v0  ;;  %v4628_v40 = vmax.f32 %v4604_v1, 0.0  ;;  %v4769_v7 = vpack.c.bf16 %v4616_v26, %v4615_v61  ;;  %v10749_v0 = vld [vmem:[#allocation2 + $0x110] sm:$0xff]   ;;  %v7796_v27 = vmov 7  }
 0x7f4   :  { %7514 = vset.pattern.permute.xlu1 %v7796_v27  ;;  %7515 = vset.pattern.permute.xlu0 %v7796_v27  ;;  %v10771_v1 = vld [vmem:[%s11106_s5 + $0x70] sm:$0xff] }
 0x7f5   :  { %v4775_v13 = vpack.c.bf16 %v4628_v40, %v4627_v29  ;;  %7295 = vmatprep.subr.bf16.mxu0 %v4776_v33  ;;  %v10765_v29 = vld [vmem:[#allocation2 + $0x138] sm:$0xff]   ;;  %4834 = vperm.xlu1 %7514, %v10771_v1   ;;  %v10813_v40 = vld [vmem:[%s11106_s5 + $0x30] sm:$0xff] }
 0x7f6   :  { %7296 = vmatpush3.bf16.msra.mxu0 %v4776_v33  ;;  %4838 = vperm.xlu0 %7515, %v10777_v16   ;;  %v10807_v33 = vld [vmem:[%s11106_s5 + $0x58] sm:$0xff] }
 0x7f7   :  { %7297 = vmatprep.subr.bf16.mxu0 %v4775_v13 }
 0x7f9   :  { %4826 = vperm.xlu1 %7514, %v10783_v11  }
 0x7fa   :  { %7298 = vmatpush3.bf16.msra.mxu0 %v4775_v13  ;;  %4818 = vperm.xlu0 %7515, %v10789_v54   ;;  %v10819_v13 = vld [vmem:[%s11106_s5 + $0x48] sm:$0xff] }
 0x7fb   :  { %7299 = vmatprep.subr.bf16.mxu0 %v4774_v34 }
 0x7fd   :  { %4830 = vperm.xlu1 %7514, %v10795_v10  }
 0x7fe   :  { %7300 = vmatpush3.bf16.msra.mxu0 %v4774_v34  ;;  %4810 = vperm.xlu0 %7515, %v10801_v59  }
 0x7ff   :  { %7301 = vmatprep.subr.bf16.mxu0 %v4773_v52 }
 0x801   :  { %4822 = vperm.xlu1 %7514, %v10807_v33  }
 0x802   :  { %7302 = vmatpush3.bf16.msra.mxu0 %v4773_v52  ;;  %4802 = vperm.xlu0 %7515, %v10813_v40  }
 0x803   :  { %7303 = vmatprep.subr.bf16.mxu0 %v4772_v39 }
 0x805   :  { %4814 = vperm.xlu1 %7514, %v10819_v13  }
 0x806   :  { %7304 = vmatpush3.bf16.msra.mxu0 %v4772_v39  ;;  %4794 = vperm.xlu0 %7515, %v10505_v47  }
 0x807   :  { %7305 = vmatprep.subr.bf16.mxu0 %v4771_v25 }
 0x809   :  { %4806 = vperm.xlu1 %7514, %v10511_v37  }
 0x80a   :  { %7306 = vmatpush3.bf16.msra.mxu0 %v4771_v25  ;;  %4786 = vperm.xlu0 %7515, %v10517_v38  }
 0x80b   :  { %7307 = vmatprep.subr.bf16.mxu0 %v4770_v15 }
 0x80d   :  { %4798 = vperm.xlu1 %7514, %v10523_v51  }
 0x80e   :  { %7308 = vmatpush3.bf16.msra.mxu0 %v4770_v15  ;;  %4778 = vperm.xlu0 %7515, %v11706_v48  }
 0x80f   :  { %7309 = vmatprep.subr.bf16.mxu0 %v4769_v7 }
 0x811   :  { %4790 = vperm.xlu1 %7514, %v11705_v24  }
 0x812   :  { %7310 = vmatpush3.bf16.msra.mxu0 %v4769_v7 }
 0x815   :  { %7312 = vmatmul.mubr.bf16.vlgmr.msra.gmra.mxu0 %v10747_v60  ;;  %4782 = vperm.xlu1 %7514, %v11707_v3  }
 0x816   :  { %7315 = vmatprep.mubr.bf16.mxu0 %v10749_v0 }
 0x81d   :  { %7316 = vmatmul.mubr.bf16.gmra.mxu0 %v10753_v42 }
 0x81e   :  { %7319 = vmatprep.mubr.bf16.mxu0 %v10755_v44 }
 0x825   :  { %7320 = vmatmul.mubr.bf16.gmra.mxu0 %v10759_v17 }
 0x826   :  { %7323 = vmatprep.mubr.bf16.mxu0 %v10761_v58 }
 0x82d   :  { %7324 = vmatmul.mubr.bf16.gmra.mxu0 %v10765_v29 }
 0x852   :  { %v7281_v50 = vpop.f32.mrf.mxu1 }
 0x854   :  { %v4673_v56 = vpop.f32.mrf.mxu1 }
 0x856   :  { %v7282_v32 = vpop.f32.mrf.mxu1 }
 0x858   :  { %v4676_v34 = vpop.f32.mrf.mxu1 }
 0x85a   :  { %v7285_v63 = vpop.f32.mrf.mxu1 }
 0x85b   :  { %v4698_v27 = vadd.f32 %v7285_v63, %v10714_v4  ;;  %v4677_v63 = vadd.f32 %v4676_v34, %v10741_v21 }
 0x85c   :  { %v4689_v8 = vpop.f32.mrf.mxu1 }
 0x85e   :  { %v7286_v62 = vpop.f32.mrf.mxu1 }
 0x860   :  { %v4692_v47 = vpop.f32.mrf.mxu1 }
 0x862   :  { %v7289_v23 = vpop.f32.mrf.mxu1 }
 0x863   :  { %v4714_v22 = vadd.f32 %v7289_v23, %v10703_v30 }
 0x864   :  { %v4705_v37 = vpop.f32.mrf.mxu1 }
 0x866   :  { %v7290_v9 = vpop.f32.mrf.mxu1 }
 0x867   :  { %v4717_v25 = vadd.f32 %v7290_v9, %v10705_v19  ;;  %v4693_v9 = vadd.f32 %v4692_v47, %v10726_v18  ;;  %v4674_v47 = vadd.f32 %v4673_v56, %v10739_v41 }
 0x868   :  { %v4708_v38 = vpop.f32.mrf.mxu1 }
 0x869   :  { %v4709_v26 = vadd.f32 %v4708_v38, %v10709_v20  ;;  %v4742_v20 = vmax.f32 %v4698_v27, 0.0  ;;  %v4690_v38 = vadd.f32 %v4689_v8, %v10724_v14  ;;  %v4736_v8 = vmax.f32 %v4674_v47, 0.0 }
 0x86a   :  { %v7293_v52 = vpop.f32.mrf.mxu1 }
 0x86b   :  { %v4730_v48 = vadd.f32 %v7293_v52, %v10695_v57  ;;  %v4747_v57 = vmax.f32 %v4717_v25, 0.0  ;;  %v4745_v15 = vmax.f32 %v4709_v26, 0.0  ;;  %v4741_v52 = vmax.f32 %v4693_v9, 0.0 }
 0x86c   :  { %v4721_v51 = vpop.f32.mrf.mxu1 }
 0x86d   :  { %v4722_v3 = vadd.f32 %v4721_v51, %v10699_v49  ;;  %v4750_v2 = vmax.f32 %v4730_v48, 0.0  ;;  %v4706_v49 = vadd.f32 %v4705_v37, %v10707_v6  ;;  %v4685_v37 = vadd.f32 %v7282_v32, %v10733_v5 }
 0x86e   :  { %v7294_v46 = vpop.f32.mrf.mxu1  ;;  %v4737_v48 = vmax.f32 %v4677_v63, 0.0 }
 0x86f   :  { %v4733_v24 = vadd.f32 %v7294_v46, %v10693_v43  ;;  %v4748_v35 = vmax.f32 %v4722_v3, 0.0  ;;  %v4746_v43 = vmax.f32 %v4714_v22, 0.0  ;;  %v4744_v19 = vmax.f32 %v4706_v49, 0.0 }
 0x870   :  { %v4724_v12 = vpop.f32.mrf.mxu1  ;;  %v4739_v51 = vmax.f32 %v4685_v37, 0.0  ;;  %v5002_v5 = vpack.c.bf16 %v4737_v48, %v4736_v8 }
 0x871   :  { %v4751_v36 = vmax.f32 %v4733_v24, 0.0  ;;  %v4725_v39 = vadd.f32 %v4724_v12, %v10701_v55  ;;  %v5007_v7 = vpack.c.bf16 %v4747_v57, %v4746_v43  ;;  %v4701_v55 = vadd.f32 %v7286_v62, %v10718_v31  ;;  %v10864_v56 = vpop.permute.xlu0 %4838 }
 0x872   :  { %v5006_v23 = vpack.c.bf16 %v4745_v15, %v4744_v19  ;;  %v4740_v31 = vmax.f32 %v4690_v38, 0.0  ;;  %v4682_v62 = vadd.f32 %v7281_v50, %v10731_v28  ;;  %v10852_v28 = vpop.permute.xlu1 %4834 }
 0x873   :  { %v5009_v53 = vpack.c.bf16 %v4751_v36, %v4750_v2  ;;  %v4749_v45 = vmax.f32 %v4725_v39, 0.0  ;;  %v4743_v30 = vmax.f32 %v4701_v55, 0.0 }
 0x874   :  { %v5004_v4 = vpack.c.bf16 %v4741_v52, %v4740_v31  ;;  %v4738_v18 = vmax.f32 %v4682_v62, 0.0  ;;  %v7714_v62 = vld [vmem:[#allocation2 + $0x140] sm:$0xff]  }
 0x875   :  { %v5008_v61 = vpack.c.bf16 %v4749_v45, %v4748_v35  ;;  %7327 = vmatprep.subr.bf16.mxu1 %v5009_v53  ;;  %v5005_v6 = vpack.c.bf16 %v4743_v30, %v4742_v20  ;;  %v10868_v34 = vpop.permute.xlu0 %4818  ;;  %7375 = vmatprep.mubr.bf16.mxu0 %v7714_v62 }
 0x876   :  { %7328 = vmatpush3.bf16.msra.mxu1 %v5009_v53  ;;  %v5003_v14 = vpack.c.bf16 %v4739_v51, %v4738_v18 }
 0x877   :  { %7329 = vmatprep.subr.bf16.mxu1 %v5008_v61 }
 0x879   :  { %v10872_v2 = vpop.permute.xlu0 %4810 }
 0x87a   :  { %7330 = vmatpush3.bf16.msra.mxu1 %v5008_v61 }
 0x87b   :  { %7331 = vmatprep.subr.bf16.mxu1 %v5007_v7 }
 0x87d   :  { %v10879_v61 = vpop.permute.xlu0 %4802 }
 0x87e   :  { %7332 = vmatpush3.bf16.msra.mxu1 %v5007_v7 }
 0x87f   :  { %7333 = vmatprep.subr.bf16.mxu1 %v5006_v23 }
 0x881   :  { %v10891_v31 = vpop.permute.xlu0 %4794 }
 0x882   :  { %7334 = vmatpush3.bf16.msra.mxu1 %v5006_v23 }
 0x883   :  { %7335 = vmatprep.subr.bf16.mxu1 %v5005_v6 }
 0x886   :  { %7336 = vmatpush3.bf16.msra.mxu1 %v5005_v6 }
 0x887   :  { %7337 = vmatprep.subr.bf16.mxu1 %v5004_v4 }
 0x88a   :  { %7338 = vmatpush3.bf16.msra.mxu1 %v5004_v4 }
 0x88b   :  { %7339 = vmatprep.subr.bf16.mxu1 %v5003_v14 }
 0x88e   :  { %7340 = vmatpush3.bf16.msra.mxu1 %v5003_v14 }
 0x88f   :  { %7341 = vmatprep.subr.bf16.mxu1 %v5002_v5 }
 0x892   :  { %7342 = vmatpush3.bf16.msra.mxu1 %v5002_v5 }
 0x895   :  { %7344 = vmatmul.mubr.bf16.vlgmr.msra.gmra.mxu1 %v10747_v60  ;;  %v10860_v60 = vpop.permute.xlu1 %4826 }
 0x896   :  { %7347 = vmatprep.mubr.bf16.mxu1 %v10749_v0 }
 0x89d   :  { %7348 = vmatmul.mubr.bf16.gmra.mxu1 %v10753_v42 }
 0x89e   :  { %7351 = vmatprep.mubr.bf16.mxu1 %v10755_v44 }
 0x8a5   :  { %7352 = vmatmul.mubr.bf16.gmra.mxu1 %v10759_v17  ;;  %v10866_v17 = vpop.permute.xlu1 %4830 }
 0x8a6   :  { %7355 = vmatprep.mubr.bf16.mxu1 %v10761_v58 }
 0x8a9   :  { %v10870_v46 = vpop.permute.xlu1 %4822 }
 0x8ad   :  { %7356 = vmatmul.mubr.bf16.gmra.mxu1 %v10765_v29  ;;  %v10874_v36 = vpop.permute.xlu1 %4814 }
 0x8ae   :  { %7407 = vmatprep.mubr.bf16.mxu1 %v7714_v62 }
 0x8b1   :  { %v10883_v49 = vpop.permute.xlu1 %4806 }
 0x8b5   :  { %v10889_v37 = vpop.permute.xlu1 %4798 }
 0x8d5   :  { %v10854_v41 = vpop.f32.mrf.mxu0 }
 0x8d7   :  { %v10856_v21 = vpop.f32.mrf.mxu0 }
 0x8d9   :  { %v10858_v50 = vpop.f32.mrf.mxu0 }
 0x8db   :  { %v10862_v0 = vpop.f32.mrf.mxu0 }
 0x8dd   :  { %v7317_v42 = vpop.f32.mrf.mxu0 }
 0x8de   :  { %v4948_v4 = vadd.f32 %v7317_v42, %v10879_v61 }
 0x8df   :  { %v4939_v44 = vpop.f32.mrf.mxu0 }
 0x8e0   :  { %v4940_v48 = vadd.f32 %v4939_v44, %v10891_v31  ;;  %v4992_v8 = vmax.f32 %v4948_v4, 0.0 }
 0x8e1   :  { %v7318_v58 = vpop.f32.mrf.mxu0 }
 0x8e2   :  { %v4951_v6 = vadd.f32 %v7318_v58, %v10883_v49  ;;  %v10896_v58 = vpop.permute.xlu1 %4790  ;;  %v4990_v42 = vmax.f32 %v4940_v48, 0.0 }
 0x8e3   :  { %v4942_v29 = vpop.f32.mrf.mxu0 }
 0x8e4   :  { %v4943_v47 = vadd.f32 %v4942_v29, %v10889_v37  ;;  %v4993_v14 = vmax.f32 %v4951_v6, 0.0 }
 0x8e5   :  { %v7321_v32 = vpop.f32.mrf.mxu0 }
 0x8e6   :  { %v4964_v45 = vadd.f32 %v7321_v32, %v10868_v34  ;;  %v10898_v32 = vpop.permute.xlu0 %4786  ;;  %v5143_v44 = vpack.c.bf16 %v4993_v14, %v4992_v8 }
 0x8e7   :  { %v4955_v24 = vpop.f32.mrf.mxu0  ;;  %v4932_v29 = vadd.f32 %v10854_v41, %v10898_v32 }
 0x8e8   :  { %v4996_v27 = vmax.f32 %v4964_v45, 0.0  ;;  %v4956_v30 = vadd.f32 %v4955_v24, %v10872_v2  ;;  %v4991_v24 = vmax.f32 %v4943_v47, 0.0 }
 0x8e9   :  { %v7322_v3 = vpop.f32.mrf.mxu0 }
 0x8ea   :  { %v4967_v57 = vadd.f32 %v7322_v3, %v10870_v46  ;;  %v4994_v51 = vmax.f32 %v4956_v30, 0.0  ;;  %v4935_v3 = vadd.f32 %v10858_v50, %v10896_v58 }
 0x8eb   :  { %v4958_v12 = vpop.f32.mrf.mxu0 }
 0x8ec   :  { %v4997_v23 = vmax.f32 %v4967_v57, 0.0  ;;  %v4959_v9 = vadd.f32 %v4958_v12, %v10874_v36  ;;  %v10904_v12 = vpop.permute.xlu1 %4782 }
 0x8ed   :  { %v7325_v39 = vpop.f32.mrf.mxu0  ;;  %v4927_v45 = vadd.f32 %v10862_v0, %v10904_v12  ;;  %v10920_v0 = vld [vmem:[#allocation2 + $0x160] sm:$0xff]  }
 0x8ee   :  { %v4980_v25 = vadd.f32 %v7325_v39, %v10852_v28  ;;  %v5145_v63 = vpack.c.bf16 %v4997_v23, %v4996_v27  ;;  %v4995_v18 = vmax.f32 %v4959_v9, 0.0  ;;  %v10906_v39 = vpop.permute.xlu0 %4778  ;;  %v7797_v27 = vmov 8  }
 0x8ef   :  { %v4971_v53 = vpop.f32.mrf.mxu0  ;;  %v4987_v50 = vmax.f32 %v4927_v45, 0.0  ;;  %7517 = vset.pattern.permute.xlu1 %v7797_v27  ;;  %7516 = vset.pattern.permute.xlu0 %v7797_v27 }
 0x8f0   :  { %v4972_v35 = vadd.f32 %v4971_v53, %v10860_v60  ;;  %v5000_v26 = vmax.f32 %v4980_v25, 0.0  ;;  %v5144_v5 = vpack.c.bf16 %v4995_v18, %v4994_v51  ;;  %v5142_v25 = vpack.c.bf16 %v4991_v24, %v4990_v42  ;;  %5209 = vperm.xlu1 %7517, %v10777_v16   ;;  %5205 = vperm.xlu0 %7516, %v10771_v1   ;;  %v7757_v16 = vld [vmem:[%s11106_s5 + $0x38] sm:$0xff]  ;;  %v7758_v1 = vld [vmem:[%s11106_s5 + $0x20] sm:$0xff] }
 0x8f1   :  { %v7326_v22 = vpop.f32.mrf.mxu0  ;;  %v4989_v53 = vmax.f32 %v4935_v3, 0.0 }
 0x8f2   :  { %v4983_v43 = vadd.f32 %v7326_v22, %v10864_v56  ;;  %v4998_v7 = vmax.f32 %v4972_v35, 0.0  ;;  %v4988_v35 = vmax.f32 %v4932_v29, 0.0  ;;  %v4924_v22 = vadd.f32 %v10856_v21, %v10906_v39  ;;  %v10918_v21 = vld [vmem:[#allocation2 + $0x158] sm:$0xff]  }
 0x8f3   :  { %v4974_v15 = vpop.f32.mrf.mxu0 }
 0x8f4   :  { %v5001_v55 = vmax.f32 %v4983_v43, 0.0  ;;  %v4975_v19 = vadd.f32 %v4974_v15, %v10866_v17  ;;  %v4986_v41 = vmax.f32 %v4924_v22, 0.0  ;;  %v5141_v57 = vpack.c.bf16 %v4989_v53, %v4988_v35  ;;  %v10912_v43 = vld [vmem:[#allocation2 + $0x148] sm:$0xff]   ;;  %v10914_v15 = vld [vmem:[#allocation2 + $0x150] sm:$0xff]   ;;  %5197 = vperm.xlu1 %7517, %v10783_v11   ;;  %5201 = vperm.xlu0 %7516, %v10795_v10   ;;  %v7761_v10 = vld [vmem:[%s11106_s5 + $0x18] sm:$0xff] }
 0x8f5   :  { %v7759_v11 = vld [vmem:[%s11106_s5 + $0x28] sm:$0xff] }
 0x8f6   :  { %v5147_v20 = vpack.c.bf16 %v5001_v55, %v5000_v26  ;;  %v4999_v38 = vmax.f32 %v4975_v19, 0.0  ;;  %v5140_v26 = vpack.c.bf16 %v4987_v50, %v4986_v41  ;;  %v10926_v55 = vld [vmem:[#allocation2 + $0x170] sm:$0xff]   ;;  %v10930_v19 = vld [vmem:[#allocation2 + $0x178] sm:$0xff]  }
 0x8f8   :  { %v5146_v52 = vpack.c.bf16 %v4999_v38, %v4998_v7  ;;  %7359 = vmatprep.subr.bf16.mxu0 %v5147_v20  ;;  %v10924_v7 = vld [vmem:[#allocation2 + $0x168] sm:$0xff]   ;;  %5189 = vperm.xlu1 %7517, %v10789_v54   ;;  %v7760_v54 = vld [vmem:[%s11106_s5 + $0x10] sm:$0xff] }
 0x8f9   :  { %7360 = vmatpush3.bf16.msra.mxu0 %v5147_v20  ;;  %5193 = vperm.xlu0 %7516, %v10807_v33   ;;  %v7763_v33 = vld [vmem:[%s11106_s5 + $0x8] sm:$0xff] }
 0x8fa   :  { %7361 = vmatprep.subr.bf16.mxu0 %v5146_v52 }
 0x8fc   :  { %5181 = vperm.xlu1 %7517, %v10801_v59   ;;  %v10960_v59 = vld [vmem:[%s11106_s5] sm:$0xff] }
 0x8fd   :  { %7362 = vmatpush3.bf16.msra.mxu0 %v5146_v52  ;;  %5185 = vperm.xlu0 %7516, %v10819_v13  }
 0x8fe   :  { %7363 = vmatprep.subr.bf16.mxu0 %v5145_v63 }
 0x900   :  { %5173 = vperm.xlu1 %7517, %v10813_v40  }
 0x901   :  { %7364 = vmatpush3.bf16.msra.mxu0 %v5145_v63  ;;  %5177 = vperm.xlu0 %7516, %v7757_v16  }
 0x902   :  { %7365 = vmatprep.subr.bf16.mxu0 %v5144_v5 }
 0x904   :  { %5165 = vperm.xlu1 %7517, %v7758_v1  }
 0x905   :  { %7366 = vmatpush3.bf16.msra.mxu0 %v5144_v5  ;;  %5169 = vperm.xlu0 %7516, %v7759_v11  }
 0x906   :  { %7367 = vmatprep.subr.bf16.mxu0 %v5143_v44 }
 0x908   :  { %5157 = vperm.xlu1 %7517, %v7760_v54  }
 0x909   :  { %7368 = vmatpush3.bf16.msra.mxu0 %v5143_v44  ;;  %5161 = vperm.xlu0 %7516, %v7761_v10  }
 0x90a   :  { %7369 = vmatprep.subr.bf16.mxu0 %v5142_v25 }
 0x90c   :  { %5149 = vperm.xlu1 %7517, %v10960_v59  }
 0x90d   :  { %7370 = vmatpush3.bf16.msra.mxu0 %v5142_v25  ;;  %5153 = vperm.xlu0 %7516, %v7763_v33  }
 0x90e   :  { %7371 = vmatprep.subr.bf16.mxu0 %v5141_v57 }
 0x911   :  { %7372 = vmatpush3.bf16.msra.mxu0 %v5141_v57 }
 0x912   :  { %7373 = vmatprep.subr.bf16.mxu0 %v5140_v26 }
 0x915   :  { %7374 = vmatpush3.bf16.msra.mxu0 %v5140_v26 }
 0x918   :  { %7376 = vmatmul.mubr.bf16.vlgmr.msra.gmra.mxu0 %v10912_v43 }
 0x919   :  { %7379 = vmatprep.mubr.bf16.mxu0 %v10914_v15 }
 0x920   :  { %7380 = vmatmul.mubr.bf16.gmra.mxu0 %v10918_v21 }
 0x921   :  { %7383 = vmatprep.mubr.bf16.mxu0 %v10920_v0 }
 0x928   :  { %7384 = vmatmul.mubr.bf16.gmra.mxu0 %v10924_v7 }
 0x929   :  { %7387 = vmatprep.mubr.bf16.mxu0 %v10926_v55 }
 0x930   :  { %7388 = vmatmul.mubr.bf16.gmra.mxu0 %v10930_v19 }
 0x955   :  { %v7345_v40 = vpop.f32.mrf.mxu1 }
 0x956   :  { %v5053_v54 = vadd.f32 %v7345_v40, %v10898_v32 }
 0x957   :  { %v5044_v13 = vpop.f32.mrf.mxu1 }
 0x959   :  { %v7346_v30 = vpop.f32.mrf.mxu1 }
 0x95a   :  { %v5056_v11 = vadd.f32 %v7346_v30, %v10896_v58 }
 0x95b   :  { %v5047_v23 = vpop.f32.mrf.mxu1 }
 0x95c   :  { %v5110_v10 = vmax.f32 %v5056_v11, 0.0  ;;  %v5048_v33 = vadd.f32 %v5047_v23, %v10904_v12 }
 0x95d   :  { %v7349_v9 = vpop.f32.mrf.mxu1 }
 0x95e   :  { %v5069_v57 = vadd.f32 %v7349_v9, %v10879_v61  ;;  %v5045_v9 = vadd.f32 %v5044_v13, %v10906_v39 }
 0x95f   :  { %v5060_v20 = vpop.f32.mrf.mxu1 }
 0x960   :  { %v5061_v16 = vadd.f32 %v5060_v20, %v10891_v31  ;;  %v5107_v20 = vmax.f32 %v5045_v9, 0.0 }
 0x961   :  { %v7350_v38 = vpop.f32.mrf.mxu1 }
 0x963   :  { %v5063_v52 = vpop.f32.mrf.mxu1 }
 0x964   :  { %v5064_v27 = vadd.f32 %v5063_v52, %v10889_v37  ;;  %v5109_v37 = vmax.f32 %v5053_v54, 0.0 }
 0x965   :  { %v7353_v6 = vpop.f32.mrf.mxu1 }
 0x966   :  { %v5085_v35 = vadd.f32 %v7353_v6, %v10868_v34  ;;  %v5112_v1 = vmax.f32 %v5064_v27, 0.0  ;;  %v5374_v31 = vpack.c.bf16 %v5110_v10, %v5109_v37 }
 0x967   :  { %v5076_v62 = vpop.f32.mrf.mxu1 }
 0x969   :  { %v7354_v51 = vpop.f32.mrf.mxu1 }
 0x96a   :  { %v5088_v29 = vadd.f32 %v7354_v51, %v10870_v46 }
 0x96b   :  { %v5079_v4 = vpop.f32.mrf.mxu1  ;;  %v10995_v40 = vpop.permute.xlu1 %5209 }
 0x96c   :  { %v5080_v22 = vadd.f32 %v5079_v4, %v10874_v36  ;;  %v5113_v36 = vmax.f32 %v5069_v57, 0.0 }
 0x96d   :  { %v7357_v63 = vpop.f32.mrf.mxu1 }
 0x96e   :  { %v5101_v47 = vadd.f32 %v7357_v63, %v10852_v28  ;;  %v5118_v28 = vmax.f32 %v5088_v29, 0.0  ;;  %v5116_v50 = vmax.f32 %v5080_v22, 0.0 }
 0x96f   :  { %v5092_v18 = vpop.f32.mrf.mxu1  ;;  %v11001_v13 = vpop.permute.xlu1 %5197 }
 0x970   :  { %v5093_v14 = vadd.f32 %v5092_v18, %v10860_v60  ;;  %v5121_v24 = vmax.f32 %v5101_v47, 0.0  ;;  %v5117_v60 = vmax.f32 %v5085_v35, 0.0 }
 0x971   :  { %v7358_v48 = vpop.f32.mrf.mxu1 }
 0x972   :  { %v5104_v8 = vadd.f32 %v7358_v48, %v10864_v56  ;;  %v5119_v44 = vmax.f32 %v5093_v14, 0.0  ;;  %v5077_v56 = vadd.f32 %v5076_v62, %v10872_v2  ;;  %v5378_v41 = vpack.c.bf16 %v5118_v28, %v5117_v60 }
 0x973   :  { %v5095_v5 = vpop.f32.mrf.mxu1  ;;  %v11005_v23 = vpop.permute.xlu1 %5189 }
 0x974   :  { %v5122_v42 = vmax.f32 %v5104_v8, 0.0  ;;  %v5096_v3 = vadd.f32 %v5095_v5, %v10866_v17  ;;  %v5072_v17 = vadd.f32 %v7350_v38, %v10883_v49  ;;  %v5115_v46 = vmax.f32 %v5077_v56, 0.0 }
 0x975   :  { %v5111_v49 = vmax.f32 %v5061_v16, 0.0  ;;  %v5108_v38 = vmax.f32 %v5048_v33, 0.0 }
 0x976   :  { %v5380_v25 = vpack.c.bf16 %v5122_v42, %v5121_v24  ;;  %v5120_v53 = vmax.f32 %v5096_v3, 0.0  ;;  %v5114_v34 = vmax.f32 %v5072_v17, 0.0  ;;  %v5377_v26 = vpack.c.bf16 %v5116_v50, %v5115_v46 }
 0x977   :  { %v5375_v61 = vpack.c.bf16 %v5112_v1, %v5111_v49  ;;  %v5373_v58 = vpack.c.bf16 %v5108_v38, %v5107_v20  ;;  %v11009_v4 = vpop.permute.xlu1 %5181 }
 0x978   :  { %v5379_v45 = vpack.c.bf16 %v5120_v53, %v5119_v44  ;;  %7391 = vmatprep.subr.bf16.mxu1 %v5380_v25  ;;  %v5376_v2 = vpack.c.bf16 %v5114_v34, %v5113_v36 }
 0x979   :  { %7392 = vmatpush3.bf16.msra.mxu1 %v5380_v25 }
 0x97a   :  { %7393 = vmatprep.subr.bf16.mxu1 %v5379_v45 }
 0x97b   :  { %v11016_v24 = vpop.permute.xlu1 %5173 }
 0x97d   :  { %7394 = vmatpush3.bf16.msra.mxu1 %v5379_v45 }
 0x97e   :  { %7395 = vmatprep.subr.bf16.mxu1 %v5378_v41 }
 0x97f   :  { %v11026_v57 = vpop.permute.xlu1 %5165 }
 0x981   :  { %7396 = vmatpush3.bf16.msra.mxu1 %v5378_v41 }
 0x982   :  { %7397 = vmatprep.subr.bf16.mxu1 %v5377_v26 }
 0x983   :  { %v11033_v10 = vpop.permute.xlu1 %5157 }
 0x985   :  { %7398 = vmatpush3.bf16.msra.mxu1 %v5377_v26 }
 0x986   :  { %7399 = vmatprep.subr.bf16.mxu1 %v5376_v2 }
 0x987   :  { %v11041_v20 = vpop.permute.xlu1 %5149 }
 0x989   :  { %7400 = vmatpush3.bf16.msra.mxu1 %v5376_v2 }
 0x98a   :  { %7401 = vmatprep.subr.bf16.mxu1 %v5375_v61 }
 0x98d   :  { %7402 = vmatpush3.bf16.msra.mxu1 %v5375_v61 }
 0x98e   :  { %7403 = vmatprep.subr.bf16.mxu1 %v5374_v31 }
 0x991   :  { %7404 = vmatpush3.bf16.msra.mxu1 %v5374_v31 }
 0x992   :  { %7405 = vmatprep.subr.bf16.mxu1 %v5373_v58 }
 0x995   :  { %7406 = vmatpush3.bf16.msra.mxu1 %v5373_v58 }
 0x998   :  { %7408 = vmatmul.mubr.bf16.vlgmr.msra.gmra.mxu1 %v10912_v43  ;;  %v10997_v43 = vpop.permute.xlu0 %5205 }
 0x999   :  { %7411 = vmatprep.mubr.bf16.mxu1 %v10914_v15 }
 0x9a0   :  { %7412 = vmatmul.mubr.bf16.gmra.mxu1 %v10918_v21 }
 0x9a1   :  { %7415 = vmatprep.mubr.bf16.mxu1 %v10920_v0 }
 0x9a8   :  { %7416 = vmatmul.mubr.bf16.gmra.mxu1 %v10924_v7  ;;  %v11003_v7 = vpop.permute.xlu0 %5201 }
 0x9a9   :  { %7419 = vmatprep.mubr.bf16.mxu1 %v10926_v55 }
 0x9ac   :  { %v11007_v52 = vpop.permute.xlu0 %5193 }
 0x9b0   :  { %7420 = vmatmul.mubr.bf16.gmra.mxu1 %v10930_v19  ;;  %v11011_v63 = vpop.permute.xlu0 %5185 }
 0x9b4   :  { %v11020_v44 = vpop.permute.xlu0 %5177 }
 0x9b8   :  { %v11028_v34 = vpop.permute.xlu0 %5169 }
 0x9bc   :  { %v11035_v61 = vpop.permute.xlu0 %5161 }
 0x9c0   :  { %v11043_v58 = vpop.permute.xlu0 %5153 }
 0x9d8   :  { %v10989_v32 = vpop.f32.mrf.mxu0 }
 0x9d9   :  { %v5303_v9 = vadd.f32 %v10989_v32, %v11033_v10 }
 0x9da   :  { %v10991_v12 = vpop.f32.mrf.mxu0 }
 0x9dc   :  { %v10993_v39 = vpop.f32.mrf.mxu0 }
 0x9dd   :  { %v5306_v38 = vadd.f32 %v10993_v39, %v11035_v61 }
 0x9de   :  { %v10999_v15 = vpop.f32.mrf.mxu0 }
 0x9e0   :  { %v7381_v21 = vpop.f32.mrf.mxu0 }
 0x9e1   :  { %v5319_v46 = vadd.f32 %v7381_v21, %v11016_v24 }
 0x9e2   :  { %v5310_v0 = vpop.f32.mrf.mxu0 }
 0x9e3   :  { %v5311_v1 = vadd.f32 %v5310_v0, %v11026_v57  ;;  %v5363_v11 = vmax.f32 %v5319_v46, 0.0  ;;  %v5359_v0 = vmax.f32 %v5303_v9, 0.0 }
 0x9e4   :  { %v7382_v55 = vpop.f32.mrf.mxu0 }
 0x9e5   :  { %v5322_v26 = vadd.f32 %v7382_v55, %v11020_v44  ;;  %v5361_v33 = vmax.f32 %v5311_v1, 0.0  ;;  %v5360_v55 = vmax.f32 %v5306_v38, 0.0 }
 0x9e6   :  { %v5313_v19 = vpop.f32.mrf.mxu0 }
 0x9e7   :  { %v5314_v2 = vadd.f32 %v5313_v19, %v11028_v34  ;;  %v5364_v49 = vmax.f32 %v5322_v26, 0.0  ;;  %v5295_v19 = vadd.f32 %v10991_v12, %v11041_v20  ;;  %v11052_v12 = vld [vmem:[#allocation2 + $0x190] sm:$0xff]  }
 0x9e8   :  { %v7385_v30 = vpop.f32.mrf.mxu0 }
 0x9e9   :  { %v5335_v8 = vadd.f32 %v7385_v30, %v11005_v23  ;;  %v5362_v37 = vmax.f32 %v5314_v2, 0.0  ;;  %v5514_v31 = vpack.c.bf16 %v5364_v49, %v5363_v11  ;;  %v5298_v30 = vadd.f32 %v10999_v15, %v11043_v58 }
 0x9ea   :  { %v5326_v6 = vpop.f32.mrf.mxu0  ;;  %v5357_v32 = vmax.f32 %v5295_v19, 0.0  ;;  %v7798_v15 = vmov 9  }
 0x9eb   :  { %v5367_v28 = vmax.f32 %v5335_v8, 0.0  ;;  %v5327_v22 = vadd.f32 %v5326_v6, %v11009_v4  ;;  %v5513_v21 = vpack.c.bf16 %v5362_v37, %v5361_v33  ;;  %v5358_v39 = vmax.f32 %v5298_v30, 0.0  ;;  %7518 = vset.pattern.permute.xlu1 %v7798_v15  ;;  %7519 = vset.pattern.permute.xlu0 %v7798_v15  ;;  %v11065_v8 = vld [vmem:[#allocation2 + $0x1b0] sm:$0xff]  }
 0x9ec   :  { %v7386_v62 = vpop.f32.mrf.mxu0  ;;  %v5512_v6 = vpack.c.bf16 %v5360_v55, %v5359_v0  ;;  %5520 = vperm.xlu1 %7518, %v10960_v59  }
 0x9ed   :  { %v5338_v42 = vadd.f32 %v7386_v62, %v11007_v52  ;;  %v5365_v27 = vmax.f32 %v5327_v22, 0.0  ;;  %v5511_v62 = vpack.c.bf16 %v5358_v39, %v5357_v32 }
 0x9ee   :  { %v5329_v51 = vpop.f32.mrf.mxu0 }
 0x9ef   :  { %v5368_v60 = vmax.f32 %v5338_v42, 0.0  ;;  %v5330_v56 = vadd.f32 %v5329_v51, %v11011_v63  ;;  %v7722_v51 = vld [vmem:[#allocation2 + $0x180] sm:$0xff]  }
 0x9f0   :  { %v7389_v18 = vpop.f32.mrf.mxu0  ;;  %7471 = vmatprep.mubr.bf16.mxu1 %v7722_v51  ;;  %7439 = vmatprep.mubr.bf16.mxu0 %v7722_v51 }
 0x9f1   :  { %v5351_v47 = vadd.f32 %v7389_v18, %v10997_v43  ;;  %v5516_v36 = vpack.c.bf16 %v5368_v60, %v5367_v28  ;;  %v5366_v16 = vmax.f32 %v5330_v56, 0.0  ;;  %v11049_v18 = vld [vmem:[#allocation2 + $0x188] sm:$0xff]  }
 0x9f2   :  { %v5342_v48 = vpop.f32.mrf.mxu0 }
 0x9f3   :  { %v5343_v14 = vadd.f32 %v5342_v48, %v11001_v13  ;;  %v5371_v3 = vmax.f32 %v5351_v47, 0.0  ;;  %v5515_v54 = vpack.c.bf16 %v5366_v16, %v5365_v27  ;;  %v11056_v47 = vld [vmem:[#allocation2 + $0x198] sm:$0xff]   ;;  %v11059_v48 = vld [vmem:[#allocation2 + $0x1a0] sm:$0xff]  }
 0x9f4   :  { %v7390_v5 = vpop.f32.mrf.mxu0 }
 0x9f5   :  { %v5354_v29 = vadd.f32 %v7390_v5, %v10995_v40  ;;  %v5369_v53 = vmax.f32 %v5343_v14, 0.0  ;;  %v11062_v14 = vld [vmem:[#allocation2 + $0x1a8] sm:$0xff]   ;;  %v11068_v5 = vld [vmem:[#allocation2 + $0x1b8] sm:$0xff]  }
 0x9f6   :  { %v5345_v25 = vpop.f32.mrf.mxu0 }
 0x9f7   :  { %v5372_v35 = vmax.f32 %v5354_v29, 0.0  ;;  %v5346_v45 = vadd.f32 %v5345_v25, %v11003_v7 }
 0x9f9   :  { %v5518_v50 = vpack.c.bf16 %v5372_v35, %v5371_v3  ;;  %v5370_v41 = vmax.f32 %v5346_v45, 0.0 }
 0x9fb   :  { %v5517_v17 = vpack.c.bf16 %v5370_v41, %v5369_v53  ;;  %7423 = vmatprep.subr.bf16.mxu0 %v5518_v50 }
 0x9fc   :  { %7424 = vmatpush3.bf16.msra.mxu0 %v5518_v50 }
 0x9fd   :  { %7425 = vmatprep.subr.bf16.mxu0 %v5517_v17 }
 0xa00   :  { %7426 = vmatpush3.bf16.msra.mxu0 %v5517_v17 }
 0xa01   :  { %7427 = vmatprep.subr.bf16.mxu0 %v5516_v36 }
 0xa04   :  { %7428 = vmatpush3.bf16.msra.mxu0 %v5516_v36 }
 0xa05   :  { %7429 = vmatprep.subr.bf16.mxu0 %v5515_v54 }
 0xa08   :  { %7430 = vmatpush3.bf16.msra.mxu0 %v5515_v54 }
 0xa09   :  { %7431 = vmatprep.subr.bf16.mxu0 %v5514_v31 }
 0xa0c   :  { %7432 = vmatpush3.bf16.msra.mxu0 %v5514_v31 }
 0xa0d   :  { %7433 = vmatprep.subr.bf16.mxu0 %v5513_v21 }
 0xa10   :  { %7434 = vmatpush3.bf16.msra.mxu0 %v5513_v21 }
 0xa11   :  { %7435 = vmatprep.subr.bf16.mxu0 %v5512_v6 }
 0xa14   :  { %7436 = vmatpush3.bf16.msra.mxu0 %v5512_v6 }
 0xa15   :  { %7437 = vmatprep.subr.bf16.mxu0 %v5511_v62 }
 0xa18   :  { %7438 = vmatpush3.bf16.msra.mxu0 %v5511_v62 }
 0xa1b   :  { %7440 = vmatmul.mubr.bf16.vlgmr.msra.gmra.mxu0 %v11049_v18 }
 0xa1c   :  { %7443 = vmatprep.mubr.bf16.mxu0 %v11052_v12 }
 0xa23   :  { %7444 = vmatmul.mubr.bf16.gmra.mxu0 %v11056_v47 }
 0xa24   :  { %7447 = vmatprep.mubr.bf16.mxu0 %v11059_v48 }
 0xa2b   :  { %7448 = vmatmul.mubr.bf16.gmra.mxu0 %v11062_v14 }
 0xa2c   :  { %7451 = vmatprep.mubr.bf16.mxu0 %v11065_v8 }
 0xa33   :  { %7452 = vmatmul.mubr.bf16.gmra.mxu0 %v11068_v5 }
 0xa58   :  { %v7409_v59 = vpop.f32.mrf.mxu1 }
 0xa59   :  { %v5424_v6 = vadd.f32 %v7409_v59, %v11033_v10 }
 0xa5a   :  { %v5415_v42 = vpop.f32.mrf.mxu1 }
 0xa5b   :  { %v5416_v15 = vadd.f32 %v5415_v42, %v11041_v20 }
 0xa5c   :  { %v7410_v3 = vpop.f32.mrf.mxu1 }
 0xa5d   :  { %v5427_v39 = vadd.f32 %v7410_v3, %v11035_v61 }
 0xa5e   :  { %v5418_v29 = vpop.f32.mrf.mxu1 }
 0xa5f   :  { %v5481_v62 = vmax.f32 %v5427_v39, 0.0  ;;  %v5419_v51 = vadd.f32 %v5418_v29, %v11043_v58 }
 0xa60   :  { %v7413_v25 = vpop.f32.mrf.mxu1 }
 0xa61   :  { %v5440_v0 = vadd.f32 %v7413_v25, %v11016_v24  ;;  %v5479_v25 = vmax.f32 %v5419_v51, 0.0 }
 0xa62   :  { %v5431_v53 = vpop.f32.mrf.mxu1 }
 0xa63   :  { %v5432_v30 = vadd.f32 %v5431_v53, %v11026_v57  ;;  %v5478_v53 = vmax.f32 %v5416_v15, 0.0 }
 0xa64   :  { %v7414_v35 = vpop.f32.mrf.mxu1 }
 0xa65   :  { %v5698_v61 = vpack.c.bf16 %v5479_v25, %v5478_v53 }
 0xa66   :  { %v5434_v45 = vpop.f32.mrf.mxu1 }
 0xa67   :  { %v5435_v19 = vadd.f32 %v5434_v45, %v11028_v34  ;;  %v5480_v34 = vmax.f32 %v5424_v6, 0.0  ;;  %v5521_v20 = vpop.permute.xlu1 %5520 }
 0xa68   :  { %v7417_v28 = vpop.f32.mrf.mxu1 }
 0xa69   :  { %v5456_v37 = vadd.f32 %v7417_v28, %v11005_v23  ;;  %v5483_v32 = vmax.f32 %v5435_v19, 0.0  ;;  %v5699_v57 = vpack.c.bf16 %v5481_v62, %v5480_v34 }
 0xa6a   :  { %v5447_v22 = vpop.f32.mrf.mxu1 }
 0xa6c   :  { %v7418_v60 = vpop.f32.mrf.mxu1 }
 0xa6d   :  { %v5459_v11 = vadd.f32 %v7418_v60, %v11007_v52 }
 0xa6e   :  { %v5450_v56 = vpop.f32.mrf.mxu1 }
 0xa6f   :  { %v5451_v38 = vadd.f32 %v5450_v56, %v11011_v63  ;;  %v5484_v63 = vmax.f32 %v5440_v0, 0.0 }
 0xa70   :  { %v7421_v50 = vpop.f32.mrf.mxu1 }
 0xa71   :  { %v5472_v17 = vadd.f32 %v7421_v50, %v10997_v43  ;;  %v5489_v43 = vmax.f32 %v5459_v11, 0.0  ;;  %v5487_v31 = vmax.f32 %v5451_v38, 0.0 }
 0xa72   :  { %v5463_v41 = vpop.f32.mrf.mxu1 }
 0xa73   :  { %v5464_v27 = vadd.f32 %v5463_v41, %v11001_v13  ;;  %v5492_v16 = vmax.f32 %v5472_v17, 0.0  ;;  %v5448_v13 = vadd.f32 %v5447_v22, %v11009_v4 }
 0xa74   :  { %v7422_v46 = vpop.f32.mrf.mxu1 }
 0xa75   :  { %v5475_v26 = vadd.f32 %v7422_v46, %v10995_v40  ;;  %v5490_v54 = vmax.f32 %v5464_v27, 0.0  ;;  %v5488_v40 = vmax.f32 %v5456_v37, 0.0  ;;  %v5486_v52 = vmax.f32 %v5448_v13, 0.0 }
 0xa76   :  { %v5466_v36 = vpop.f32.mrf.mxu1 }
 0xa77   :  { %v5493_v1 = vmax.f32 %v5475_v26, 0.0  ;;  %v5467_v2 = vadd.f32 %v5466_v36, %v11003_v7  ;;  %v5703_v21 = vpack.c.bf16 %v5489_v43, %v5488_v40  ;;  %v5443_v7 = vadd.f32 %v7414_v35, %v11020_v44 }
 0xa78   :  { %v5702_v55 = vpack.c.bf16 %v5487_v31, %v5486_v52  ;;  %v5482_v44 = vmax.f32 %v5432_v30, 0.0 }
 0xa79   :  { %v5705_v49 = vpack.c.bf16 %v5493_v1, %v5492_v16  ;;  %v5491_v33 = vmax.f32 %v5467_v2, 0.0  ;;  %v5485_v23 = vmax.f32 %v5443_v7, 0.0 }
 0xa7a   :  { %v5700_v24 = vpack.c.bf16 %v5483_v32, %v5482_v44 }
 0xa7b   :  { %v5704_v9 = vpack.c.bf16 %v5491_v33, %v5490_v54  ;;  %7455 = vmatprep.subr.bf16.mxu1 %v5705_v49  ;;  %v5701_v4 = vpack.c.bf16 %v5485_v23, %v5484_v63 }
 0xa7c   :  { %7456 = vmatpush3.bf16.msra.mxu1 %v5705_v49 }
 0xa7d   :  { %7457 = vmatprep.subr.bf16.mxu1 %v5704_v9 }
 0xa80   :  { %7458 = vmatpush3.bf16.msra.mxu1 %v5704_v9 }
 0xa81   :  { %7459 = vmatprep.subr.bf16.mxu1 %v5703_v21 }
 0xa84   :  { %7460 = vmatpush3.bf16.msra.mxu1 %v5703_v21 }
 0xa85   :  { %7461 = vmatprep.subr.bf16.mxu1 %v5702_v55 }
 0xa88   :  { %7462 = vmatpush3.bf16.msra.mxu1 %v5702_v55 }
 0xa89   :  { %7463 = vmatprep.subr.bf16.mxu1 %v5701_v4 }
 0xa8c   :  { %7464 = vmatpush3.bf16.msra.mxu1 %v5701_v4 }
 0xa8d   :  { %7465 = vmatprep.subr.bf16.mxu1 %v5700_v24 }
 0xa90   :  { %7466 = vmatpush3.bf16.msra.mxu1 %v5700_v24 }
 0xa91   :  { %7467 = vmatprep.subr.bf16.mxu1 %v5699_v57 }
 0xa94   :  { %7468 = vmatpush3.bf16.msra.mxu1 %v5699_v57 }
 0xa95   :  { %7469 = vmatprep.subr.bf16.mxu1 %v5698_v61 }
 0xa98   :  { %7470 = vmatpush3.bf16.msra.mxu1 %v5698_v61 }
 0xa9b   :  { %7472 = vmatmul.mubr.bf16.vlgmr.msra.gmra.mxu1 %v11049_v18 }
 0xa9c   :  { %7475 = vmatprep.mubr.bf16.mxu1 %v11052_v12 }
 0xaa3   :  { %7476 = vmatmul.mubr.bf16.gmra.mxu1 %v11056_v47 }
 0xaa4   :  { %7479 = vmatprep.mubr.bf16.mxu1 %v11059_v48 }
 0xaab   :  { %7480 = vmatmul.mubr.bf16.gmra.mxu1 %v11062_v14 }
 0xaac   :  { %7483 = vmatprep.mubr.bf16.mxu1 %v11065_v8 }
 0xab3   :  { %7484 = vmatmul.mubr.bf16.gmra.mxu1 %v11068_v5 }
 0xadb   :  { %v7441_v10 = vpop.f32.mrf.mxu0 }
 0xadd   :  { %v5650_v58 = vpop.f32.mrf.mxu0 }
 0xade   :  { %v5651_v59 = vadd.f32 %v5650_v58, %v5521_v20 }
 0xadf   :  { %v7442_v42 = vpop.f32.mrf.mxu0 }
 0xae0   :  { %5789 = vst.msk [vmem:[%s11107_s6] sm:$0x1] %vm5788_vm1, %v5651_v59 }
 0xae1   :  { %v5653_v18 = vpop.f32.mrf.mxu0 }
 0xae3   :  { %v7445_v12 = vpop.f32.mrf.mxu0 }
 0xae5   :  { %v5663_v47 = vpop.f32.mrf.mxu0 }
 0xae7   :  { %v7446_v48 = vpop.f32.mrf.mxu0 }
 0xae9   :  { %v5665_v3 = vpop.f32.mrf.mxu0 }
 0xaeb   :  { %v7449_v14 = vpop.f32.mrf.mxu0 }
 0xaed   :  { %v5675_v29 = vpop.f32.mrf.mxu0 }
 0xaef   :  { %v7450_v8 = vpop.f32.mrf.mxu0 }
 0xaf1   :  { %v5677_v35 = vpop.f32.mrf.mxu0 }
 0xaf3   :  { %v7453_v5 = vpop.f32.mrf.mxu0 }
 0xaf5   :  { %v5687_v45 = vpop.f32.mrf.mxu0 }
 0xaf7   :  { %v7454_v28 = vpop.f32.mrf.mxu0 }
 0xaf9   :  { %v5689_v22 = vpop.f32.mrf.mxu0 }
 0xb5b   :  { %v7473_v60 = vpop.f32.mrf.mxu1 }
 0xb5d   :  { %v5740_v56 = vpop.f32.mrf.mxu1 }
 0xb5e   :  { %v5741_v50 = vadd.f32 %v5740_v56, %v5521_v20 }
 0xb5f   :  { %v7474_v41 = vpop.f32.mrf.mxu1 }
 0xb60   :  { %5791 = vrot.lane.b32.xlu0 %v5741_v50, %s7787_s24 }
 0xb61   :  { %v5743_v17 = vpop.f32.mrf.mxu1 }
 0xb63   :  { %v7477_v46 = vpop.f32.mrf.mxu1 }
 0xb65   :  { %v5753_v26 = vpop.f32.mrf.mxu1 }
 0xb67   :  { %v7478_v27 = vpop.f32.mrf.mxu1 }
 0xb69   :  { %v5755_v36 = vpop.f32.mrf.mxu1 }
 0xb6b   :  { %v7481_v16 = vpop.f32.mrf.mxu1 }
 0xb6d   :  { %v5765_v1 = vpop.f32.mrf.mxu1 }
 0xb6f   :  { %v7482_v2 = vpop.f32.mrf.mxu1 }
 0xb71   :  { %v5767_v11 = vpop.f32.mrf.mxu1 }
 0xb73   :  { %v7485_v49 = vpop.f32.mrf.mxu1 }
 0xb75   :  { %v5777_v54 = vpop.f32.mrf.mxu1 }
 0xb77   :  { %v7486_v33 = vpop.f32.mrf.mxu1 }
 0xb79   :  { %v5779_v37 = vpop.f32.mrf.mxu1 }
 0xbd2   :  { %v5792_v9 = vpop.permute.xlu0 %5791 }
 0xbd3   :  { %5795 = vst.msk [vmem:[%s11107_s6] sm:$0x1] %vm5794_vm2, %v5792_v9 }
 0xbd4   :  { %5800 = vsyncpa [#allocation3], 1 }

</bundles_post_ra>
